<compile_context>
chip_gen: v5e
topology: v5e:2x2
jax: 0.10.0
libtpu: 0.0.40
codegen_flags: <defaults>
</compile_context>

<pallas_src>
import functools

import jax
import jax.numpy as jnp
from jax.experimental import pallas as pl
from jax.experimental.pallas import tpu as pltpu


# ----------------------------------------------------------------------------
# Pallas kernel: 5 chained pointwise-linear (+ folded BN) + ReLU stages,
# channel-major activations (C, tile_n) so the output tile is stored directly.
# ----------------------------------------------------------------------------
def _make_pointnet_kernel(channel_major_input):
    def kernel(x_ref, w1, b1, w2, b2, w3, b3, w4, b4, w5, b5, o_ref):
        if channel_major_input:
            # x_ref: (3, tile_n) f32 ; w1: (64, 3) ; b1: (64, 1)
            h = jnp.dot(w1[...], x_ref[...], preferred_element_type=jnp.float32)
            h = jnp.maximum(h + b1[...], 0.0)              # (64, tile_n) f32
        else:
            # x_ref: (tile_n, 3) f32 ; w1: (3, 64) ; b1: (1, 64)
            h_pm = jnp.dot(x_ref[...], w1[...],
                           preferred_element_type=jnp.float32)
            h_pm = jnp.maximum(h_pm + b1[...], 0.0)        # (tile_n, 64) f32
            # Single small transpose at the narrowest (64-ch) activation;
            # the big (tile_n, emb_dims) output transpose is eliminated.
            h = h_pm.T                                     # (64, tile_n) f32

        # Layers 2..5: channel-major, bf16 MXU inputs, f32 accumulation,
        # f32 bias-add + ReLU.
        for w, b in ((w2, b2), (w3, b3), (w4, b4), (w5, b5)):
            h = jnp.dot(w[...], h.astype(jnp.bfloat16),
                        preferred_element_type=jnp.float32)   # (c_out, tile_n)
            h = jnp.maximum(h + b[...], 0.0)

        # Tile is already (emb_dims, tile_n): store directly, lane-dense.
        o_ref[...] = h.astype(o_ref.dtype)

    return kernel


@functools.partial(jax.jit, static_argnames=("tile_n", "input_shape", "out_dtype"))
def pointnet_forward(x, folded_params, tile_n=512, input_shape="bnc",
                     out_dtype=jnp.bfloat16):
    """PointNet forward.

    x: (B, N, 3) for 'bnc' or (B, 3, N) for 'bcn'.
    folded_params: 5 x (w:(c_in,c_out) f32, b:(1,c_out) f32), BN pre-folded.
    Returns (B, emb_dims, N) in `out_dtype` (bf16 by default; pass
    jnp.float32 for the torch module's exact output dtype).
    """
    if input_shape not in ("bnc", "bcn"):
        raise ValueError("Allowed shapes are 'bcn' and 'bnc'")
    channel_major_input = input_shape == "bcn"
    if channel_major_input:
        B, C, N = x.shape
    else:
        B, N, C = x.shape
    assert C == 3, "shape of x must have 3 input channels"
    tile_n = min(tile_n, N)
    assert N % tile_n == 0 and tile_n % 128 == 0, (N, tile_n)

    (w1, b1), (w2, b2), (w3, b3), (w4, b4), (w5, b5) = folded_params
    emb_dims = w5.shape[1]

    # Layer 1 stays f32 (K=3, negligible FLOPs).  'bcn' gets it channel-major.
    if channel_major_input:
        w1_k = w1.T.astype(jnp.float32)            # (64, 3)
        b1_k = b1.T.astype(jnp.float32)            # (64, 1)
    else:
        w1_k = w1.astype(jnp.float32)              # (3, 64)
        b1_k = b1.astype(jnp.float32)              # (1, 64)
    # Layers 2..5: channel-major (c_out, c_in) bf16 weights, (c_out, 1) f32 bias.
    cm = lambda w, b: (w.T.astype(jnp.bfloat16), b.T.astype(jnp.float32))
    w2_k, b2_k = cm(w2, b2)
    w3_k, b3_k = cm(w3, b3)
    w4_k, b4_k = cm(w4, b4)
    w5_k, b5_k = cm(w5, b5)
    weights = (w1_k, b1_k, w2_k, b2_k, w3_k, b3_k, w4_k, b4_k, w5_k, b5_k)

    grid = (B, N // tile_n)

    # Grid-invariant full-array blocks for weights/biases: DMA'd once,
    # resident in VMEM for the whole grid.
    def _wspec(arr):
        return pl.BlockSpec(arr.shape, lambda b, n: (0, 0))

    if channel_major_input:
        x_spec = pl.BlockSpec((None, 3, tile_n), lambda b, n: (b, 0, n))
    else:
        x_spec = pl.BlockSpec((None, tile_n, 3), lambda b, n: (b, n, 0))
    in_specs = [x_spec] + [_wspec(a) for a in weights]
    out_specs = pl.BlockSpec((None, emb_dims, tile_n), lambda b, n: (b, 0, n))

    # VMEM budget: double-buffered in/out tiles (input lane-padded to 128),
    # resident weights, generous slack for activation temporaries.
    out_tile = emb_dims * tile_n * jnp.dtype(out_dtype).itemsize
    in_tile = tile_n * 128 * 4
    wt_bytes = sum(int(a.size) * a.dtype.itemsize for a in weights)
    act_bytes = 4 * emb_dims * tile_n * 4
    vmem_limit = 2 * (in_tile + out_tile) + 2 * wt_bytes + act_bytes + (4 << 20)
    vmem_limit = int(min(max(vmem_limit, 32 << 20), 48 << 20))

    out = pl.pallas_call(
        _make_pointnet_kernel(channel_major_input),
        out_shape=jax.ShapeDtypeStruct((B, emb_dims, N), out_dtype),
        grid_spec=pltpu.PrefetchScalarGridSpec(
            num_scalar_prefetch=0,
            grid=grid,
            in_specs=in_specs,
            out_specs=out_specs,
        ),
        compiler_params=pltpu.CompilerParams(
            dimension_semantics=("parallel", "parallel"),
            vmem_limit_bytes=vmem_limit),
    )(x, *weights)
    return out


# ----------------------------------------------------------------------------
# Deterministic parameter construction + BatchNorm folding (plain-JAX glue).
# ----------------------------------------------------------------------------
def _make_layer_params(key, c_in, c_out):
    kw, kb, kg, kbe, km, kv = jax.random.split(key, 6)
    bound = 1.0 / jnp.sqrt(c_in)
    # Conv1d(k=1) weight (c_out, c_in, 1) kept in transposed matmul form (c_in, c_out).
    w = jax.random.uniform(kw, (c_in, c_out), jnp.float32, -bound, bound)
    b = jax.random.uniform(kb, (1, c_out), jnp.float32, -bound, bound)
    gamma = 1.0 + 0.1 * jax.random.normal(kg, (1, c_out), jnp.float32)
    beta = 0.1 * jax.random.normal(kbe, (1, c_out), jnp.float32)
    r_mean = 0.1 * jax.random.normal(km, (1, c_out), jnp.float32)
    r_var = jnp.abs(1.0 + 0.1 * jax.random.normal(kv, (1, c_out), jnp.float32))
    return w, b, gamma, beta, r_mean, r_var


def _fold_bn(w, b, gamma, beta, r_mean, r_var, eps=1e-5):
    scale = gamma / jnp.sqrt(r_var + eps)            # (1, c_out)
    w_f = w * scale                                  # scale each output channel
    b_f = (b - r_mean) * scale + beta
    return w_f, b_f


def make_pointnet_params(emb_dims=1024, seed=0):
    dims = [(3, 64), (64, 64), (64, 64), (64, 128), (128, emb_dims)]
    keys = jax.random.split(jax.random.PRNGKey(seed), len(dims))
    raw = [_make_layer_params(k, ci, co) for k, (ci, co) in zip(keys, dims)]
    return tuple(_fold_bn(*p) for p in raw)


# ----------------------------------------------------------------------------
# Pure-JAX f32 reference (module semantics) for the sanity check.
# ----------------------------------------------------------------------------
def pointnet_reference(x_bnc, folded_params):
    h = x_bnc
    for w, b in folded_params:
        h = jnp.maximum(
            jnp.einsum("bnc,cd->bnd", h, w, precision="highest") + b[None], 0.0)
    return jnp.transpose(h, (0, 2, 1))


if __name__ == "__main__":
    B, N, EMB = 2, 1024, 256
    key = jax.random.PRNGKey(0)
    x = jax.random.normal(key, (B, N, 3), jnp.float32)

    params = make_pointnet_params(emb_dims=EMB, seed=0)

    ref = pointnet_reference(x, params)              # f32, (B, EMB, N)
    ref_scale = float(jnp.max(jnp.abs(ref))) + 1e-6

    def rel_err(out):
        return float(jnp.max(jnp.abs(out.astype(jnp.float32) - ref))) / ref_scale

    # Default path: 'bnc' input, bf16 output (layers 2..5 also run bf16 MXU
    # inputs with f32 accumulation -> small deviation from the f32 reference).
    out = jax.block_until_ready(pointnet_forward(x, params))
    assert out.shape == (B, EMB, N), out.shape
    assert out.dtype == jnp.bfloat16, out.dtype
    assert rel_err(out) < 3e-2, rel_err(out)

    # 'bcn' input path: no wrapper transpose, channel-major layer 1.
    x_bcn = jnp.transpose(x, (0, 2, 1))
    out_bcn = jax.block_until_ready(
        pointnet_forward(x_bcn, params, input_shape="bcn"))
    assert out_bcn.shape == (B, EMB, N), out_bcn.shape
    assert rel_err(out_bcn) < 3e-2, rel_err(out_bcn)

    # f32 output (matches the torch module's output dtype exactly).
    out_f32 = jax.block_until_ready(
        pointnet_forward(x, params, out_dtype=jnp.float32))
    assert out_f32.dtype == jnp.float32
    assert rel_err(out_f32) < 2e-2, rel_err(out_f32)

    print("KERNEL_OK")
</pallas_src>

<mosaic_0001>
module attributes {stable_mosaic.version = 11 : i64} {
  func.func @kernel(%arg0: i32, %arg1: i32, %arg2: memref<1x512x3xf32, #tpu.memory_space<vmem>>, %arg3: memref<3x64xf32, #tpu.memory_space<vmem>>, %arg4: memref<1x64xf32, #tpu.memory_space<vmem>>, %arg5: memref<64x64xbf16, #tpu.memory_space<vmem>>, %arg6: memref<64x1xf32, #tpu.memory_space<vmem>>, %arg7: memref<64x64xbf16, #tpu.memory_space<vmem>>, %arg8: memref<64x1xf32, #tpu.memory_space<vmem>>, %arg9: memref<128x64xbf16, #tpu.memory_space<vmem>>, %arg10: memref<128x1xf32, #tpu.memory_space<vmem>>, %arg11: memref<256x128xbf16, #tpu.memory_space<vmem>>, %arg12: memref<256x1xf32, #tpu.memory_space<vmem>>, %arg13: memref<1x256x512xbf16, #tpu.memory_space<vmem>>) attributes {dimension_semantics = [#tpu.dimension_semantics<parallel>, #tpu.dimension_semantics<parallel>], iteration_bounds = array<i64: 2, 2>, scalar_prefetch = 0 : i64, scratch_operands = 0 : i64, tpu.core_type = #tpu.core_type<tc>, window_params = [{transform_indices = @transform_0, window_bounds = array<i64: 1, 512, 3>}, {pipeline_mode = #tpu.pipeline_mode<synchronous>, transform_indices = @transform_1, window_bounds = array<i64: 3, 64>}, {pipeline_mode = #tpu.pipeline_mode<synchronous>, transform_indices = @transform_2, window_bounds = array<i64: 1, 64>}, {pipeline_mode = #tpu.pipeline_mode<synchronous>, transform_indices = @transform_3, window_bounds = array<i64: 64, 64>}, {pipeline_mode = #tpu.pipeline_mode<synchronous>, transform_indices = @transform_4, window_bounds = array<i64: 64, 1>}, {pipeline_mode = #tpu.pipeline_mode<synchronous>, transform_indices = @transform_5, window_bounds = array<i64: 64, 64>}, {pipeline_mode = #tpu.pipeline_mode<synchronous>, transform_indices = @transform_6, window_bounds = array<i64: 64, 1>}, {pipeline_mode = #tpu.pipeline_mode<synchronous>, transform_indices = @transform_7, window_bounds = array<i64: 128, 64>}, {pipeline_mode = #tpu.pipeline_mode<synchronous>, transform_indices = @transform_8, window_bounds = array<i64: 128, 1>}, {pipeline_mode = #tpu.pipeline_mode<synchronous>, transform_indices = @transform_9, window_bounds = array<i64: 256, 128>}, {pipeline_mode = #tpu.pipeline_mode<synchronous>, transform_indices = @transform_10, window_bounds = array<i64: 256, 1>}, {transform_indices = @transform_11, window_bounds = array<i64: 1, 256, 512>}]} {
    %c0 = arith.constant 0 : index
    %c0_0 = arith.constant 0 : index
    %c0_1 = arith.constant 0 : index
    %0 = vector.load %arg2[%c0, %c0_0, %c0_1] : memref<1x512x3xf32, #tpu.memory_space<vmem>>, vector<1x512x3xf32>
    %1 = vector.shape_cast %0 : vector<1x512x3xf32> to vector<512x3xf32>
    %c0_2 = arith.constant 0 : index
    %c0_3 = arith.constant 0 : index
    %2 = vector.load %arg3[%c0_2, %c0_3] : memref<3x64xf32, #tpu.memory_space<vmem>>, vector<3x64xf32>
    %cst = arith.constant dense<0.000000e+00> : vector<512x64xf32>
    %3 = tpu.matmul %1, %2, %cst {dimension_numbers = #tpu.dot_dimension_numbers<[1], [0], [0], [1], [0, 0, 1, 1], [], []>} : vector<512x3xf32>, vector<3x64xf32>, vector<512x64xf32> -> vector<512x64xf32>
    %c0_4 = arith.constant 0 : index
    %c0_5 = arith.constant 0 : index
    %4 = vector.load %arg4[%c0_4, %c0_5] : memref<1x64xf32, #tpu.memory_space<vmem>>, vector<1x64xf32>
    %5 = vector.broadcast %4 : vector<1x64xf32> to vector<512x64xf32>
    %6 = arith.addf %3, %5 : vector<512x64xf32>
    %cst_6 = arith.constant 0.000000e+00 : f32
    %7 = vector.broadcast %cst_6 : f32 to vector<512x64xf32>
    %8 = arith.maximumf %6, %7 : vector<512x64xf32>
    %9 = tpu.transpose %8, [1, 0] : vector<512x64xf32> -> vector<64x512xf32>
    %c0_7 = arith.constant 0 : index
    %c0_8 = arith.constant 0 : index
    %10 = vector.load %arg5[%c0_7, %c0_8] : memref<64x64xbf16, #tpu.memory_space<vmem>>, vector<64x64xbf16>
    %11 = arith.truncf %9 : vector<64x512xf32> to vector<64x512xbf16>
    %cst_9 = arith.constant dense<0.000000e+00> : vector<64x512xf32>
    %12 = tpu.matmul %10, %11, %cst_9 {dimension_numbers = #tpu.dot_dimension_numbers<[1], [0], [0], [1], [0, 0, 1, 1], [], []>} : vector<64x64xbf16>, vector<64x512xbf16>, vector<64x512xf32> -> vector<64x512xf32>
    %c0_10 = arith.constant 0 : index
    %c0_11 = arith.constant 0 : index
    %13 = vector.load %arg6[%c0_10, %c0_11] : memref<64x1xf32, #tpu.memory_space<vmem>>, vector<64x1xf32>
    %14 = vector.broadcast %13 : vector<64x1xf32> to vector<64x512xf32>
    %15 = arith.addf %12, %14 : vector<64x512xf32>
    %cst_12 = arith.constant 0.000000e+00 : f32
    %16 = vector.broadcast %cst_12 : f32 to vector<64x512xf32>
    %17 = arith.maximumf %15, %16 : vector<64x512xf32>
    %c0_13 = arith.constant 0 : index
    %c0_14 = arith.constant 0 : index
    %18 = vector.load %arg7[%c0_13, %c0_14] : memref<64x64xbf16, #tpu.memory_space<vmem>>, vector<64x64xbf16>
    %19 = arith.truncf %17 : vector<64x512xf32> to vector<64x512xbf16>
    %cst_15 = arith.constant dense<0.000000e+00> : vector<64x512xf32>
    %20 = tpu.matmul %18, %19, %cst_15 {dimension_numbers = #tpu.dot_dimension_numbers<[1], [0], [0], [1], [0, 0, 1, 1], [], []>} : vector<64x64xbf16>, vector<64x512xbf16>, vector<64x512xf32> -> vector<64x512xf32>
    %c0_16 = arith.constant 0 : index
    %c0_17 = arith.constant 0 : index
    %21 = vector.load %arg8[%c0_16, %c0_17] : memref<64x1xf32, #tpu.memory_space<vmem>>, vector<64x1xf32>
    %22 = vector.broadcast %21 : vector<64x1xf32> to vector<64x512xf32>
    %23 = arith.addf %20, %22 : vector<64x512xf32>
    %cst_18 = arith.constant 0.000000e+00 : f32
    %24 = vector.broadcast %cst_18 : f32 to vector<64x512xf32>
    %25 = arith.maximumf %23, %24 : vector<64x512xf32>
    %c0_19 = arith.constant 0 : index
    %c0_20 = arith.constant 0 : index
    %26 = vector.load %arg9[%c0_19, %c0_20] : memref<128x64xbf16, #tpu.memory_space<vmem>>, vector<128x64xbf16>
    %27 = arith.truncf %25 : vector<64x512xf32> to vector<64x512xbf16>
    %cst_21 = arith.constant dense<0.000000e+00> : vector<128x512xf32>
    %28 = tpu.matmul %26, %27, %cst_21 {dimension_numbers = #tpu.dot_dimension_numbers<[1], [0], [0], [1], [0, 0, 1, 1], [], []>} : vector<128x64xbf16>, vector<64x512xbf16>, vector<128x512xf32> -> vector<128x512xf32>
    %c0_22 = arith.constant 0 : index
    %c0_23 = arith.constant 0 : index
    %29 = vector.load %arg10[%c0_22, %c0_23] : memref<128x1xf32, #tpu.memory_space<vmem>>, vector<128x1xf32>
    %30 = vector.broadcast %29 : vector<128x1xf32> to vector<128x512xf32>
    %31 = arith.addf %28, %30 : vector<128x512xf32>
    %cst_24 = arith.constant 0.000000e+00 : f32
    %32 = vector.broadcast %cst_24 : f32 to vector<128x512xf32>
    %33 = arith.maximumf %31, %32 : vector<128x512xf32>
    %c0_25 = arith.constant 0 : index
    %c0_26 = arith.constant 0 : index
    %34 = vector.load %arg11[%c0_25, %c0_26] : memref<256x128xbf16, #tpu.memory_space<vmem>>, vector<256x128xbf16>
    %35 = arith.truncf %33 : vector<128x512xf32> to vector<128x512xbf16>
    %cst_27 = arith.constant dense<0.000000e+00> : vector<256x512xf32>
    %36 = tpu.matmul %34, %35, %cst_27 {dimension_numbers = #tpu.dot_dimension_numbers<[1], [0], [0], [1], [0, 0, 1, 1], [], []>} : vector<256x128xbf16>, vector<128x512xbf16>, vector<256x512xf32> -> vector<256x512xf32>
    %c0_28 = arith.constant 0 : index
    %c0_29 = arith.constant 0 : index
    %37 = vector.load %arg12[%c0_28, %c0_29] : memref<256x1xf32, #tpu.memory_space<vmem>>, vector<256x1xf32>
    %38 = vector.broadcast %37 : vector<256x1xf32> to vector<256x512xf32>
    %39 = arith.addf %36, %38 : vector<256x512xf32>
    %cst_30 = arith.constant 0.000000e+00 : f32
    %40 = vector.broadcast %cst_30 : f32 to vector<256x512xf32>
    %41 = arith.maximumf %39, %40 : vector<256x512xf32>
    %42 = arith.truncf %41 : vector<256x512xf32> to vector<256x512xbf16>
    %c0_31 = arith.constant 0 : index
    %c0_32 = arith.constant 0 : index
    %c0_33 = arith.constant 0 : index
    %43 = vector.load %arg13[%c0_31, %c0_32, %c0_33] : memref<1x256x512xbf16, #tpu.memory_space<vmem>>, vector<1x256x512xbf16>
    %44 = vector.shape_cast %43 : vector<1x256x512xbf16> to vector<256x512xbf16>
    %45 = vector.shape_cast %42 : vector<256x512xbf16> to vector<1x256x512xbf16>
    tpu.vector_store %arg13[%c0_31, %c0_32, %c0_33], %45 {strides = array<i32>} : memref<1x256x512xbf16, #tpu.memory_space<vmem>>, vector<1x256x512xbf16>,
    return
  }
  func.func @transform_0(%arg0: i32, %arg1: i32) -> (i32, i32, i32) {
    %c0_i32 = arith.constant 0 : i32
    %c0_i32_0 = arith.constant 0 : i32
    return %arg0, %arg1, %c0_i32 : i32, i32, i32
  }
  func.func @transform_1(%arg0: i32, %arg1: i32) -> (i32, i32) {
    %c0_i32 = arith.constant 0 : i32
    %c0_i32_0 = arith.constant 0 : i32
    %c0_i32_1 = arith.constant 0 : i32
    return %c0_i32, %c0_i32_0 : i32, i32
  }
  func.func @transform_2(%arg0: i32, %arg1: i32) -> (i32, i32) {
    %c0_i32 = arith.constant 0 : i32
    %c0_i32_0 = arith.constant 0 : i32
    %c0_i32_1 = arith.constant 0 : i32
    return %c0_i32, %c0_i32_0 : i32, i32
  }
  func.func @transform_3(%arg0: i32, %arg1: i32) -> (i32, i32) {
    %c0_i32 = arith.constant 0 : i32
    %c0_i32_0 = arith.constant 0 : i32
    %c0_i32_1 = arith.constant 0 : i32
    return %c0_i32, %c0_i32_0 : i32, i32
  }
  func.func @transform_4(%arg0: i32, %arg1: i32) -> (i32, i32) {
    %c0_i32 = arith.constant 0 : i32
    %c0_i32_0 = arith.constant 0 : i32
    %c0_i32_1 = arith.constant 0 : i32
    return %c0_i32, %c0_i32_0 : i32, i32
  }
  func.func @transform_5(%arg0: i32, %arg1: i32) -> (i32, i32) {
    %c0_i32 = arith.constant 0 : i32
    %c0_i32_0 = arith.constant 0 : i32
    %c0_i32_1 = arith.constant 0 : i32
    return %c0_i32, %c0_i32_0 : i32, i32
  }
  func.func @transform_6(%arg0: i32, %arg1: i32) -> (i32, i32) {
    %c0_i32 = arith.constant 0 : i32
    %c0_i32_0 = arith.constant 0 : i32
    %c0_i32_1 = arith.constant 0 : i32
    return %c0_i32, %c0_i32_0 : i32, i32
  }
  func.func @transform_7(%arg0: i32, %arg1: i32) -> (i32, i32) {
    %c0_i32 = arith.constant 0 : i32
    %c0_i32_0 = arith.constant 0 : i32
    %c0_i32_1 = arith.constant 0 : i32
    return %c0_i32, %c0_i32_0 : i32, i32
  }
  func.func @transform_8(%arg0: i32, %arg1: i32) -> (i32, i32) {
    %c0_i32 = arith.constant 0 : i32
    %c0_i32_0 = arith.constant 0 : i32
    %c0_i32_1 = arith.constant 0 : i32
    return %c0_i32, %c0_i32_0 : i32, i32
  }
  func.func @transform_9(%arg0: i32, %arg1: i32) -> (i32, i32) {
    %c0_i32 = arith.constant 0 : i32
    %c0_i32_0 = arith.constant 0 : i32
    %c0_i32_1 = arith.constant 0 : i32
    return %c0_i32, %c0_i32_0 : i32, i32
  }
  func.func @transform_10(%arg0: i32, %arg1: i32) -> (i32, i32) {
    %c0_i32 = arith.constant 0 : i32
    %c0_i32_0 = arith.constant 0 : i32
    %c0_i32_1 = arith.constant 0 : i32
    return %c0_i32, %c0_i32_0 : i32, i32
  }
  func.func @transform_11(%arg0: i32, %arg1: i32) -> (i32, i32, i32) {
    %c0_i32 = arith.constant 0 : i32
    %c0_i32_0 = arith.constant 0 : i32
    return %arg0, %c0_i32, %arg1 : i32, i32, i32
  }
}

</mosaic_0001>

<bundles_post_ra>
// kernel: pointnet_forward.1
= control target key start
LH: loop header
LB: loop body
LE: loop exit
PB: predicated region body
PF: predicated region fallthrough
CT: control target
= control target key end

     0   :  { %s5412_s0 = inlined_call_operand.vmem [shape: f32[2,1024,3], index: 0, kind: input, shape index: {}]   ;;  %s5413_s1 = inlined_call_operand.vmem [shape: f32[3,64], index: 1, kind: input, shape index: {}]   ;;  %s5414_s2 = inlined_call_operand.vmem [shape: f32[1,64], index: 2, kind: input, shape index: {}]   ;;  %s5415_s3 = inlined_call_operand.vmem [shape: bf16[64,64], index: 3, kind: input, shape index: {}]   ;;  %s5416_s4 = inlined_call_operand.vmem [shape: f32[64,1], index: 4, kind: input, shape index: {}]   ;;  %s5417_s5 = inlined_call_operand.vmem [shape: bf16[64,64], index: 5, kind: input, shape index: {}]   ;;  %s5418_s6 = inlined_call_operand.vmem [shape: f32[64,1], index: 6, kind: input, shape index: {}]   ;;  %s5419_s7 = inlined_call_operand.vmem [shape: bf16[128,64], index: 7, kind: input, shape index: {}]   ;;  %s5420_s8 = inlined_call_operand.vmem [shape: f32[128,1], index: 8, kind: input, shape index: {}]   ;;  %s5421_s9 = inlined_call_operand.vmem [shape: bf16[256,128], index: 9, kind: input, shape index: {}]   ;;  %s5422_s10 = inlined_call_operand.vmem [shape: f32[256,1], index: 10, kind: input, shape index: {}]   ;;  %s5423_s11 = inlined_call_operand.hbm [shape: bf16[2,256,1024], index: 11, kind: output, shape index: {}]  }
   0x1   :  { %5453 = sst [smem:[#allocation21_spill]] %s5412_s0 }
   0x2   :  { %5454 = sst [smem:[#allocation22_spill]] %s5413_s1 }
   0x3   :  { %16 = vsyncpa [#allocation3], 0 }
   0x4   :  { %18 = vsyncpa [#allocation3 + $0x1], 0  ;;  %s3794_s17 = smov 0   ;;  %s3796_s18 = smov 0  }
   0x5   :  { %s3798_s19 = smov 0   ;;  %s3800_s20 = smov 0  }
   0x6   :  { %s3802_s21 = smov 0   ;;  %s3804_s22 = smov 0  }
   0x7   :  { %s3806_s23 = smov 0   ;;  %s3808_s24 = smov 0  }
   0x8 LB: > { %5455 = sst [smem:[#allocation5_spill]] %s3724_s23  ;;  %s3105_s25 = sadd.s32 4294967295, %s3728_s24   ;;  %s3728_s24 = sphi %s3808_s24, %s24_s24   ;;  %s3724_s23 = sphi %s3806_s23, %s5496_s23   ;;  %s3720_s22 = sphi %s3804_s22, %s5501_s22   ;;  %s3716_s21 = sphi %s3802_s21, %s5494_s21   ;;  %s3712_s20 = sphi %s3800_s20, %s5500_s20   ;;  %s3708_s19 = sphi %s3798_s19, %s5499_s19   ;;  %s3704_s18 = sphi %s3796_s18, %s5498_s18   ;;  %s3700_s17 = sphi %s3794_s17, %s5497_s17  }
   0x9   : > { %s3106_s26 = sadd.s32 4294967294, %s3728_s24   ;;  %s33_s27 = sadd.s32 1, %s3720_s22 }
   0xa   : > { %p34_p0 = scmp.ge.s32.totalorder %s33_s27, 2  ;;  %s36_s28 = sadd.s32 1, %s3724_s23 }
   0xb   : > { %p293_p1 = scmp.ne.s32.totalorder %s3708_s19, %s3704_s18  ;;  %p294_p2 = scmp.eq.s32.totalorder %s3105_s25, 3 }
   0xc   : > { %s5503_s27 = smov (%p34_p0, %s33_s27), 0  ;;  %s5505_s28 = smov (!%p34_p0, %s36_s28), %s3724_s23 }
   0xd   : > { %5456 = sst [smem:[#allocation6_spill]] %s5503_s27  ;;  %s279_s29 = ssub.s32 %s3720_s22, %s5503_s27 }
   0xe   : > { %p3845_p3 = por %p294_p2, %p293_p1  ;;  %p38_p4 = scmp.ge.s32.totalorder %s5505_s28, 2 }
   0xf   : > { %p299_p5 = scmp.ne.s32.totalorder %s3704_s18, %s3700_s17  ;;  %p300_p6 = scmp.eq.s32.totalorder %s3106_s26, 3 }
  0x10   : > { %p3109_p7 = scmp.ge.s32.totalorder %s3728_s24, 1  ;;  %s5507_s28 = smov (%p38_p4, %s5505_s28), 0 }
  0x11   : > { %5458 = sst [smem:[#allocation7_spill]] %s5507_s28  ;;  %p3854_p8 = por %p300_p6, %p299_p5 }
  0x12   : > { %p361_p9 = scmp.lt.s32.totalorder %s3728_s24, 5  ;;  %s278_s13 = ssub.s32 %s3724_s23, %s5507_s28 }
  0x13   : > { %s283_s14 = sadd.s32 1, %s3708_s19  ;;  %s280_s15 = sor.u32 %s279_s29, %s278_s13 }
  0x14   : > { %p362_p10 = pnand %p3109_p7, %p361_p9  ;;  %p281_p11 = scmp.eq.s32.totalorder %s280_s15, 0 }
  0x16   : > { %s3863_s16 = scalar_select %p281_p11, %s3708_s19, %s283_s14  }
  0x17   : > { %365 = sbr.rel (%p362_p10) target bundleno = 1886 (0x75e), region = 64 }
  0x1c   : > { %s5460_s1 = sld [smem:[#allocation22_spill]]  ;;  %vm679_vm0 = vcmask 1042432   ;;  %s3111_s26 = sshll.u32 %s3712_s20, 6  ;;  %vm486_vm1 = vcmask 23552   ;;  %v3975_v52 = vld [vmem:[%s5414_s2] ss:$0 sm:$0xff] }
  0x1d   : > { %p406_p12 = scmp.lt.s32.totalorder %s3716_s21, 1  ;;  %p408_p13 = scmp.lt.s32.totalorder %s3111_s26, 127  ;;  %vm1176_vm2 = vcmask 523264  }
  0x1e   : > { %s5461_s0 = sld [smem:[#allocation21_spill]] }
  0x1f   : > { %s407_s28 = scalar_select %p406_p12, %s3716_s21, 1 }
  0x20   : > { %s5509_s26 = smov (!%p408_p13, %s3111_s26), 127 }
  0x21   : > { %s3112_s29 = sshll.u32 %s407_s28, 7 }
  0x22   : > { %v481_v0 = vld [vmem:[%s5460_s1] sm:$0x7]  ;;  %s411_s13 = sadd.s32 %s3112_s29, %s5509_s26  ;;  %s402_s26 = sand.u32 1, %s3704_s18  }
  0x23   : > { %3114 = vmatpush.msk.msra.mxu0 %vm679_vm0, %v481_v0  ;;  %3409 = vmatpush.msk.msra.mxu1 %vm679_vm0, %v481_v0  ;;  %s3113_s14 = sshll.u32 %s411_s13, 3  ;;  %s3110_s29 = sshll.u32 %s402_s26, 9 }
  0x24   : > { %3410 = vmatpush.msk.msra.mxu2 %vm679_vm0, %v481_v0  ;;  %s3874_s27 = scalar_lea.vmem %s5461_s0, %s3113_s14  ;;  %s5067_s13 = scalar_lea.vmem [#allocation2], %s3110_s29 }
  0x25   : > { %v417_v1 = vld [vmem:[%s3874_s27] sm:$0xff]  ;;  %v418_v2 = vld [vmem:[%s3874_s27 + $0x8] sm:$0xff]  ;;  %v419_v3 = vld [vmem:[%s3874_s27 + $0x10] sm:$0xff]  ;;  %s3373_s14 = sshll.u32 %s3716_s21, 8  ;;  %s3020_s21 = sshll.u32 %s5067_s13, 4  ;;  %s3021_s21 = int_to_ptr.vmem [resolvable:$true] %s3020_s21 }
  0x26   : > { %3115 = vmatmul.msk.f32.vlgmr.msra.gmra.mxu0 %vm486_vm1, %v417_v1  ;;  %v420_v4 = vld [vmem:[%s3874_s27 + $0x18] sm:$0xff]  ;;  %v421_v5 = vld [vmem:[%s3874_s27 + $0x20] sm:$0xff]  ;;  %v422_v6 = vld [vmem:[%s3874_s27 + $0x28] sm:$0xff]  ;;  %s3006_s29 = scalar_lea.sflag [#allocation3], %s402_s26  ;;  %s3654_s0 = scalar_lea.hbm %s5423_s11, 2048 }
  0x27   : > { %v423_v7 = vld [vmem:[%s3874_s27 + $0x30] sm:$0xff]  ;;  %v424_v8 = vld [vmem:[%s3874_s27 + $0x38] sm:$0xff]  ;;  %v425_v9 = vld [vmem:[%s3874_s27 + $0x40] sm:$0xff] }
  0x28   : > { %v426_v10 = vld [vmem:[%s3874_s27 + $0x48] sm:$0xff]  ;;  %v427_v11 = vld [vmem:[%s3874_s27 + $0x50] sm:$0xff]  ;;  %v428_v12 = vld [vmem:[%s3874_s27 + $0x58] sm:$0xff] }
  0x29   : > { %v429_v13 = vld [vmem:[%s3874_s27 + $0x60] sm:$0xff]  ;;  %v430_v14 = vld [vmem:[%s3874_s27 + $0x68] sm:$0xff]  ;;  %v431_v15 = vld [vmem:[%s3874_s27 + $0x70] sm:$0xff] }
  0x2a   : > { %v432_v16 = vld [vmem:[%s3874_s27 + $0x78] sm:$0xff]  ;;  %v433_v18 = vld [vmem:[%s3874_s27 + $0x80] sm:$0xff]  ;;  %v434_v20 = vld [vmem:[%s3874_s27 + $0x88] sm:$0xff] }
  0x2b   : > { %v435_v22 = vld [vmem:[%s3874_s27 + $0x90] sm:$0xff]  ;;  %v436_v24 = vld [vmem:[%s3874_s27 + $0x98] sm:$0xff]  ;;  %v437_v26 = vld [vmem:[%s3874_s27 + $0xa0] sm:$0xff] }
  0x2c   : > { %v438_v28 = vld [vmem:[%s3874_s27 + $0xa8] sm:$0xff]  ;;  %v439_v30 = vld [vmem:[%s3874_s27 + $0xb0] sm:$0xff]  ;;  %v440_v32 = vld [vmem:[%s3874_s27 + $0xb8] sm:$0xff] }
  0x2d   : > { %v441_v34 = vld [vmem:[%s3874_s27 + $0xc0] sm:$0xff]  ;;  %v442_v36 = vld [vmem:[%s3874_s27 + $0xc8] sm:$0xff]  ;;  %v443_v38 = vld [vmem:[%s3874_s27 + $0xd0] sm:$0xff] }
  0x2e   : > { %3116 = vmatmul.msk.f32.gmra.mxu0 %vm486_vm1, %v418_v2  ;;  %v444_v40 = vld [vmem:[%s3874_s27 + $0xd8] sm:$0xff]  ;;  %v445_v42 = vld [vmem:[%s3874_s27 + $0xe0] sm:$0xff]  ;;  %v446_v44 = vld [vmem:[%s3874_s27 + $0xe8] sm:$0xff] }
  0x2f   : > { %v466_v45 = vld [vmem:[%s3874_s27 + $0x188] sm:$0xff]  ;;  %v447_v47 = vld [vmem:[%s3874_s27 + $0xf0] sm:$0xff]  ;;  %v448_v50 = vld [vmem:[%s3874_s27 + $0xf8] sm:$0xff] }
  0x30   : > { %3164 = vmatmul.msk.f32.vlgmr.msra.gmra.mxu1 %vm486_vm1, %v466_v45  ;;  %v467_v48 = vld [vmem:[%s3874_s27 + $0x190] sm:$0xff]  ;;  %v468_v51 = vld [vmem:[%s3874_s27 + $0x198] sm:$0xff]  ;;  %v449_v55 = vld [vmem:[%s3874_s27 + $0x100] sm:$0xff] }
  0x31   : > { %v469_v57 = vld [vmem:[%s3874_s27 + $0x1a0] sm:$0xff]  ;;  %v450_v63 = vld [vmem:[%s3874_s27 + $0x108] sm:$0xff]  ;;  %v475_v45 = vld [vmem:[%s3874_s27 + $0x1d0] sm:$0xff] }
  0x32   : > { %v470_v1 = vld [vmem:[%s3874_s27 + $0x1a8] sm:$0xff]  ;;  %3173 = vmatmul.msk.f32.vlgmr.msra.gmra.mxu2 %vm486_vm1, %v475_v45 }
  0x33   : > { %v1113_v45 = vld [vmem:[%s5416_s4 + $0x28] sm:$0xff] }
  0x36   : > { %3117 = vmatmul.msk.f32.gmra.mxu0 %vm486_vm1, %v419_v3 }
  0x38   : > { %3165 = vmatmul.msk.f32.gmra.mxu1 %vm486_vm1, %v467_v48 }
  0x3e   : > { %3118 = vmatmul.msk.f32.gmra.mxu0 %vm486_vm1, %v420_v4 }
  0x40   : > { %3166 = vmatmul.msk.f32.gmra.mxu1 %vm486_vm1, %v468_v51 }
  0x46   : > { %3119 = vmatmul.msk.f32.gmra.mxu0 %vm486_vm1, %v421_v5 }
  0x48   : > { %3167 = vmatmul.msk.f32.gmra.mxu1 %vm486_vm1, %v469_v57 }
  0x4e   : > { %3120 = vmatmul.msk.f32.gmra.mxu0 %vm486_vm1, %v422_v6 }
  0x50   : > { %3168 = vmatmul.msk.f32.gmra.mxu1 %vm486_vm1, %v470_v1  ;;  %v457_v1 = vld [vmem:[%s3874_s27 + $0x140] sm:$0xff] }
  0x56   : > { %3121 = vmatmul.msk.f32.gmra.mxu0 %vm486_vm1, %v423_v7  ;;  %v451_v7 = vld [vmem:[%s3874_s27 + $0x110] sm:$0xff] }
  0x5e   : > { %3122 = vmatmul.msk.f32.gmra.mxu0 %vm486_vm1, %v424_v8 }
  0x66   : > { %3123 = vmatmul.msk.f32.gmra.mxu0 %vm486_vm1, %v425_v9  ;;  %v471_v9 = vld [vmem:[%s3874_s27 + $0x1b0] sm:$0xff] }
  0x67   : > { %3169 = vmatmul.msk.f32.gmra.mxu1 %vm486_vm1, %v471_v9 }
  0x6e   : > { %3124 = vmatmul.msk.f32.gmra.mxu0 %vm486_vm1, %v426_v10 }
  0x76   : > { %3125 = vmatmul.msk.f32.gmra.mxu0 %vm486_vm1, %v427_v11 }
  0x7e   : > { %3126 = vmatmul.msk.f32.gmra.mxu0 %vm486_vm1, %v428_v12 }
  0x86   : > { %3127 = vmatmul.msk.f32.gmra.mxu0 %vm486_vm1, %v429_v13 }
  0x8e   : > { %3128 = vmatmul.msk.f32.gmra.mxu0 %vm486_vm1, %v430_v14 }
  0x96   : > { %3129 = vmatmul.msk.f32.gmra.mxu0 %vm486_vm1, %v431_v15  ;;  %v452_v15 = vld [vmem:[%s3874_s27 + $0x118] sm:$0xff] }
  0x9e   : > { %3130 = vmatmul.msk.f32.gmra.mxu0 %vm486_vm1, %v432_v16 }
  0xa3   : > { %v700_v17 = vpop.f32.mrf.mxu0 }
  0xa4   : > { %v701_v53 = vadd.f32 %v3975_v52, %v700_v17  ;;  %v472_v17 = vld [vmem:[%s3874_s27 + $0x1b8] sm:$0xff] }
  0xa5   : > { %3170 = vmatmul.msk.f32.gmra.mxu1 %vm486_vm1, %v472_v17  ;;  %v459_v17 = vld [vmem:[%s3874_s27 + $0x150] sm:$0xff] }
  0xa6   : > { %3131 = vmatmul.msk.f32.gmra.mxu0 %vm486_vm1, %v433_v18  ;;  %v892_v58 = vmax.f32 %v701_v53, 0.0 }
  0xab   : > { %v703_v19 = vpop.f32.mrf.mxu0 }
  0xac   : > { %v704_v61 = vadd.f32 %v3975_v52, %v703_v19 }
  0xae   : > { %3132 = vmatmul.msk.f32.gmra.mxu0 %vm486_vm1, %v434_v20  ;;  %v893_v2 = vmax.f32 %v704_v61, 0.0 }
  0xb3   : > { %v3912_v21 = vpop.f32.mrf.mxu0 }
  0xb4   : > { %v707_v5 = vadd.f32 %v3975_v52, %v3912_v21 }
  0xb6   : > { %3133 = vmatmul.msk.f32.gmra.mxu0 %vm486_vm1, %v435_v22  ;;  %v894_v10 = vmax.f32 %v707_v5, 0.0  ;;  %v478_v5 = vld [vmem:[%s3874_s27 + $0x1e8] sm:$0xff] }
  0xbb   : > { %v3916_v23 = vpop.f32.mrf.mxu0 }
  0xbc   : > { %v710_v13 = vadd.f32 %v3975_v52, %v3916_v23  ;;  %v453_v23 = vld [vmem:[%s3874_s27 + $0x120] sm:$0xff] }
  0xbe   : > { %3134 = vmatmul.msk.f32.gmra.mxu0 %vm486_vm1, %v436_v24  ;;  %v895_v18 = vmax.f32 %v710_v13, 0.0  ;;  %v1114_v13 = vld [vmem:[%s5416_s4 + $0x30] sm:$0xff] }
  0xc3   : > { %v3920_v25 = vpop.f32.mrf.mxu0 }
  0xc4   : > { %v713_v21 = vadd.f32 %v3975_v52, %v3920_v25 }
  0xc6   : > { %3135 = vmatmul.msk.f32.gmra.mxu0 %vm486_vm1, %v437_v26  ;;  %v473_v26 = vld [vmem:[%s3874_s27 + $0x1c0] sm:$0xff] }
  0xc7   : > { %3171 = vmatmul.msk.f32.gmra.mxu1 %vm486_vm1, %v473_v26  ;;  %v460_v26 = vld [vmem:[%s3874_s27 + $0x158] sm:$0xff] }
  0xcb   : > { %v3924_v27 = vpop.f32.mrf.mxu0 }
  0xce   : > { %3136 = vmatmul.msk.f32.gmra.mxu0 %vm486_vm1, %v438_v28  ;;  %v896_v28 = vmax.f32 %v713_v21, 0.0  ;;  %v480_v21 = vld [vmem:[%s3874_s27 + $0x1f8] sm:$0xff] }
  0xd3   : > { %v3928_v29 = vpop.f32.mrf.mxu0 }
  0xd6   : > { %3137 = vmatmul.msk.f32.gmra.mxu0 %vm486_vm1, %v439_v30 }
  0xdb   : > { %v3932_v31 = vpop.f32.mrf.mxu0 }
  0xdc   : > { %v722_v57 = vadd.f32 %v3975_v52, %v3932_v31 }
  0xde   : > { %3138 = vmatmul.msk.f32.gmra.mxu0 %vm486_vm1, %v440_v32 }
  0xe3   : > { %v3936_v33 = vpop.f32.mrf.mxu0 }
  0xe6   : > { %3139 = vmatmul.msk.f32.gmra.mxu0 %vm486_vm1, %v441_v34  ;;  %v716_v34 = vadd.f32 %v3975_v52, %v3924_v27  ;;  %v719_v27 = vadd.f32 %v3975_v52, %v3928_v29 }
  0xe8   : > { %v898_v53 = vmax.f32 %v719_v27, 0.0 }
  0xeb   : > { %v3940_v35 = vpop.f32.mrf.mxu0 }
  0xee   : > { %3140 = vmatmul.msk.f32.gmra.mxu0 %vm486_vm1, %v442_v36  ;;  %v454_v36 = vld [vmem:[%s3874_s27 + $0x128] sm:$0xff] }
  0xf3   : > { %v3944_v37 = vpop.f32.mrf.mxu0 }
  0xf6   : > { %3141 = vmatmul.msk.f32.gmra.mxu0 %vm486_vm1, %v443_v38 }
  0xfb   : > { %v3948_v39 = vpop.f32.mrf.mxu0 }
  0xfe   : > { %3142 = vmatmul.msk.f32.gmra.mxu0 %vm486_vm1, %v444_v40  ;;  %v474_v40 = vld [vmem:[%s3874_s27 + $0x1c8] sm:$0xff] }
  0xff   : > { %3172 = vmatmul.msk.f32.gmra.mxu1 %vm486_vm1, %v474_v40 }
 0x103   : > { %v3952_v41 = vpop.f32.mrf.mxu0 }
 0x106   : > { %3143 = vmatmul.msk.f32.gmra.mxu0 %vm486_vm1, %v445_v42  ;;  %v897_v42 = vmax.f32 %v716_v34, 0.0  ;;  %v1112_v34 = vld [vmem:[%s5416_s4 + $0x20] sm:$0xff] }
 0x10b   : > { %v3956_v43 = vpop.f32.mrf.mxu0 }
 0x10c   : > { %v740_v27 = vadd.f32 %v3975_v52, %v3956_v43 }
 0x10e   : > { %3144 = vmatmul.msk.f32.gmra.mxu0 %vm486_vm1, %v446_v44 }
 0x113   : > { %v3962_v46 = vpop.f32.mrf.mxu0 }
 0x116   : > { %3145 = vmatmul.msk.f32.gmra.mxu0 %vm486_vm1, %v447_v47 }
 0x11b   : > { %v3968_v49 = vpop.f32.mrf.mxu0 }
 0x11e   : > { %3146 = vmatmul.msk.f32.gmra.mxu0 %vm486_vm1, %v448_v50  ;;  %v455_v50 = vld [vmem:[%s3874_s27 + $0x130] sm:$0xff] }
 0x123   : > { %v748_v54 = vpop.f32.mrf.mxu0 }
 0x124   : > { %v749_v56 = vadd.f32 %v3975_v52, %v748_v54 }
 0x126   : > { %3147 = vmatmul.msk.f32.gmra.mxu0 %vm486_vm1, %v449_v55  ;;  %v908_v59 = vmax.f32 %v749_v56, 0.0  ;;  %v476_v55 = vld [vmem:[%s3874_s27 + $0x1d8] sm:$0xff] }
 0x127   : > { %3174 = vmatmul.msk.f32.gmra.mxu2 %vm486_vm1, %v476_v55 }
 0x128   : > { %v3486_v60 = vpack.i.bf16 %v908_v59, %v892_v58  ;;  %v456_v58 = vld [vmem:[%s3874_s27 + $0x138] sm:$0xff] }
 0x12a   : > { %3487 = vxpose.xlu0.b32.start [1/16] (narrow) %v3486_v60, 64  ;;  %v899_v60 = vmax.f32 %v722_v57, 0.0  ;;  %v463_v57 = vld [vmem:[%s3874_s27 + $0x170] sm:$0xff] }
 0x12b   : > { %v751_v62 = vpop.f32.mrf.mxu0 }
 0x12c   : > { %v752_v0 = vadd.f32 %v3975_v52, %v751_v62  ;;  %v477_v62 = vld [vmem:[%s3874_s27 + $0x1e0] sm:$0xff] }
 0x12e   : > { %v909_v3 = vmax.f32 %v752_v0, 0.0  ;;  %3148 = vmatmul.msk.f32.gmra.mxu0 %vm486_vm1, %v450_v63  ;;  %v725_v0 = vadd.f32 %v3975_v52, %v3936_v33  ;;  %v458_v33 = vld [vmem:[%s3874_s27 + $0x148] sm:$0xff] }
 0x12f   : > { %3175 = vmatmul.msk.f32.gmra.mxu2 %vm486_vm1, %v477_v62  ;;  %v746_v62 = vadd.f32 %v3975_v52, %v3968_v49  ;;  %v1109_v49 = vld [vmem:[%s5416_s4 + $0x8] sm:$0xff] }
 0x130   : > { %v3488_v4 = vpack.i.bf16 %v909_v3, %v893_v2  ;;  %v900_v3 = vmax.f32 %v725_v0, 0.0 }
 0x132   : > { %3489 = vxpose.xlu0.b32.cont [2/16] (narrow) %v3488_v4, 64 }
 0x133   : > { %v754_v6 = vpop.f32.mrf.mxu0 }
 0x134   : > { %v755_v8 = vadd.f32 %v3975_v52, %v754_v6 }
 0x136   : > { %v910_v11 = vmax.f32 %v755_v8, 0.0  ;;  %3149 = vmatmul.msk.f32.gmra.mxu0 %vm486_vm1, %v451_v7  ;;  %v728_v7 = vadd.f32 %v3975_v52, %v3940_v35 }
 0x137   : > { %3176 = vmatmul.msk.f32.gmra.mxu2 %vm486_vm1, %v478_v5  ;;  %v465_v5 = vld [vmem:[%s3874_s27 + $0x180] sm:$0xff] }
 0x138   : > { %v3490_v12 = vpack.i.bf16 %v910_v11, %v894_v10  ;;  %v901_v10 = vmax.f32 %v728_v7, 0.0  ;;  %v1367_v7 = vld [vmem:[%s5418_s6 + $0x30] sm:$0xff] }
 0x13a   : > { %3491 = vxpose.xlu0.b32.cont [3/16] (narrow) %v3490_v12, 64  ;;  %v479_v12 = vld [vmem:[%s3874_s27 + $0x1f0] sm:$0xff] }
 0x13b   : > { %v757_v14 = vpop.f32.mrf.mxu0 }
 0x13c   : > { %v758_v16 = vadd.f32 %v3975_v52, %v757_v14  ;;  %v3730_v14 = vmov 0  }
 0x13d   : > { %3630 = vset.pattern.permute.xlu2 %v3730_v14 }
 0x13e   : > { %v911_v19 = vmax.f32 %v758_v16, 0.0  ;;  %3150 = vmatmul.msk.f32.gmra.mxu0 %vm486_vm1, %v452_v15  ;;  %1148 = vperm.xlu2 %3630, %v1114_v13   ;;  %v731_v15 = vadd.f32 %v3975_v52, %v3944_v37  ;;  %v734_v37 = vadd.f32 %v3975_v52, %v3948_v39 }
 0x13f   : > { %3177 = vmatmul.msk.f32.gmra.mxu2 %vm486_vm1, %v479_v12  ;;  %v1366_v12 = vld [vmem:[%s5418_s6 + $0x28] sm:$0xff] }
 0x140   : > { %v3492_v20 = vpack.i.bf16 %v911_v19, %v895_v18  ;;  %v902_v19 = vmax.f32 %v731_v15, 0.0  ;;  %v1363_v15 = vld [vmem:[%s5418_s6 + $0x10] sm:$0xff] }
 0x142   : > { %3493 = vxpose.xlu0.b32.cont [4/16] (narrow) %v3492_v20, 64 }
 0x143   : > { %v760_v22 = vpop.f32.mrf.mxu0 }
 0x144   : > { %v761_v24 = vadd.f32 %v3975_v52, %v760_v22  ;;  %v1115_v22 = vld [vmem:[%s5416_s4 + $0x38] sm:$0xff] }
 0x146   : > { %v912_v30 = vmax.f32 %v761_v24, 0.0  ;;  %3151 = vmatmul.msk.f32.gmra.mxu0 %vm486_vm1, %v453_v23  ;;  %1153 = vperm.xlu2 %3630, %v1115_v22  }
 0x147   : > { %3178 = vmatmul.msk.f32.gmra.mxu2 %vm486_vm1, %v480_v21  ;;  %v1361_v21 = vld [vmem:[%s5418_s6] sm:$0xff] }
 0x148   : > { %v3494_v32 = vpack.i.bf16 %v912_v30, %v896_v28  ;;  %v903_v30 = vmax.f32 %v734_v37, 0.0  ;;  %v1362_v37 = vld [vmem:[%s5418_s6 + $0x8] sm:$0xff] }
 0x14a   : > { %3495 = vxpose.xlu0.b32.cont [5/16] (narrow) %v3494_v32, 64 }
 0x14b   : > { %v763_v25 = vpop.f32.mrf.mxu0 }
 0x14c   : > { %v764_v38 = vadd.f32 %v3975_v52, %v763_v25 }
 0x14e   : > { %v913_v44 = vmax.f32 %v764_v38, 0.0  ;;  %3152 = vmatmul.msk.f32.gmra.mxu0 %vm486_vm1, %v454_v36  ;;  %1138 = vperm.xlu2 %3630, %v1112_v34   ;;  %v737_v36 = vadd.f32 %v3975_v52, %v3952_v41  ;;  %v461_v38 = vld [vmem:[%s3874_s27 + $0x160] sm:$0xff]  ;;  %v1634_v34 = vld [vmem:[%s5420_s8 + $0x68] sm:$0xff] }
 0x150   : > { %v3496_v47 = vpack.i.bf16 %v913_v44, %v897_v42  ;;  %v904_v42 = vmax.f32 %v737_v36, 0.0 }
 0x152   : > { %3497 = vxpose.xlu0.b32.cont [6/16] (narrow) %v3496_v47, 64 }
 0x153   : > { %v766_v48 = vpop.f32.mrf.mxu0 }
 0x154   : > { %v767_v51 = vadd.f32 %v3975_v52, %v766_v48  ;;  %v462_v48 = vld [vmem:[%s3874_s27 + $0x168] sm:$0xff] }
 0x156   : > { %v914_v54 = vmax.f32 %v767_v51, 0.0  ;;  %3153 = vmatmul.msk.f32.gmra.mxu0 %vm486_vm1, %v455_v50  ;;  %1143 = vperm.xlu2 %3630, %v1113_v45   ;;  %v905_v51 = vmax.f32 %v740_v27, 0.0 }
 0x158   : > { %v3498_v56 = vpack.i.bf16 %v914_v54, %v898_v53  ;;  %v1110_v54 = vld [vmem:[%s5416_s4 + $0x10] sm:$0xff] }
 0x15a   : > { %3499 = vxpose.xlu0.b32.cont [7/16] (narrow) %v3498_v56, 64  ;;  %v743_v56 = vadd.f32 %v3975_v52, %v3962_v46 }
 0x15b   : > { %v769_v29 = vpop.f32.mrf.mxu0 }
 0x15c   : > { %v770_v59 = vadd.f32 %v3975_v52, %v769_v29 }
 0x15e   : > { %v915_v61 = vmax.f32 %v770_v59, 0.0  ;;  %3154 = vmatmul.msk.f32.gmra.mxu0 %vm486_vm1, %v456_v58  ;;  %1128 = vperm.xlu2 %3630, %v1110_v54   ;;  %v906_v58 = vmax.f32 %v743_v56, 0.0  ;;  %v1629_v54 = vld [vmem:[%s5420_s8 + $0x40] sm:$0xff] }
 0x160   : > { %v3500_v63 = vpack.i.bf16 %v915_v61, %v899_v60  ;;  %v1111_v60 = vld [vmem:[%s5416_s4 + $0x18] sm:$0xff] }
 0x162   : > { %3501 = vxpose.xlu0.b32.cont [8/16] (narrow) %v3500_v63, 64  ;;  %v464_v63 = vld [vmem:[%s3874_s27 + $0x178] sm:$0xff]  ;;  %s3372_s27 = sshll.u32 %s3712_s20, 2 }
 0x163   : > { %v772_v31 = vpop.f32.mrf.mxu0  ;;  %s3017_s15 = sadd.s32 %s3373_s14, %s3372_s27 }
 0x164   : > { %v773_v2 = vadd.f32 %v3975_v52, %v772_v31  ;;  %v907_v31 = vmax.f32 %v746_v62, 0.0  ;;  %v1627_v62 = vld [vmem:[%s5420_s8 + $0x30] sm:$0xff]  ;;  %s3374_s23 = sshll.u32 %s3017_s15, 2 }
 0x165   : > { %s3019_s20 = scalar_lea.hbm %s5423_s11, %s3374_s23 }
 0x166   : > { %v916_v4 = vmax.f32 %v773_v2, 0.0  ;;  %3155 = vmatmul.msk.f32.gmra.mxu0 %vm486_vm1, %v457_v1  ;;  %1133 = vperm.xlu2 %3630, %v1111_v60   ;;  %v1108_v2 = vld [vmem:[%s5416_s4] sm:$0xff]  ;;  %s3022_s25 = sshll.u32 %s3019_s20, 4  ;;  %s3023_s25 = int_to_ptr.hbm [resolvable:$true] %s3022_s25 }
 0x167   : > { %v4202_v60 = vld [vmem:[%s5415_s3] sm:$0xff]  ;;  %s3648_s27 = sshra.s32 %s3023_s25, 4  ;;  %s3649_s27 = int_to_ptr.hbm [resolvable:$true] %s3648_s27 }
 0x168   : > { %v3502_v6 = vpack.i.bf16 %v916_v4, %v900_v3  ;;  %s3650_s14 = scalar_lea.hbm %s3649_s27, 512  ;;  %p3655_p4 = scmp.lt.s32.totalorder %s3649_s27, %s5423_s11 }
 0x169   : > { %p3651_p0 = scmp.ne.s32.totalorder %s3649_s27, %s3650_s14  ;;  %p3656_p5 = scmp.lt.s32.totalorder %s3654_s0, %s3650_s14 }
 0x16a   : > { %3503 = vxpose.xlu0.b32.cont [9/16] (narrow) %v3502_v6, 64 }
 0x16b   : > { %v775_v8 = vpop.f32.mrf.mxu0  ;;  %p3652_p1 = pnand %p3651_p0, %p3845_p3  ;;  %p3657_p6 = por %p3656_p5, %p3655_p4 }
 0x16c   : > { %v776_v9 = vadd.f32 %v3975_v52, %v775_v8 }
 0x16d   : > { %p3653_p2 = pneg %p3652_p1 }
 0x16e   : > { %v917_v11 = vmax.f32 %v776_v9, 0.0  ;;  %3156 = vmatmul.msk.f32.gmra.mxu0 %vm486_vm1, %v458_v33  ;;  %1118 = vperm.xlu2 %3630, %v1108_v2   ;;  %v1368_v33 = vld [vmem:[%s5418_s6 + $0x38] sm:$0xff] }
 0x16f   : > { %p3658_p7 = pnand %p3657_p6, %p3653_p2 }
 0x170   : > { %v3504_v35 = vpack.i.bf16 %v917_v11, %v901_v10  ;;  %v1365_v10 = vld [vmem:[%s5418_s6 + $0x20] sm:$0xff] }
 0x172   : > { %3505 = vxpose.xlu0.b32.cont [10/16] (narrow) %v3504_v35, 64 }
 0x173   : > { %v778_v16 = vpop.f32.mrf.mxu0 }
 0x174   : > { %v779_v18 = vadd.f32 %v3975_v52, %v778_v16 }
 0x176   : > { %v918_v20 = vmax.f32 %v779_v18, 0.0  ;;  %3157 = vmatmul.msk.f32.gmra.mxu0 %vm486_vm1, %v459_v17  ;;  %1123 = vperm.xlu2 %3630, %v1109_v49   ;;  %v1364_v18 = vld [vmem:[%s5418_s6 + $0x18] sm:$0xff] }
 0x178   : > { %v3506_v23 = vpack.i.bf16 %v918_v20, %v902_v19 }
 0x17a   : > { %3507 = vxpose.xlu0.b32.cont [11/16] (narrow) %v3506_v23, 64 }
 0x17b   : > { %v781_v24 = vpop.f32.mrf.mxu0 }
 0x17c   : > { %v782_v28 = vadd.f32 %v3975_v52, %v781_v24 }
 0x17e   : > { %v919_v32 = vmax.f32 %v782_v28, 0.0  ;;  %3158 = vmatmul.msk.f32.gmra.mxu0 %vm486_vm1, %v460_v26  ;;  %1401 = vperm.xlu2 %3630, %v1367_v7   ;;  %v1633_v28 = vld [vmem:[%s5420_s8 + $0x60] sm:$0xff] }
 0x180   : > { %v3508_v25 = vpack.i.bf16 %v919_v32, %v903_v30 }
 0x182   : > { %3509 = vxpose.xlu0.b32.cont [12/16] (narrow) %v3508_v25, 64 }
 0x183   : > { %v784_v39 = vpop.f32.mrf.mxu0 }
 0x184   : > { %v785_v40 = vadd.f32 %v3975_v52, %v784_v39  ;;  %v1631_v39 = vld [vmem:[%s5420_s8 + $0x50] sm:$0xff] }
 0x186   : > { %v920_v44 = vmax.f32 %v785_v40, 0.0  ;;  %3159 = vmatmul.msk.f32.gmra.mxu0 %vm486_vm1, %v461_v38  ;;  %1406 = vperm.xlu2 %3630, %v1368_v33   ;;  %v4220_v33 = vld [vmem:[%s5415_s3 + $0x8] sm:$0xff] }
 0x188   : > { %v3510_v47 = vpack.i.bf16 %v920_v44, %v904_v42  ;;  %v1632_v42 = vld [vmem:[%s5420_s8 + $0x58] sm:$0xff] }
 0x18a   : > { %3511 = vxpose.xlu0.b32.cont [13/16] (narrow) %v3510_v47, 64 }
 0x18b   : > { %v787_v41 = vpop.f32.mrf.mxu0 }
 0x18c   : > { %v788_v50 = vadd.f32 %v3975_v52, %v787_v41 }
 0x18e   : > { %v921_v53 = vmax.f32 %v788_v50, 0.0  ;;  %3160 = vmatmul.msk.f32.gmra.mxu0 %vm486_vm1, %v462_v48  ;;  %1391 = vperm.xlu2 %3630, %v1365_v10  }
 0x190   : > { %v3512_v55 = vpack.i.bf16 %v921_v53, %v905_v51 }
 0x192   : > { %3513 = vxpose.xlu0.b32.cont [14/16] (narrow) %v3512_v55, 64 }
 0x193   : > { %v790_v43 = vpop.f32.mrf.mxu0 }
 0x194   : > { %v791_v29 = vadd.f32 %v3975_v52, %v790_v43 }
 0x196   : > { %v922_v59 = vmax.f32 %v791_v29, 0.0  ;;  %3161 = vmatmul.msk.f32.gmra.mxu0 %vm486_vm1, %v463_v57  ;;  %1396 = vperm.xlu2 %3630, %v1366_v12  }
 0x198   : > { %v3514_v61 = vpack.i.bf16 %v922_v59, %v906_v58  ;;  %v847_v58 = vpop.f32.mrf.mxu1  ;;  %v1630_v59 = vld [vmem:[%s5420_s8 + $0x48] sm:$0xff] }
 0x199   : > { %v848_v10 = vadd.f32 %v3975_v52, %v847_v58 }
 0x19a   : > { %3515 = vxpose.xlu0.b32.cont [15/16] (narrow) %v3514_v61, 64 }
 0x19b   : > { %v793_v46 = vpop.f32.mrf.mxu0 }
 0x19c   : > { %v794_v0 = vadd.f32 %v3975_v52, %v793_v46 }
 0x19e   : > { %v923_v1 = vmax.f32 %v794_v0, 0.0  ;;  %3162 = vmatmul.msk.f32.gmra.mxu0 %vm486_vm1, %v464_v63  ;;  %1381 = vperm.xlu2 %3630, %v1363_v15  }
 0x1a0   : > { %v3516_v3 = vpack.i.bf16 %v923_v1, %v907_v31  ;;  %v850_v46 = vpop.f32.mrf.mxu1 }
 0x1a2   : > { %3517 = vxpose.xlu0.b32.end [16/16] (narrow) %v3516_v3, 64 }
 0x1a3   : > { %v4103_v4 = vpop.f32.mrf.mxu0 }
 0x1a4   : > { %v797_v63 = vadd.f32 %v3975_v52, %v4103_v4 }
 0x1a6   : > { %3163 = vmatmul.msk.f32.gmra.mxu0 %vm486_vm1, %v465_v5  ;;  %1386 = vperm.xlu2 %3630, %v1364_v18   ;;  %v1628_v5 = vld [vmem:[%s5420_s8 + $0x38] sm:$0xff]  ;;  %v924_v49 = vmax.f32 %v797_v63, 0.0 }
 0x1a8   : > { %v853_v15 = vpop.f32.mrf.mxu1 }
 0x1ab   : > { %v4110_v6 = vpop.f32.mrf.mxu0 }
 0x1ac   : > { %v800_v4 = vadd.f32 %v3975_v52, %v4110_v6 }
 0x1ae   : > { %1371 = vperm.xlu2 %3630, %v1361_v21  }
 0x1b3   : > { %v4115_v8 = vpop.f32.mrf.mxu0 }
 0x1b6   : > { %1376 = vperm.xlu2 %3630, %v1362_v37  }
 0x1bb   : > { %v4120_v9 = vpop.f32.mrf.mxu0 }
 0x1be   : > { %1699 = vperm.xlu2 %3630, %v1633_v28  }
 0x1c3   : > { %v4125_v11 = vpop.f32.mrf.mxu0 }
 0x1c6   : > { %1704 = vperm.xlu2 %3630, %v1634_v34   ;;  %v925_v34 = vmax.f32 %v800_v4, 0.0 }
 0x1cb   : > { %v4130_v13 = vpop.f32.mrf.mxu0 }
 0x1ce   : > { %v4132_v35 = vpop.trf.xlu0  ;;  %1689 = vperm.xlu2 %3630, %v1631_v39   ;;  %v1625_v39 = vld [vmem:[%s5420_s8 + $0x20] sm:$0xff] }
 0x1cf   : > { %v3519_v43 = vunpack.i.l.bf16 %v4132_v35 }
 0x1d3   : > { %v4137_v16 = vpop.f32.mrf.mxu0 }
 0x1d6   : > { %v4139_v17 = vpop.trf.xlu0  ;;  %1694 = vperm.xlu2 %3630, %v1632_v42   ;;  %v803_v42 = vadd.f32 %v3975_v52, %v4115_v8  ;;  %v4245_v8 = vld [vmem:[%s5415_s3 + $0x10] sm:$0xff] }
 0x1d7   : > { %v3524_v56 = vunpack.i.l.bf16 %v4139_v17 }
 0x1d9   : > { %v1092_v29 = vpack.c.bf16 %v3524_v56, %v3519_v43 }
 0x1db   : > { %v4144_v19 = vpop.f32.mrf.mxu0 }
 0x1de   : > { %v4146_v20 = vpop.trf.xlu0  ;;  %1679 = vperm.xlu2 %3630, %v1629_v54  }
 0x1df   : > { %v3529_v53 = vunpack.i.l.bf16 %v4146_v20  ;;  %v3532_v28 = vunpack.i.h.bf16 %v4146_v20  ;;  %v3527_v20 = vunpack.i.h.bf16 %v4139_v17  ;;  %v854_v17 = vadd.f32 %v3975_v52, %v853_v15 }
 0x1e3   : > { %v4151_v22 = vpop.f32.mrf.mxu0 }
 0x1e6   : > { %v4153_v23 = vpop.trf.xlu0  ;;  %1684 = vperm.xlu2 %3630, %v1630_v59   ;;  %v1624_v59 = vld [vmem:[%s5420_s8 + $0x18] sm:$0xff] }
 0x1e7   : > { %v3534_v51 = vunpack.i.l.bf16 %v4153_v23  ;;  %v3537_v37 = vunpack.i.h.bf16 %v4153_v23  ;;  %v3522_v23 = vunpack.i.h.bf16 %v4132_v35 }
 0x1e9   : > { %v1096_v55 = vpack.c.bf16 %v3534_v51, %v3529_v53  ;;  %v943_v53 = vmax.f32 %v854_v17, 0.0 }
 0x1eb   : > { %v4158_v24 = vpop.f32.mrf.mxu0 }
 0x1ee   : > { %v4160_v26 = vpop.trf.xlu0  ;;  %1669 = vperm.xlu2 %3630, %v1627_v62   ;;  %v4266_v62 = vld [vmem:[%s5415_s3 + $0x18] sm:$0xff] }
 0x1ef   : > { %v3539_v45 = vunpack.i.l.bf16 %v4160_v26  ;;  %v3542_v21 = vunpack.i.h.bf16 %v4160_v26  ;;  %v856_v26 = vpop.f32.mrf.mxu1 }
 0x1f0   : > { %v857_v56 = vadd.f32 %v3975_v52, %v856_v26 }
 0x1f2   : > { %v944_v58 = vmax.f32 %v857_v56, 0.0 }
 0x1f3   : > { %v4165_v30 = vpop.f32.mrf.mxu0 }
 0x1f6   : > { %v4167_v32 = vpop.trf.xlu0  ;;  %1674 = vperm.xlu2 %3630, %v1628_v5  }
 0x1f7   : > { %v3544_v27 = vunpack.i.l.bf16 %v4167_v32  ;;  %v3547_v18 = vunpack.i.h.bf16 %v4167_v32  ;;  %v851_v32 = vadd.f32 %v3975_v52, %v850_v46  ;;  %v859_v54 = vpop.f32.mrf.mxu1 }
 0x1f8   : > { %v860_v63 = vadd.f32 %v3975_v52, %v859_v54 }
 0x1f9   : > { %v1100_v50 = vpack.c.bf16 %v3544_v27, %v3539_v45  ;;  %v1101_v6 = vpack.c.bf16 %v3547_v18, %v3542_v21  ;;  %v926_v45 = vmax.f32 %v803_v42, 0.0  ;;  %v1093_v27 = vpack.c.bf16 %v3527_v20, %v3522_v23 }
 0x1fb   : > { %v4172_v25 = vpop.f32.mrf.mxu0 }
 0x1fe   : > { %v3548_v36 = vpop.trf.xlu0  ;;  %1659 = vperm.xlu2 %3630, %v1625_v39  }
 0x1ff   : > { %v3549_v40 = vunpack.i.l.bf16 %v3548_v36  ;;  %v3552_v31 = vunpack.i.h.bf16 %v3548_v36  ;;  %v941_v36 = vmax.f32 %v848_v10, 0.0  ;;  %v862_v46 = vpop.f32.mrf.mxu1  ;;  %v2106_v10 = vld [vmem:[%s5422_s10 + $0x8] sm:$0xff] }
 0x203   : > { %v4177_v38 = vpop.f32.mrf.mxu0 }
 0x204   : > { %v833_v56 = vadd.f32 %v3975_v52, %v4177_v38  ;;  %v2124_v38 = vld [vmem:[%s5422_s10 + $0x98] sm:$0xff] }
 0x206   : > { %v3553_v44 = vpop.trf.xlu0 }
 0x207   : > { %v3554_v47 = vunpack.i.l.bf16 %v3553_v44  ;;  %v3557_v0 = vunpack.i.h.bf16 %v3553_v44  ;;  %v3560_v44 = vpack.i.bf16 %v941_v36, %v925_v34  ;;  %v821_v34 = vadd.f32 %v3975_v52, %v4151_v22 }
 0x209   : > { %v1104_v41 = vpack.c.bf16 %v3554_v47, %v3549_v40  ;;  %3631 = vset.pattern.permute.xlu0 %v3730_v14  ;;  %v1105_v3 = vpack.c.bf16 %v3557_v0, %v3552_v31  ;;  %v1097_v40 = vpack.c.bf16 %v3537_v37, %v3532_v28  ;;  %v942_v47 = vmax.f32 %v851_v32, 0.0  ;;  %v2109_v28 = vld [vmem:[%s5422_s10 + $0x20] sm:$0xff]  ;;  %v2112_v32 = vld [vmem:[%s5422_s10 + $0x38] sm:$0xff] }
 0x20a   : > { %v932_v39 = vmax.f32 %v821_v34, 0.0 }
 0x20b   : > { %v4185_v48 = vpop.f32.mrf.mxu0  ;;  %1193 = vmatpush.bf16.msrb.mxu1 %v1104_v41  ;;  %1222 = vmatpush.bf16.msrb.mxu2 %v1105_v3  ;;  %v1626_v41 = vld [vmem:[%s5420_s8 + $0x28] sm:$0xff]  ;;  %v3562_v35 = vpack.i.bf16 %v942_v47, %v926_v45  ;;  %v863_v3 = vadd.f32 %v3975_v52, %v862_v46  ;;  %v2115_v47 = vld [vmem:[%s5422_s10 + $0x50] sm:$0xff] }
 0x20c   : > { %1664 = vperm.xlu2 %3630, %v1626_v41  }
 0x20d   : > { %v946_v4 = vmax.f32 %v863_v3, 0.0 }
 0x20f   : > { %1194 = vmatpush.bf16.msrb.mxu1 %v1100_v50  ;;  %1223 = vmatpush.bf16.msrb.mxu2 %v1101_v6  ;;  %v806_v50 = vadd.f32 %v3975_v52, %v4120_v9  ;;  %v809_v9 = vadd.f32 %v3975_v52, %v4125_v11  ;;  %v812_v11 = vadd.f32 %v3975_v52, %v4130_v13  ;;  %v874_v6 = vpop.f32.mrf.mxu2 }
 0x210   : > { %v815_v13 = vadd.f32 %v3975_v52, %v4137_v16 }
 0x211   : > { %v927_v51 = vmax.f32 %v806_v50, 0.0  ;;  %v929_v31 = vmax.f32 %v812_v11, 0.0  ;;  %v836_v11 = vadd.f32 %v3975_v52, %v4185_v48 }
 0x213   : > { %v4194_v57 = vpop.f32.mrf.mxu0  ;;  %1195 = vmatpush.bf16.msrb.mxu1 %v1096_v55  ;;  %1224 = vmatpush.bf16.msrb.mxu2 %v1097_v40  ;;  %v1623_v55 = vld [vmem:[%s5420_s8 + $0x10] sm:$0xff]  ;;  %v3564_v43 = vpack.i.bf16 %v943_v53, %v927_v51  ;;  %v830_v51 = vadd.f32 %v3975_v52, %v4172_v25  ;;  %v2121_v25 = vld [vmem:[%s5422_s10 + $0x80] sm:$0xff] }
 0x214   : > { %1649 = vperm.xlu2 %3630, %v1623_v55   ;;  %v2118_v55 = vld [vmem:[%s5422_s10 + $0x68] sm:$0xff]  ;;  %v839_v3 = vadd.f32 %v3975_v52, %v4194_v57 }
 0x217   : > { %1196 = vmatpush.bf16.msrb.mxu1 %v1092_v29  ;;  %1225 = vmatpush.bf16.msrb.mxu2 %v1093_v27  ;;  %v928_v29 = vmax.f32 %v809_v9, 0.0  ;;  %v877_v45 = vpop.f32.mrf.mxu2  ;;  %v827_v27 = vadd.f32 %v3975_v52, %v4165_v30  ;;  %v935_v30 = vmax.f32 %v830_v51, 0.0 }
 0x218   : > { %v878_v53 = vadd.f32 %v3975_v52, %v877_v45 }
 0x219   : > { %v3566_v0 = vpack.i.bf16 %v944_v58, %v928_v29  ;;  %v934_v50 = vmax.f32 %v827_v27, 0.0 }
 0x21a   : > { %3195 = vmatmul.msk.bf16.vlgmr.msrb.gmra.mxu1 %vm1176_vm2, %v4202_v60  ;;  %3199 = vmatmul.msk.bf16.vlgmr.msrb.gmra.mxu2 %vm1176_vm2, %v4202_v60  ;;  %v951_v9 = vmax.f32 %v878_v53, 0.0 }
 0x21b   : > { %v4206_v61 = vpop.f32.mrf.mxu0 }
 0x21c   : > { %1654 = vperm.xlu2 %3630, %v1624_v59   ;;  %v3580_v29 = vpack.i.bf16 %v951_v9, %v935_v30  ;;  %v936_v59 = vmax.f32 %v833_v56, 0.0 }
 0x223   : > { %v844_v1 = vpop.f32.mrf.mxu0 }
 0x224   : > { %v845_v2 = vadd.f32 %v3975_v52, %v844_v1  ;;  %v945_v1 = vmax.f32 %v860_v63, 0.0 }
 0x226   : > { %v940_v7 = vmax.f32 %v845_v2, 0.0  ;;  %v1622_v2 = vld [vmem:[%s5420_s8 + $0x8] sm:$0xff]  ;;  %v3568_v5 = vpack.i.bf16 %v945_v1, %v929_v31  ;;  %v937_v1 = vmax.f32 %v836_v11, 0.0 }
 0x227   : > { %1644 = vperm.xlu2 %3630, %v1622_v2  }
 0x228   : > { %v3558_v12 = vpack.i.bf16 %v940_v7, %v924_v49  ;;  %v865_v49 = vpop.f32.mrf.mxu1  ;;  %v930_v7 = vmax.f32 %v815_v13, 0.0  ;;  %v4327_v13 = vpop.permute.xlu2 %1148 }
 0x229   : > { %v866_v15 = vadd.f32 %v3975_v52, %v865_v49  ;;  %v2127_v49 = vld [vmem:[%s5422_s10 + $0xb0] sm:$0xff] }
 0x22a   : > { %3559 = vxpose.xlu1.b32.start [1/16] (narrow) %v3558_v12, 64  ;;  %3196 = vmatmul.msk.bf16.gmra.mxu1 %vm1176_vm2, %v4220_v33  ;;  %v818_v12 = vadd.f32 %v3975_v52, %v4144_v19  ;;  %v3570_v18 = vpack.i.bf16 %v946_v4, %v930_v7  ;;  %v938_v7 = vmax.f32 %v839_v3, 0.0 }
 0x22b   : > { %3200 = vmatmul.msk.bf16.gmra.mxu2 %vm1176_vm2, %v4220_v33  ;;  %v947_v37 = vmax.f32 %v866_v15, 0.0  ;;  %v842_v15 = vadd.f32 %v3975_v52, %v4206_v61  ;;  %v2133_v61 = vld [vmem:[%s5422_s10 + $0xe0] sm:$0xff] }
 0x22c   : > { %v931_v21 = vmax.f32 %v818_v12, 0.0 }
 0x22e   : > { %v3572_v36 = vpack.i.bf16 %v947_v37, %v931_v21  ;;  %v2130_v21 = vld [vmem:[%s5422_s10 + $0xc8] sm:$0xff]  ;;  %v939_v37 = vmax.f32 %v842_v15, 0.0 }
 0x22f   : > { %2144 = vperm.xlu2 %3630, %v2106_v10  }
 0x230   : > { %v868_v16 = vpop.f32.mrf.mxu1  ;;  %v4338_v57 = vpop.permute.xlu2 %1153 }
 0x231   : > { %v869_v19 = vadd.f32 %v3975_v52, %v868_v16 }
 0x232   : > { %3561 = vxpose.xlu1.b32.cont [2/16] (narrow) %v3560_v44, 64  ;;  %v824_v44 = vadd.f32 %v3975_v52, %v4158_v24  ;;  %v875_v24 = vadd.f32 %v3975_v52, %v874_v6  ;;  %v2136_v6 = vld [vmem:[%s5422_s10 + $0xf8] sm:$0xff] }
 0x233   : > { %v948_v40 = vmax.f32 %v869_v19, 0.0 }
 0x234   : > { %v933_v22 = vmax.f32 %v824_v44, 0.0  ;;  %v950_v17 = vmax.f32 %v875_v24, 0.0 }
 0x235   : > { %v3574_v23 = vpack.i.bf16 %v948_v40, %v932_v39 }
 0x236   : > { %v3578_v54 = vpack.i.bf16 %v950_v17, %v934_v50 }
 0x237   : > { %2159 = vperm.xlu2 %3630, %v2109_v28  }
 0x238   : > { %v871_v42 = vpop.f32.mrf.mxu1 }
 0x239   : > { %v872_v20 = vadd.f32 %v3975_v52, %v871_v42 }
 0x23a   : > { %3563 = vxpose.xlu1.b32.cont [3/16] (narrow) %v3562_v35, 64  ;;  %3197 = vmatmul.msk.bf16.gmra.mxu1 %vm1176_vm2, %v4245_v8  ;;  %v880_v35 = vpop.f32.mrf.mxu2 }
 0x23b   : > { %3201 = vmatmul.msk.bf16.gmra.mxu2 %vm1176_vm2, %v4245_v8  ;;  %v949_v26 = vmax.f32 %v872_v20, 0.0 }
 0x23d   : > { %v3576_v41 = vpack.i.bf16 %v949_v26, %v933_v22 }
 0x23f   : > { %2174 = vperm.xlu2 %3630, %v2112_v32  }
 0x242   : > { %3565 = vxpose.xlu1.b32.cont [4/16] (narrow) %v3564_v43, 64  ;;  %v881_v43 = vadd.f32 %v3975_v52, %v880_v35  ;;  %v883_v58 = vpop.f32.mrf.mxu2 }
 0x243   : > { %v884_v63 = vadd.f32 %v3975_v52, %v883_v58 }
 0x244   : > { %v952_v46 = vmax.f32 %v881_v43, 0.0 }
 0x245   : > { %v953_v2 = vmax.f32 %v884_v63, 0.0 }
 0x247   : > { %2189 = vperm.xlu2 %3630, %v2115_v47   ;;  %v3584_v48 = vpack.i.bf16 %v953_v2, %v937_v1  ;;  %v4380_v2 = vld [vmem:[%s5417_s5] sm:$0xff] }
 0x24a   : > { %3567 = vxpose.xlu1.b32.cont [5/16] (narrow) %v3566_v0, 64  ;;  %3198 = vmatmul.msk.bf16.gmra.mxu1 %vm1176_vm2, %v4266_v62  ;;  %v3582_v0 = vpack.i.bf16 %v952_v46, %v936_v59  ;;  %v886_v31 = vpop.f32.mrf.mxu2 }
 0x24b   : > { %3202 = vmatmul.msk.bf16.gmra.mxu2 %vm1176_vm2, %v4266_v62 }
 0x24f   : > { %2204 = vperm.xlu2 %3630, %v2118_v55  }
 0x252   : > { %3569 = vxpose.xlu1.b32.cont [6/16] (narrow) %v3568_v5, 64  ;;  %v887_v5 = vadd.f32 %v3975_v52, %v886_v31  ;;  %v889_v10 = vpop.f32.mrf.mxu2 }
 0x254   : > { %v954_v4 = vmax.f32 %v887_v5, 0.0 }
 0x256   : > { %v3586_v16 = vpack.i.bf16 %v954_v4, %v938_v7  ;;  %v4387_v7 = vld [vmem:[%s5417_s5 + $0x8] sm:$0xff] }
 0x257   : > { %2219 = vperm.xlu2 %3630, %v2121_v25  }
 0x25a   : > { %3571 = vxpose.xlu1.b32.cont [7/16] (narrow) %v3570_v18, 64  ;;  %v890_v18 = vadd.f32 %v3975_v52, %v889_v10 }
 0x25c   : > { %v955_v28 = vmax.f32 %v890_v18, 0.0  ;;  %v4395_v18 = vld [vmem:[%s5417_s5 + $0x10] sm:$0xff] }
 0x25e   : > { %v3588_v19 = vpack.i.bf16 %v955_v28, %v939_v37 }
 0x25f   : > { %2234 = vperm.xlu2 %3630, %v2124_v38  }
 0x262   : > { %3573 = vxpose.xlu1.b32.cont [8/16] (narrow) %v3572_v36, 64  ;;  %v4346_v36 = vpop.permute.xlu2 %1138 }
 0x267   : > { %2249 = vperm.xlu2 %3630, %v2127_v49  }
 0x26a   : > { %3575 = vxpose.xlu1.b32.cont [9/16] (narrow) %v3574_v23, 64  ;;  %v4351_v39 = vpop.permute.xlu2 %1143 }
 0x26f   : > { %2264 = vperm.xlu2 %3630, %v2130_v21  }
 0x272   : > { %3577 = vxpose.xlu1.b32.cont [10/16] (narrow) %v3576_v41, 64  ;;  %v4353_v42 = vpop.permute.xlu2 %1128 }
 0x277   : > { %2279 = vperm.xlu2 %3630, %v2133_v61  }
 0x27a   : > { %3579 = vxpose.xlu1.b32.cont [11/16] (narrow) %v3578_v54, 64  ;;  %v4355_v20 = vpop.permute.xlu2 %1133 }
 0x27f   : > { %2294 = vperm.xlu2 %3630, %v2136_v6  }
 0x282   : > { %3581 = vxpose.xlu1.b32.cont [12/16] (narrow) %v3580_v29, 64  ;;  %v4359_v26 = vpop.permute.xlu2 %1118 }
 0x28a   : > { %3583 = vxpose.xlu1.b32.cont [13/16] (narrow) %v3582_v0, 64  ;;  %v4371_v56 = vpop.permute.xlu2 %1123 }
 0x292   : > { %3585 = vxpose.xlu1.b32.cont [14/16] (narrow) %v3584_v48, 64 }
 0x297   : > { %v1198_v12 = vpop.f32.mrf.mxu1 }
 0x298   : > { %v1199_v43 = vadd.f32 %v1198_v12, %v4359_v26 }
 0x29a   : > { %3587 = vxpose.xlu1.b32.cont [15/16] (narrow) %v3586_v16, 64  ;;  %v1305_v63 = vmax.f32 %v1199_v43, 0.0 }
 0x29d   : > { %v4357_v23 = vpop.f32.mrf.mxu2 }
 0x29f   : > { %v1200_v34 = vpop.f32.mrf.mxu1 }
 0x2a0   : > { %v1201_v29 = vadd.f32 %v1200_v34, %v4371_v56 }
 0x2a2   : > { %3589 = vxpose.xlu1.b32.end [16/16] (narrow) %v3588_v19, 64  ;;  %v1309_v0 = vmax.f32 %v1201_v29, 0.0  ;;  %v4407_v29 = vld [vmem:[%s5417_s5 + $0x18] sm:$0xff] }
 0x2a4   : > { %v1345_v1 = vpack.c.bf16 %v1309_v0, %v1305_v63 }
 0x2a5   : > { %v4362_v47 = vpop.f32.mrf.mxu2 }
 0x2a7   : > { %v1203_v52 = vpop.f32.mrf.mxu1 }
 0x2a8   : > { %v1204_v51 = vadd.f32 %v1203_v52, %v4353_v42 }
 0x2aa   : > { %v1313_v58 = vmax.f32 %v1204_v51, 0.0 }
 0x2ae   : > { %v1232_v11 = vpop.f32.mrf.mxu2 }
 0x2af   : > { %v1205_v40 = vpop.f32.mrf.mxu1 }
 0x2b0   : > { %v1206_v53 = vadd.f32 %v1205_v40, %v4355_v20 }
 0x2b2   : > { %v1317_v25 = vmax.f32 %v1206_v53, 0.0 }
 0x2b4   : > { %v1349_v38 = vpack.c.bf16 %v1317_v25, %v1313_v58 }
 0x2b6   : > { %v1234_v3 = vpop.f32.mrf.mxu2 }
 0x2b7   : > { %v1208_v32 = vpop.f32.mrf.mxu1  ;;  %v1235_v0 = vadd.f32 %v1234_v3, %v4355_v20 }
 0x2b8   : > { %v1209_v27 = vadd.f32 %v1208_v32, %v4346_v36 }
 0x2ba   : > { %v1321_v54 = vmax.f32 %v1209_v27, 0.0 }
 0x2be   : > { %v1237_v48 = vpop.f32.mrf.mxu2 }
 0x2bf   : > { %v1210_v44 = vpop.f32.mrf.mxu1  ;;  %v1238_v51 = vadd.f32 %v1237_v48, %v4346_v36 }
 0x2c0   : > { %v1211_v24 = vadd.f32 %v1210_v44, %v4351_v39 }
 0x2c2   : > { %v1325_v55 = vmax.f32 %v1211_v24, 0.0 }
 0x2c4   : > { %v1353_v46 = vpack.c.bf16 %v1325_v55, %v1321_v54 }
 0x2c6   : > { %v1239_v4 = vpop.f32.mrf.mxu2 }
 0x2c7   : > { %v1213_v22 = vpop.f32.mrf.mxu1  ;;  %v1240_v53 = vadd.f32 %v1239_v4, %v4351_v39 }
 0x2c8   : > { %v1214_v45 = vadd.f32 %v1213_v22, %v4327_v13 }
 0x2ca   : > { %v1329_v17 = vmax.f32 %v1214_v45, 0.0 }
 0x2ce   : > { %v4366_v41 = vpop.trf.xlu1  ;;  %v1242_v15 = vpop.f32.mrf.mxu2 }
 0x2cf   : > { %v1215_v50 = vpop.f32.mrf.mxu1  ;;  %v1243_v44 = vadd.f32 %v1242_v15, %v4327_v13  ;;  %v3594_v25 = vunpack.i.h.bf16 %v4366_v41  ;;  %v3591_v63 = vunpack.i.l.bf16 %v4366_v41  ;;  %v1318_v41 = vmax.f32 %v1235_v0, 0.0 }
 0x2d0   : > { %v1216_v35 = vadd.f32 %v1215_v50, %v4338_v57 }
 0x2d1   : > { %v1330_v54 = vmax.f32 %v1243_v44, 0.0 }
 0x2d2   : > { %v1333_v30 = vmax.f32 %v1216_v35, 0.0 }
 0x2d4   : > { %v1357_v9 = vpack.c.bf16 %v1333_v30, %v1329_v17 }
 0x2d6   : > { %v4375_v59 = vpop.trf.xlu1  ;;  %1445 = vmatpush.bf16.msra.mxu2 %v1357_v9  ;;  %v1244_v6 = vpop.f32.mrf.mxu2 }
 0x2d7   : > { %v1245_v22 = vadd.f32 %v1244_v6, %v4338_v57  ;;  %v3599_v30 = vunpack.i.h.bf16 %v4375_v59  ;;  %v3596_v58 = vunpack.i.l.bf16 %v4375_v59  ;;  %v1228_v59 = vadd.f32 %v4357_v23, %v4359_v26 }
 0x2d9   : > { %v1334_v55 = vmax.f32 %v1245_v22, 0.0  ;;  %v1095_v48 = vpack.c.bf16 %v3599_v30, %v3594_v25  ;;  %v1306_v4 = vmax.f32 %v1228_v59, 0.0 }
 0x2da   : > { %1446 = vmatpush.bf16.msra.mxu2 %v1353_v46  ;;  %v1233_v46 = vadd.f32 %v1232_v11, %v4353_v42  ;;  %v1230_v11 = vadd.f32 %v4362_v47, %v4371_v56 }
 0x2de   : > { %v3600_v31 = vpop.trf.xlu1  ;;  %1447 = vmatpush.bf16.msra.mxu2 %v1349_v38  ;;  %v1322_v38 = vmax.f32 %v1238_v51, 0.0 }
 0x2df   : > { %v3604_v17 = vunpack.i.h.bf16 %v3600_v31  ;;  %v3601_v35 = vunpack.i.l.bf16 %v3600_v31  ;;  %v1326_v31 = vmax.f32 %v1240_v53, 0.0 }
 0x2e1   : > { %v1354_v3 = vpack.c.bf16 %v1326_v31, %v1322_v38 }
 0x2e2   : > { %1448 = vmatpush.bf16.msra.mxu2 %v1345_v1  ;;  %v1358_v1 = vpack.c.bf16 %v1334_v55, %v1330_v54  ;;  %v1636_v54 = vld [vmem:[%s5420_s8 + $0x78] sm:$0xff] }
 0x2e5   : > { %3227 = vmatmul.msk.bf16.vlgmr.msra.gmra.mxu2 %vm1176_vm2, %v4380_v2 }
 0x2e6   : > { %v3605_v5 = vpop.trf.xlu1 }
 0x2e7   : > { %v3609_v45 = vunpack.i.h.bf16 %v3605_v5  ;;  %v3606_v50 = vunpack.i.l.bf16 %v3605_v5  ;;  %v1094_v5 = vpack.c.bf16 %v3596_v58, %v3591_v63 }
 0x2e9   : > { %v1098_v9 = vpack.c.bf16 %v3606_v50, %v3601_v35  ;;  %v1099_v43 = vpack.c.bf16 %v3609_v45, %v3604_v17 }
 0x2ee   : > { %v3610_v49 = vpop.trf.xlu1 }
 0x2ef   : > { %v3614_v40 = vunpack.i.h.bf16 %v3610_v49  ;;  %v3611_v32 = vunpack.i.l.bf16 %v3610_v49  ;;  %v1314_v49 = vmax.f32 %v1233_v46, 0.0 }
 0x2f5   : > { %3228 = vmatmul.msk.bf16.gmra.mxu2 %vm1176_vm2, %v4387_v7  ;;  %3632 = vset.pattern.permute.xlu1 %v3730_v14 }
 0x2f6   : > { %v3615_v10 = vpop.trf.xlu1 }
 0x2f7   : > { %v3619_v19 = vunpack.i.h.bf16 %v3615_v10  ;;  %v3616_v14 = vunpack.i.l.bf16 %v3615_v10  ;;  %v1310_v10 = vmax.f32 %v1230_v11, 0.0 }
 0x2f9   : > { %v1102_v27 = vpack.c.bf16 %v3616_v14, %v3611_v32  ;;  %v1103_v24 = vpack.c.bf16 %v3619_v19, %v3614_v40  ;;  %v1346_v23 = vpack.c.bf16 %v1310_v10, %v1306_v4 }
 0x2fc   : > { %1714 = vperm.xlu1 %3632, %v1636_v54  }
 0x2fe   : > { %v3620_v12 = vpop.trf.xlu1 }
 0x2ff   : > { %v3624_v16 = vunpack.i.h.bf16 %v3620_v12  ;;  %v3621_v37 = vunpack.i.l.bf16 %v3620_v12  ;;  %v1350_v12 = vpack.c.bf16 %v1318_v41, %v1314_v49  ;;  %v4485_v49 = vld [vmem:[%s5419_s7] sm:$0xff] }
 0x305   : > { %3229 = vmatmul.msk.bf16.gmra.mxu2 %vm1176_vm2, %v4395_v18 }
 0x306   : > { %v3625_v21 = vpop.trf.xlu1 }
 0x307   : > { %v3629_v28 = vunpack.i.h.bf16 %v3625_v21  ;;  %v3626_v34 = vunpack.i.l.bf16 %v3625_v21 }
 0x309   : > { %v1106_v61 = vpack.c.bf16 %v3626_v34, %v3621_v37  ;;  %v1107_v52 = vpack.c.bf16 %v3629_v28, %v3624_v16 }
 0x30b   : > { %1251 = vmatpush.bf16.msra.mxu3 %v1106_v61  ;;  %1280 = vmatpush.bf16.msra.mxu1 %v1107_v52 }
 0x30f   : > { %1252 = vmatpush.bf16.msra.mxu3 %v1102_v27  ;;  %1281 = vmatpush.bf16.msra.mxu1 %v1103_v24 }
 0x313   : > { %1253 = vmatpush.bf16.msra.mxu3 %v1098_v9  ;;  %1282 = vmatpush.bf16.msra.mxu1 %v1099_v43 }
 0x315   : > { %3230 = vmatmul.msk.bf16.gmra.mxu2 %vm1176_vm2, %v4407_v29 }
 0x317   : > { %1254 = vmatpush.bf16.msra.mxu3 %v1094_v5  ;;  %1283 = vmatpush.bf16.msra.mxu1 %v1095_v48  ;;  %v1621_v5 = vld [vmem:[%s5420_s8] sm:$0xff] }
 0x318   : > { %1639 = vperm.xlu1 %3632, %v1621_v5  }
 0x31a   : > { %3203 = vmatmul.msk.bf16.vlgmr.msra.gmra.mxu3 %vm1176_vm2, %v4202_v60  ;;  %3207 = vmatmul.msk.bf16.vlgmr.msra.gmra.mxu1 %vm1176_vm2, %v4202_v60  ;;  %v4438_v60 = vpop.permute.xlu2 %1401 }
 0x31b   : > { %1474 = vmatpush.bf16.msrb.mxu3 %v1358_v1 }
 0x31f   : > { %1475 = vmatpush.bf16.msrb.mxu3 %v1354_v3 }
 0x323   : > { %1476 = vmatpush.bf16.msrb.mxu3 %v1350_v12  ;;  %v4492_v12 = vld [vmem:[%s5419_s7 + $0x8] sm:$0xff] }
 0x327   : > { %1477 = vmatpush.bf16.msrb.mxu3 %v1346_v23 }
 0x32a   : > { %3204 = vmatmul.msk.bf16.gmra.mxu3 %vm1176_vm2, %v4220_v33  ;;  %3208 = vmatmul.msk.bf16.gmra.mxu1 %vm1176_vm2, %v4220_v33  ;;  %v4442_v33 = vpop.permute.xlu2 %1406 }
 0x332   : > { %v4444_v16 = vpop.permute.xlu2 %1391 }
 0x33a   : > { %3205 = vmatmul.msk.bf16.gmra.mxu3 %vm1176_vm2, %v4245_v8  ;;  %3209 = vmatmul.msk.bf16.gmra.mxu1 %vm1176_vm2, %v4245_v8  ;;  %v4448_v21 = vpop.permute.xlu2 %1396 }
 0x342   : > { %v4450_v28 = vpop.permute.xlu2 %1381 }
 0x34a   : > { %3206 = vmatmul.msk.bf16.gmra.mxu3 %vm1176_vm2, %v4266_v62  ;;  %3210 = vmatmul.msk.bf16.gmra.mxu1 %vm1176_vm2, %v4266_v62  ;;  %v4454_v19 = vpop.permute.xlu2 %1386 }
 0x352   : > { %v4460_v6 = vpop.permute.xlu2 %1371 }
 0x35a   : > { %3231 = vmatmul.msk.bf16.vlgmr.msrb.gmra.mxu3 %vm1176_vm2, %v4380_v2  ;;  %v4475_v43 = vpop.permute.xlu2 %1376 }
 0x368   : > { %v1450_v47 = vpop.f32.mrf.mxu2 }
 0x369   : > { %v1451_v63 = vadd.f32 %v1450_v47, %v4460_v6 }
 0x36a   : > { %3232 = vmatmul.msk.bf16.gmra.mxu3 %vm1176_vm2, %v4387_v7 }
 0x36b   : > { %v1557_v48 = vmax.f32 %v1451_v63, 0.0 }
 0x370   : > { %v1452_v15 = vpop.f32.mrf.mxu2 }
 0x371   : > { %v1453_v58 = vadd.f32 %v1452_v15, %v4475_v43 }
 0x373   : > { %v1561_v38 = vmax.f32 %v1453_v58, 0.0 }
 0x375   : > { %v1605_v11 = vpack.c.bf16 %v1561_v38, %v1557_v48 }
 0x378   : > { %v1455_v8 = vpop.f32.mrf.mxu2 }
 0x379   : > { %v1456_v55 = vadd.f32 %v1455_v8, %v4450_v28 }
 0x37a   : > { %3233 = vmatmul.msk.bf16.gmra.mxu3 %vm1176_vm2, %v4395_v18 }
 0x37b   : > { %v1565_v0 = vmax.f32 %v1456_v55, 0.0 }
 0x380   : > { %v1457_v62 = vpop.f32.mrf.mxu2 }
 0x381   : > { %v1458_v17 = vadd.f32 %v1457_v62, %v4454_v19 }
 0x383   : > { %v1569_v25 = vmax.f32 %v1458_v17, 0.0 }
 0x385   : > { %v1609_v1 = vpack.c.bf16 %v1569_v25, %v1565_v0 }
 0x388   : > { %v1460_v37 = vpop.f32.mrf.mxu2 }
 0x389   : > { %v1461_v27 = vadd.f32 %v1460_v37, %v4444_v16 }
 0x38a   : > { %3234 = vmatmul.msk.bf16.gmra.mxu3 %vm1176_vm2, %v4407_v29 }
 0x38b   : > { %v1573_v30 = vmax.f32 %v1461_v27, 0.0 }
 0x390   : > { %v1462_v34 = vpop.f32.mrf.mxu2 }
 0x391   : > { %v1463_v22 = vadd.f32 %v1462_v34, %v4448_v21 }
 0x393   : > { %v1577_v35 = vmax.f32 %v1463_v22, 0.0  ;;  %v4503_v22 = vld [vmem:[%s5419_s7 + $0x10] sm:$0xff] }
 0x395   : > { %v1613_v46 = vpack.c.bf16 %v1577_v35, %v1573_v30 }
 0x397   : > { %v4456_v61 = vpop.f32.mrf.mxu1 }
 0x398   : > { %v1465_v52 = vpop.f32.mrf.mxu2 }
 0x399   : > { %v1466_v40 = vadd.f32 %v1465_v52, %v4438_v60 }
 0x39b   : > { %v1581_v24 = vmax.f32 %v1466_v40, 0.0 }
 0x39d   : > { %v4458_v14 = vpop.f32.mrf.mxu3 }
 0x39f   : > { %v4463_v32 = vpop.f32.mrf.mxu1 }
 0x3a0   : > { %v1467_v44 = vpop.f32.mrf.mxu2  ;;  %v1288_v30 = vadd.f32 %v4463_v32, %v4371_v56 }
 0x3a1   : > { %v1468_v45 = vadd.f32 %v1467_v44, %v4442_v33 }
 0x3a3   : > { %v1585_v50 = vmax.f32 %v1468_v45, 0.0 }
 0x3a5   : > { %v1617_v51 = vpack.c.bf16 %v1585_v50, %v1581_v24  ;;  %v4469_v53 = vpop.f32.mrf.mxu3 }
 0x3a7   : > { %v1290_v9 = vpop.f32.mrf.mxu1  ;;  %1785 = vmatpush.bf16.msra.mxu3 %v1617_v51 }
 0x3a8   : > { %v1291_v35 = vadd.f32 %v1290_v9, %v4353_v42  ;;  %v1286_v9 = vadd.f32 %v4456_v61, %v4359_v26 }
 0x3aa   : > { %v1316_v0 = vmax.f32 %v1291_v35, 0.0 }
 0x3ab   : > { %1786 = vmatpush.bf16.msra.mxu3 %v1613_v46 }
 0x3ad   : > { %v1261_v31 = vpop.f32.mrf.mxu3 }
 0x3ae   : > { %v1262_v5 = vadd.f32 %v1261_v31, %v4353_v42  ;;  %v4526_v31 = vld [vmem:[%s5419_s7 + $0x18] sm:$0xff] }
 0x3af   : > { %v1292_v59 = vpop.f32.mrf.mxu1  ;;  %1787 = vmatpush.bf16.msra.mxu3 %v1609_v1  ;;  %v1312_v1 = vmax.f32 %v1288_v30, 0.0 }
 0x3b0   : > { %v1293_v45 = vadd.f32 %v1292_v59, %v4355_v20 }
 0x3b2   : > { %v1320_v58 = vmax.f32 %v1293_v45, 0.0 }
 0x3b3   : > { %1788 = vmatpush.bf16.msra.mxu3 %v1605_v11  ;;  %v1259_v11 = vadd.f32 %v4469_v53, %v4371_v56  ;;  %v4537_v53 = vld [vmem:[%s5419_s7 + $0x20] sm:$0xff] }
 0x3b4   : > { %v1352_v32 = vpack.c.bf16 %v1320_v58, %v1316_v0 }
 0x3b5   : > { %v1263_v41 = vpop.f32.mrf.mxu3 }
 0x3b6   : > { %3275 = vmatmul.msk.bf16.vlgmr.msra.gmra.mxu3 %vm1176_vm2, %v4485_v49 }
 0x3b7   : > { %v1295_v3 = vpop.f32.mrf.mxu1 }
 0x3b8   : > { %v1296_v52 = vadd.f32 %v1295_v3, %v4346_v36 }
 0x3ba   : > { %v1324_v51 = vmax.f32 %v1296_v52, 0.0 }
 0x3bd   : > { %v1266_v4 = vpop.f32.mrf.mxu3 }
 0x3be   : > { %v1267_v25 = vadd.f32 %v1266_v4, %v4346_v36  ;;  %v1308_v36 = vmax.f32 %v1286_v9, 0.0 }
 0x3bf   : > { %v1297_v10 = vpop.f32.mrf.mxu1 }
 0x3c0   : > { %v1298_v37 = vadd.f32 %v1297_v10, %v4351_v39  ;;  %v1323_v48 = vmax.f32 %v1267_v25, 0.0  ;;  %v1348_v4 = vpack.c.bf16 %v1312_v1, %v1308_v36  ;;  %v1311_v10 = vmax.f32 %v1259_v11, 0.0 }
 0x3c2   : > { %v1328_v27 = vmax.f32 %v1298_v37, 0.0 }
 0x3c4   : > { %v1356_v63 = vpack.c.bf16 %v1328_v27, %v1324_v51 }
 0x3c5   : > { %v1268_v23 = vpop.f32.mrf.mxu3 }
 0x3c6   : > { %3276 = vmatmul.msk.bf16.gmra.mxu3 %vm1176_vm2, %v4492_v12  ;;  %v1269_v54 = vadd.f32 %v1268_v23, %v4351_v39  ;;  %v1264_v39 = vadd.f32 %v1263_v41, %v4355_v20  ;;  %v1257_v20 = vadd.f32 %v4458_v14, %v4359_v26  ;;  %v1315_v41 = vmax.f32 %v1262_v5, 0.0 }
 0x3c7   : > { %v1300_v47 = vpop.f32.mrf.mxu1 }
 0x3c8   : > { %v1301_v8 = vadd.f32 %v1300_v47, %v4327_v13  ;;  %v1319_v3 = vmax.f32 %v1264_v39, 0.0  ;;  %v1307_v23 = vmax.f32 %v1257_v20, 0.0 }
 0x3ca   : > { %v1332_v40 = vmax.f32 %v1301_v8, 0.0  ;;  %v1351_v42 = vpack.c.bf16 %v1319_v3, %v1315_v41  ;;  %v1347_v26 = vpack.c.bf16 %v1311_v10, %v1307_v23 }
 0x3cd   : > { %v1271_v15 = vpop.f32.mrf.mxu3 }
 0x3ce   : > { %v1272_v24 = vadd.f32 %v1271_v15, %v4327_v13 }
 0x3cf   : > { %v1302_v62 = vpop.f32.mrf.mxu1 }
 0x3d0   : > { %v1303_v34 = vadd.f32 %v1302_v62, %v4338_v57  ;;  %v1331_v13 = vmax.f32 %v1272_v24, 0.0 }
 0x3d2   : > { %v1336_v44 = vmax.f32 %v1303_v34, 0.0 }
 0x3d4   : > { %v1360_v50 = vpack.c.bf16 %v1336_v44, %v1332_v40 }
 0x3d5   : > { %v1273_v17 = vpop.f32.mrf.mxu3 }
 0x3d6   : > { %v1274_v55 = vadd.f32 %v1273_v17, %v4338_v57  ;;  %1532 = vmatpush.bf16.msrb.mxu2 %v1360_v50  ;;  %3277 = vmatmul.msk.bf16.gmra.mxu3 %vm1176_vm2, %v4503_v22  ;;  %v1327_v57 = vmax.f32 %v1269_v54, 0.0  ;;  %v1635_v17 = vld [vmem:[%s5420_s8 + $0x70] sm:$0xff] }
 0x3d7   : > { %1709 = vperm.xlu0 %3631, %v1635_v17  }
 0x3d8   : > { %v1335_v46 = vmax.f32 %v1274_v55, 0.0  ;;  %v1355_v61 = vpack.c.bf16 %v1327_v57, %v1323_v48 }
 0x3da   : > { %v1359_v38 = vpack.c.bf16 %v1335_v46, %v1331_v13  ;;  %1533 = vmatpush.bf16.msrb.mxu2 %v1356_v63 }
 0x3dc   : > { %1503 = vmatpush.bf16.msrb.mxu1 %v1359_v38  ;;  %v4597_v38 = vpop.permute.xlu2 %1699 }
 0x3dd   : > { %v1479_v59 = vpop.f32.mrf.mxu3 }
 0x3de   : > { %1534 = vmatpush.bf16.msrb.mxu2 %v1352_v32  ;;  %v1480_v58 = vadd.f32 %v1479_v59, %v4460_v6 }
 0x3e0   : > { %1504 = vmatpush.bf16.msrb.mxu1 %v1355_v61  ;;  %v1558_v63 = vmax.f32 %v1480_v58, 0.0 }
 0x3e2   : > { %1535 = vmatpush.bf16.msrb.mxu2 %v1348_v4 }
 0x3e4   : > { %1505 = vmatpush.bf16.msrb.mxu1 %v1351_v42  ;;  %v4603_v48 = vpop.permute.xlu2 %1704 }
 0x3e5   : > { %v1481_v56 = vpop.f32.mrf.mxu3  ;;  %3239 = vmatmul.msk.bf16.vlgmr.msrb.gmra.mxu2 %vm1176_vm2, %v4380_v2 }
 0x3e6   : > { %3278 = vmatmul.msk.bf16.gmra.mxu3 %vm1176_vm2, %v4526_v31  ;;  %v1482_v54 = vadd.f32 %v1481_v56, %v4475_v43 }
 0x3e8   : > { %1506 = vmatpush.bf16.msrb.mxu1 %v1347_v26  ;;  %v1562_v13 = vmax.f32 %v1482_v54, 0.0 }
 0x3ea   : > { %v1606_v9 = vpack.c.bf16 %v1562_v13, %v1558_v63 }
 0x3eb   : > { %3235 = vmatmul.msk.bf16.vlgmr.msrb.gmra.mxu1 %vm1176_vm2, %v4380_v2  ;;  %v4548_v2 = vld [vmem:[%s5419_s7 + $0x28] sm:$0xff] }
 0x3ec   : > { %5462 = vst [vmem:[#allocation8_spill] sm:$0xff] %v4548_v2  ;;  %v4609_v59 = vpop.permute.xlu2 %1689 }
 0x3ed   : > { %v1484_v14 = vpop.f32.mrf.mxu3 }
 0x3ee   : > { %v1485_v35 = vadd.f32 %v1484_v14, %v4450_v28 }
 0x3f0   : > { %v1566_v25 = vmax.f32 %v1485_v35, 0.0 }
 0x3f4   : > { %v4619_v61 = vpop.permute.xlu2 %1694 }
 0x3f5   : > { %v1486_v47 = vpop.f32.mrf.mxu3  ;;  %3240 = vmatmul.msk.bf16.gmra.mxu2 %vm1176_vm2, %v4387_v7 }
 0x3f6   : > { %3279 = vmatmul.msk.bf16.gmra.mxu3 %vm1176_vm2, %v4537_v53  ;;  %v1487_v27 = vadd.f32 %v1486_v47, %v4454_v19 }
 0x3f8   : > { %v1570_v55 = vmax.f32 %v1487_v27, 0.0 }
 0x3fa   : > { %v1610_v46 = vpack.c.bf16 %v1570_v55, %v1566_v25 }
 0x3fb   : > { %3236 = vmatmul.msk.bf16.gmra.mxu1 %vm1176_vm2, %v4387_v7  ;;  %v4559_v7 = vld [vmem:[%s5419_s7 + $0x30] sm:$0xff] }
 0x3fc   : > { %5463 = vst [vmem:[#allocation9_spill] sm:$0xff] %v4559_v7  ;;  %v4623_v23 = vpop.permute.xlu2 %1679 }
 0x3fd   : > { %v1489_v15 = vpop.f32.mrf.mxu3 }
 0x405   : > { %v1491_v8 = vpop.f32.mrf.mxu3  ;;  %3241 = vmatmul.msk.bf16.gmra.mxu2 %vm1176_vm2, %v4395_v18 }
 0x406   : > { %3280 = vmatmul.msk.bf16.gmra.mxu3 %vm1176_vm2, %v4548_v2  ;;  %v1492_v52 = vadd.f32 %v1491_v8, %v4448_v21 }
 0x408   : > { %v1578_v24 = vmax.f32 %v1492_v52, 0.0 }
 0x40b   : > { %3237 = vmatmul.msk.bf16.gmra.mxu1 %vm1176_vm2, %v4395_v18  ;;  %v1490_v18 = vadd.f32 %v1489_v15, %v4444_v16  ;;  %v4631_v15 = vpop.permute.xlu2 %1684 }
 0x40d   : > { %v1494_v62 = vpop.f32.mrf.mxu3  ;;  %v1574_v51 = vmax.f32 %v1490_v18, 0.0 }
 0x40e   : > { %v1495_v37 = vadd.f32 %v1494_v62, %v4438_v60 }
 0x40f   : > { %v1614_v30 = vpack.c.bf16 %v1578_v24, %v1574_v51 }
 0x410   : > { %v1582_v44 = vmax.f32 %v1495_v37, 0.0 }
 0x415   : > { %v1496_v34 = vpop.f32.mrf.mxu3  ;;  %3242 = vmatmul.msk.bf16.gmra.mxu2 %vm1176_vm2, %v4407_v29 }
 0x416   : > { %v1497_v40 = vadd.f32 %v1496_v34, %v4442_v33  ;;  %3281 = vmatmul.msk.bf16.gmra.mxu3 %vm1176_vm2, %v4559_v7  ;;  %v4637_v34 = vpop.permute.xlu2 %1669 }
 0x418   : > { %v1586_v45 = vmax.f32 %v1497_v40, 0.0 }
 0x41a   : > { %v1618_v50 = vpack.c.bf16 %v1586_v45, %v1582_v44 }
 0x41b   : > { %3238 = vmatmul.msk.bf16.gmra.mxu1 %vm1176_vm2, %v4407_v29  ;;  %v4581_v29 = vld [vmem:[%s5419_s7 + $0x38] sm:$0xff] }
 0x41c   : > { %1834 = vmatpush.bf16.msra.mxu1 %v1618_v50  ;;  %5464 = vst [vmem:[#allocation10_spill] sm:$0xff] %v4581_v29 }
 0x41e   : > { %v4641_v44 = vpop.permute.xlu2 %1674 }
 0x420   : > { %1835 = vmatpush.bf16.msra.mxu1 %v1614_v30 }
 0x424   : > { %1836 = vmatpush.bf16.msra.mxu1 %v1610_v46 }
 0x426   : > { %3282 = vmatmul.msk.bf16.gmra.mxu3 %vm1176_vm2, %v4581_v29  ;;  %v4649_v54 = vpop.permute.xlu2 %1659 }
 0x428   : > { %1837 = vmatpush.bf16.msra.mxu1 %v1606_v9 }
 0x42b   : > { %3283 = vmatmul.msk.bf16.vlgmr.msra.gmra.mxu1 %vm1176_vm2, %v4485_v49 }
 0x439   : > { %v4587_v0 = vpop.f32.mrf.mxu3 }
 0x43b   : > { %3284 = vmatmul.msk.bf16.gmra.mxu1 %vm1176_vm2, %v4492_v12 }
 0x441   : > { %v4591_v39 = vpop.f32.mrf.mxu3 }
 0x449   : > { %v4593_v57 = vpop.f32.mrf.mxu3 }
 0x44b   : > { %3285 = vmatmul.msk.bf16.gmra.mxu1 %vm1176_vm2, %v4503_v22 }
 0x451   : > { %v4599_v1 = vpop.f32.mrf.mxu3 }
 0x459   : > { %v4601_v5 = vpop.f32.mrf.mxu3 }
 0x45b   : > { %3286 = vmatmul.msk.bf16.gmra.mxu1 %vm1176_vm2, %v4526_v31 }
 0x461   : > { %v4607_v32 = vpop.f32.mrf.mxu3 }
 0x468   : > { %v4611_v36 = vpop.f32.mrf.mxu1  ;;  %v4613_v11 = vpop.f32.mrf.mxu2 }
 0x469   : > { %v4615_v3 = vpop.f32.mrf.mxu3 }
 0x46b   : > { %3287 = vmatmul.msk.bf16.gmra.mxu1 %vm1176_vm2, %v4537_v53 }
 0x470   : > { %v1510_v20 = vpop.f32.mrf.mxu1  ;;  %v1539_v41 = vpop.f32.mrf.mxu2 }
 0x471   : > { %v4621_v4 = vpop.f32.mrf.mxu3 }
 0x478   : > { %v1513_v10 = vpop.f32.mrf.mxu1  ;;  %v1542_v42 = vpop.f32.mrf.mxu2 }
 0x479   : > { %v4625_v56 = vpop.f32.mrf.mxu3 }
 0x47b   : > { %3288 = vmatmul.msk.bf16.gmra.mxu1 %vm1176_vm2, %v4548_v2 }
 0x480   : > { %v1515_v26 = vpop.f32.mrf.mxu1  ;;  %v1544_v14 = vpop.f32.mrf.mxu2 }
 0x481   : > { %v4629_v47 = vpop.f32.mrf.mxu3 }
 0x488   : > { %v1518_v8 = vpop.f32.mrf.mxu1  ;;  %v1547_v62 = vpop.f32.mrf.mxu2 }
 0x489   : > { %v4633_v37 = vpop.f32.mrf.mxu3  ;;  %v1519_v46 = vadd.f32 %v1518_v8, %v4444_v16  ;;  %v1548_v63 = vadd.f32 %v1547_v62, %v4444_v16  ;;  %v1511_v16 = vadd.f32 %v1510_v20, %v4475_v43  ;;  %v1540_v62 = vadd.f32 %v1539_v41, %v4475_v43  ;;  %v4671_v43 = vpop.permute.xlu0 %1709 }
 0x48b   : > { %3289 = vmatmul.msk.bf16.gmra.mxu1 %vm1176_vm2, %v4559_v7  ;;  %v1545_v7 = vadd.f32 %v1544_v14, %v4454_v19  ;;  %v1576_v8 = vmax.f32 %v1548_v63, 0.0  ;;  %v1563_v20 = vmax.f32 %v1511_v16, 0.0  ;;  %v4676_v63 = vpop.permute.xlu1 %1714 }
 0x490   : > { %v1520_v52 = vpop.f32.mrf.mxu1  ;;  %v1549_v40 = vpop.f32.mrf.mxu2 }
 0x491   : > { %v4639_v18 = vpop.f32.mrf.mxu3  ;;  %v1521_v55 = vadd.f32 %v1520_v52, %v4448_v21  ;;  %v1550_v30 = vadd.f32 %v1549_v40, %v4448_v21 }
 0x493   : > { %v1579_v52 = vmax.f32 %v1521_v55, 0.0  ;;  %v1580_v2 = vmax.f32 %v1550_v30, 0.0  ;;  %v4665_v30 = vpop.permute.xlu2 %1664 }
 0x495   : > { %v1616_v55 = vpack.c.bf16 %v1580_v2, %v1576_v8 }
 0x498   : > { %v1523_v45 = vpop.f32.mrf.mxu1  ;;  %v1552_v27 = vpop.f32.mrf.mxu2 }
 0x499   : > { %v4643_v24 = vpop.f32.mrf.mxu3  ;;  %v1524_v50 = vadd.f32 %v1523_v45, %v4438_v60  ;;  %v1553_v17 = vadd.f32 %v1552_v27, %v4438_v60 }
 0x49b   : > { %3290 = vmatmul.msk.bf16.gmra.mxu1 %vm1176_vm2, %v4581_v29  ;;  %v1583_v9 = vmax.f32 %v1524_v50, 0.0  ;;  %v1584_v45 = vmax.f32 %v1553_v17, 0.0  ;;  %v1516_v29 = vadd.f32 %v1515_v26, %v4454_v19  ;;  %v1572_v19 = vmax.f32 %v1545_v7, 0.0 }
 0x49d   : > { %v1571_v26 = vmax.f32 %v1516_v29, 0.0  ;;  %v1564_v29 = vmax.f32 %v1540_v62, 0.0 }
 0x4a0   : > { %v1525_v35 = vpop.f32.mrf.mxu1  ;;  %v1554_v51 = vpop.f32.mrf.mxu2 }
 0x4a1   : > { %v1526_v58 = vadd.f32 %v1525_v35, %v4442_v33  ;;  %v1555_v25 = vadd.f32 %v1554_v51, %v4442_v33  ;;  %v1822_v13 = vpop.f32.mrf.mxu3  ;;  %v1514_v35 = vadd.f32 %v1513_v10, %v4450_v28  ;;  %v1543_v33 = vadd.f32 %v1542_v42, %v4450_v28 }
 0x4a2   : > { %v1575_v51 = vmax.f32 %v1519_v46, 0.0  ;;  %v1509_v28 = vadd.f32 %v4611_v36, %v4460_v6  ;;  %v1538_v10 = vadd.f32 %v4613_v11, %v4460_v6 }
 0x4a3   : > { %v1587_v60 = vmax.f32 %v1526_v58, 0.0  ;;  %v1588_v27 = vmax.f32 %v1555_v25, 0.0  ;;  %v1567_v42 = vmax.f32 %v1514_v35, 0.0  ;;  %v1568_v58 = vmax.f32 %v1543_v33, 0.0 }
 0x4a4   : > { %v1615_v17 = vpack.c.bf16 %v1579_v52, %v1575_v51  ;;  %v1559_v25 = vmax.f32 %v1509_v28, 0.0  ;;  %v1560_v46 = vmax.f32 %v1538_v10, 0.0  ;;  %v1821_v52 = vadd.f32 %v4643_v24, %v4597_v38 }
 0x4a5   : > { %v1619_v21 = vpack.c.bf16 %v1587_v60, %v1583_v9  ;;  %v1620_v40 = vpack.c.bf16 %v1588_v27, %v1584_v45  ;;  %v1611_v7 = vpack.c.bf16 %v1571_v26, %v1567_v42  ;;  %v1612_v41 = vpack.c.bf16 %v1572_v19, %v1568_v58 }
 0x4a6   : > { %v1607_v11 = vpack.c.bf16 %v1563_v20, %v1559_v25  ;;  %v1608_v9 = vpack.c.bf16 %v1564_v29, %v1560_v46  ;;  %v1823_v45 = vadd.f32 %v1822_v13, %v4603_v48  ;;  %v1818_v35 = vadd.f32 %v4639_v18, %v4619_v61 }
 0x4a7   : > { %1883 = vmatpush.bf16.msra.mxu2 %v1619_v21  ;;  %1932 = vmatpush.bf16.msrb.mxu3 %v1620_v40  ;;  %v4682_v40 = vpop.permute.xlu2 %1649  ;;  %v1816_v13 = vadd.f32 %v4633_v37, %v4609_v59  ;;  %v2025_v8 = vmax.f32 %v1821_v52, 0.0  ;;  %v1813_v24 = vadd.f32 %v4629_v47, %v4631_v15  ;;  %v1811_v26 = vadd.f32 %v4625_v56, %v4623_v23  ;;  %v2108_v52 = vld [vmem:[%s5422_s10 + $0x18] sm:$0xff] }
 0x4a8   : > { %v4663_v50 = vpop.f32.mrf.mxu1  ;;  %v2029_v33 = vmax.f32 %v1823_v45, 0.0  ;;  %v2021_v62 = vmax.f32 %v1818_v35, 0.0  ;;  %v1803_v47 = vadd.f32 %v4607_v32, %v4665_v30  ;;  %v1801_v58 = vadd.f32 %v4601_v5, %v4649_v54  ;;  %2154 = vperm.xlu0 %3631, %v2108_v52   ;;  %v2110_v35 = vld [vmem:[%s5422_s10 + $0x28] sm:$0xff] }
 0x4a9   : > { %v1825_v14 = vpop.f32.mrf.mxu3  ;;  %v2017_v19 = vmax.f32 %v1816_v13, 0.0  ;;  %v2009_v28 = vmax.f32 %v1811_v26, 0.0  ;;  %v1796_v32 = vadd.f32 %v4593_v57, %v4682_v40  ;;  %v2113_v13 = vld [vmem:[%s5422_s10 + $0x40] sm:$0xff]  ;;  %v4786_v26 = vld [vmem:[%s5421_s9 + $0x10] sm:$0xff]  ;;  %v4856_v52 = vld [vmem:[%s5421_s9 + $0x28] sm:$0xff] }
 0x4aa   : > { %v1826_v2 = vadd.f32 %v1825_v14, %v4671_v43  ;;  %v2097_v18 = vpack.c.bf16 %v2029_v33, %v2025_v8  ;;  %v2013_v14 = vmax.f32 %v1813_v24, 0.0  ;;  %v1997_v29 = vmax.f32 %v1803_v47, 0.0  ;;  %v2114_v8 = vld [vmem:[%s5422_s10 + $0x48] sm:$0xff]  ;;  %5466 = vst [vmem:[#allocation12_spill] sm:$0xff] %v4786_v26  ;;  %v5468_v47 = vld [vmem:[#allocation8_spill] sm:$0xff] }
 0x4ab   : > { %1884 = vmatpush.bf16.msra.mxu2 %v1615_v17  ;;  %1933 = vmatpush.bf16.msrb.mxu3 %v1616_v55  ;;  %v2093_v17 = vpack.c.bf16 %v2021_v62, %v2017_v19  ;;  %v1806_v55 = vadd.f32 %v4615_v3, %v4637_v34  ;;  %v2116_v62 = vld [vmem:[%s5422_s10 + $0x58] sm:$0xff]  ;;  %v2119_v19 = vld [vmem:[%s5422_s10 + $0x70] sm:$0xff] }
 0x4ac   : > { %v2033_v27 = vmax.f32 %v1826_v2, 0.0  ;;  %v2089_v42 = vpack.c.bf16 %v2013_v14, %v2009_v28  ;;  %v4808_v28 = vld [vmem:[%s5421_s9 + $0x18] sm:$0xff] }
 0x4ad   : > { %5467 = vst [vmem:[#allocation13_spill] sm:$0xff] %v4808_v28 }
 0x4af   : > { %1885 = vmatpush.bf16.msra.mxu2 %v1611_v7  ;;  %1934 = vmatpush.bf16.msrb.mxu3 %v1612_v41  ;;  %v4700_v37 = vpop.permute.xlu2 %1654  ;;  %v4716_v7 = vpop.permute.xlu1 %1639  ;;  %v1993_v41 = vmax.f32 %v1801_v58, 0.0 }
 0x4b0   : > { %v4674_v36 = vpop.f32.mrf.mxu1  ;;  %v1798_v20 = vadd.f32 %v4599_v1, %v4700_v37  ;;  %v1791_v1 = vadd.f32 %v4587_v0, %v4716_v7  ;;  %v4736_v0 = vld [vmem:[%s5421_s9] sm:$0xff] }
 0x4b1   : > { %v1827_v6 = vpop.f32.mrf.mxu3 }
 0x4b2   : > { %v1828_v60 = vadd.f32 %v1827_v6, %v4676_v63  ;;  %v1989_v46 = vmax.f32 %v1798_v20, 0.0  ;;  %v2105_v6 = vld [vmem:[%s5422_s10] sm:$0xff]  ;;  %v1977_v45 = vmax.f32 %v1791_v1, 0.0  ;;  %v5470_v1 = vld [vmem:[#allocation9_spill] sm:$0xff] }
 0x4b3   : > { %1886 = vmatpush.bf16.msra.mxu2 %v1607_v11  ;;  %1935 = vmatpush.bf16.msrb.mxu3 %v1608_v9  ;;  %v1985_v11 = vmax.f32 %v1796_v32, 0.0  ;;  %v2129_v20 = vld [vmem:[%s5422_s10 + $0xc0] sm:$0xff]  ;;  %v2131_v32 = vld [vmem:[%s5422_s10 + $0xd0] sm:$0xff]  ;;  %5471 = vst [vmem:[#allocation9_spill] sm:$0xff] %v4856_v52 }
 0x4b4   : > { %v2037_v21 = vmax.f32 %v1828_v60, 0.0  ;;  %2139 = vperm.xlu1 %3632, %v2105_v6   ;;  %v2135_v6 = vld [vmem:[%s5422_s10 + $0xf0] sm:$0xff] }
 0x4b5   : > { %v2077_v9 = vpack.c.bf16 %v1989_v46, %v1985_v11  ;;  %v2134_v46 = vld [vmem:[%s5422_s10 + $0xe8] sm:$0xff] }
 0x4b6   : > { %v2101_v51 = vpack.c.bf16 %v2037_v21, %v2033_v27  ;;  %3291 = vmatmul.msk.bf16.vlgmr.msra.gmra.mxu2 %vm1176_vm2, %v4485_v49  ;;  %3299 = vmatmul.msk.bf16.vlgmr.msrb.gmra.mxu3 %vm1176_vm2, %v4485_v49  ;;  %v1808_v49 = vadd.f32 %v4621_v4, %v4641_v44  ;;  %v2001_v4 = vmax.f32 %v1806_v55, 0.0 }
 0x4b7   : > { %v4722_v2 = vpop.permute.xlu2 %1644 }
 0x4b8   : > { %v4692_v16 = vpop.f32.mrf.mxu1  ;;  %2393 = vmatpush.bf16.msrb.mxu1 %v2101_v51  ;;  %v2005_v56 = vmax.f32 %v1808_v49, 0.0  ;;  %v1793_v25 = vadd.f32 %v4591_v39, %v4722_v2  ;;  %v2107_v39 = vld [vmem:[%s5422_s10 + $0x10] sm:$0xff]  ;;  %v4762_v51 = vld [vmem:[%s5421_s9 + $0x8] sm:$0xff]  ;;  %v2120_v49 = vld [vmem:[%s5422_s10 + $0x78] sm:$0xff] }
 0x4b9   : > { %5465 = vst [vmem:[#allocation11_spill] sm:$0xff] %v4762_v51 }
 0x4ba   : > { %v2085_v3 = vpack.c.bf16 %v2005_v56, %v2001_v4  ;;  %v1981_v57 = vmax.f32 %v1793_v25, 0.0  ;;  %v2125_v56 = vld [vmem:[%s5422_s10 + $0xa0] sm:$0xff]  ;;  %v2128_v4 = vld [vmem:[%s5422_s10 + $0xb8] sm:$0xff] }
 0x4bc   : > { %2394 = vmatpush.bf16.msrb.mxu1 %v2097_v18  ;;  %v2073_v27 = vpack.c.bf16 %v1981_v57, %v1977_v45  ;;  %2149 = vperm.xlu1 %3632, %v2107_v39  }
 0x4c0   : > { %v4704_v10 = vpop.f32.mrf.mxu1  ;;  %2395 = vmatpush.bf16.msrb.mxu1 %v2093_v17  ;;  %v2122_v17 = vld [vmem:[%s5422_s10 + $0x88] sm:$0xff] }
 0x4c4   : > { %2396 = vmatpush.bf16.msrb.mxu1 %v2089_v42  ;;  %2164 = vperm.xlu1 %3632, %v2110_v35   ;;  %v2126_v42 = vld [vmem:[%s5422_s10 + $0xa8] sm:$0xff] }
 0x4c6   : > { %3292 = vmatmul.msk.bf16.gmra.mxu2 %vm1176_vm2, %v4492_v12  ;;  %3300 = vmatmul.msk.bf16.gmra.mxu3 %vm1176_vm2, %v4492_v12  ;;  %v2081_v12 = vpack.c.bf16 %v1997_v29, %v1993_v41  ;;  %v2132_v41 = vld [vmem:[%s5422_s10 + $0xd8] sm:$0xff] }
 0x4c8   : > { %v4720_v5 = vpop.f32.mrf.mxu1  ;;  %2397 = vmatpush.bf16.msrb.mxu1 %v2085_v3  ;;  %v4830_v3 = vld [vmem:[%s5421_s9 + $0x20] sm:$0xff] }
 0x4c9   : > { %5469 = vst [vmem:[#allocation8_spill] sm:$0xff] %v4830_v3 }
 0x4cc   : > { %2398 = vmatpush.bf16.msrb.mxu1 %v2081_v12  ;;  %2179 = vperm.xlu1 %3632, %v2113_v13  }
 0x4d0   : > { %v4731_v60 = vpop.f32.mrf.mxu1  ;;  %2399 = vmatpush.bf16.msrb.mxu1 %v2077_v9 }
 0x4d4   : > { %2400 = vmatpush.bf16.msrb.mxu1 %v2073_v27  ;;  %2194 = vperm.xlu1 %3632, %v2116_v62  }
 0x4d6   : > { %3293 = vmatmul.msk.bf16.gmra.mxu2 %vm1176_vm2, %v4503_v22  ;;  %3301 = vmatmul.msk.bf16.gmra.mxu3 %vm1176_vm2, %v4503_v22  ;;  %v2111_v22 = vld [vmem:[%s5422_s10 + $0x30] sm:$0xff] }
 0x4d7   : > { %2401 = vmatmul.bf16.vlgmr.msrb.gmra.mxu1 %v4736_v0  ;;  %2169 = vperm.xlu0 %3631, %v2111_v22  }
 0x4d8   : > { %v4749_v21 = vpop.f32.mrf.mxu1 }
 0x4dc   : > { %2209 = vperm.xlu1 %3632, %v2119_v19  }
 0x4df   : > { %2184 = vperm.xlu0 %3631, %v2114_v8   ;;  %v5472_v8 = vld [vmem:[#allocation10_spill] sm:$0xff] }
 0x4e0   : > { %v4757_v33 = vpop.f32.mrf.mxu1 }
 0x4e4   : > { %2224 = vperm.xlu1 %3632, %v2122_v17  }
 0x4e6   : > { %3294 = vmatmul.msk.bf16.gmra.mxu2 %vm1176_vm2, %v4526_v31  ;;  %3302 = vmatmul.msk.bf16.gmra.mxu3 %vm1176_vm2, %v4526_v31  ;;  %v2117_v31 = vld [vmem:[%s5422_s10 + $0x60] sm:$0xff] }
 0x4e7   : > { %2406 = vmatmul.bf16.gmra.mxu1 %v4762_v51  ;;  %2199 = vperm.xlu0 %3631, %v2117_v31  }
 0x4e8   : > { %v4775_v24 = vpop.f32.mrf.mxu1 }
 0x4ec   : > { %2239 = vperm.xlu1 %3632, %v2125_v56  }
 0x4ef   : > { %2214 = vperm.xlu0 %3631, %v2120_v49  }
 0x4f0   : > { %v1861_v18 = vpop.f32.mrf.mxu1 }
 0x4f1   : > { %v1862_v19 = vadd.f32 %v1861_v18, %v4631_v15  ;;  %v1852_v18 = vadd.f32 %v4731_v60, %v4665_v30  ;;  %v1845_v60 = vadd.f32 %v4692_v16, %v4682_v40 }
 0x4f3   : > { %v2014_v56 = vmax.f32 %v1862_v19, 0.0 }
 0x4f4   : > { %2254 = vperm.xlu1 %3632, %v2128_v4  }
 0x4f6   : > { %3295 = vmatmul.msk.bf16.gmra.mxu2 %vm1176_vm2, %v4537_v53  ;;  %3303 = vmatmul.msk.bf16.gmra.mxu3 %vm1176_vm2, %v4537_v53  ;;  %v2123_v53 = vld [vmem:[%s5422_s10 + $0x90] sm:$0xff] }
 0x4f7   : > { %2411 = vmatmul.bf16.gmra.mxu1 %v4786_v26  ;;  %2229 = vperm.xlu0 %3631, %v2123_v53   ;;  %v1860_v53 = vadd.f32 %v4775_v24, %v4623_v23  ;;  %v1850_v24 = vadd.f32 %v4720_v5, %v4649_v54  ;;  %v1840_v5 = vadd.f32 %v4663_v50, %v4716_v7 }
 0x4f8   : > { %v1864_v14 = vpop.f32.mrf.mxu1 }
 0x4f9   : > { %v1865_v62 = vadd.f32 %v1864_v14, %v4609_v59  ;;  %v1855_v14 = vadd.f32 %v4749_v21, %v4637_v34  ;;  %v1847_v21 = vadd.f32 %v4704_v10, %v4700_v37 }
 0x4fc   : > { %2269 = vperm.xlu1 %3632, %v2131_v32   ;;  %v1998_v32 = vmax.f32 %v1852_v18, 0.0 }
 0x4ff   : > { %2244 = vperm.xlu0 %3631, %v2126_v42  }
 0x500   : > { %v1866_v55 = vpop.f32.mrf.mxu1 }
 0x501   : > { %v1867_v35 = vadd.f32 %v1866_v55, %v4619_v61  ;;  %v2018_v55 = vmax.f32 %v1865_v62, 0.0 }
 0x503   : > { %v2022_v49 = vmax.f32 %v1867_v35, 0.0 }
 0x504   : > { %2284 = vperm.xlu1 %3632, %v2134_v46   ;;  %v1990_v46 = vmax.f32 %v1847_v21, 0.0 }
 0x505   : > { %v2094_v42 = vpack.c.bf16 %v2022_v49, %v2018_v55 }
 0x506   : > { %3296 = vmatmul.msk.bf16.gmra.mxu2 %vm1176_vm2, %v5468_v47  ;;  %3304 = vmatmul.msk.bf16.gmra.mxu3 %vm1176_vm2, %v5468_v47  ;;  %v1857_v47 = vadd.f32 %v4757_v33, %v4641_v44  ;;  %v4879_v33 = vld [vmem:[%s5421_s9 + $0x30] sm:$0xff] }
 0x507   : > { %2416 = vmatmul.bf16.gmra.mxu1 %v4808_v28  ;;  %2259 = vperm.xlu0 %3631, %v2129_v20   ;;  %5473 = vst [vmem:[#allocation10_spill] sm:$0xff] %v4879_v33 }
 0x508   : > { %v1869_v58 = vpop.f32.mrf.mxu1  ;;  %v2006_v4 = vmax.f32 %v1857_v47, 0.0 }
 0x509   : > { %v1870_v27 = vadd.f32 %v1869_v58, %v4597_v38  ;;  %v2010_v58 = vmax.f32 %v1860_v53, 0.0 }
 0x50b   : > { %v2026_v31 = vmax.f32 %v1870_v27, 0.0  ;;  %v2090_v20 = vpack.c.bf16 %v2014_v56, %v2010_v58 }
 0x50f   : > { %2274 = vperm.xlu0 %3631, %v2132_v41  }
 0x510   : > { %v1871_v29 = vpop.f32.mrf.mxu1 }
 0x511   : > { %v1872_v57 = vadd.f32 %v1871_v29, %v4603_v48  ;;  %v2002_v29 = vmax.f32 %v1855_v14, 0.0 }
 0x513   : > { %v2030_v22 = vmax.f32 %v1872_v57, 0.0  ;;  %v2086_v41 = vpack.c.bf16 %v2006_v4, %v2002_v29  ;;  %v1978_v57 = vmax.f32 %v1840_v5, 0.0 }
 0x515   : > { %v2098_v17 = vpack.c.bf16 %v2030_v22, %v2026_v31 }
 0x516   : > { %3297 = vmatmul.msk.bf16.gmra.mxu2 %vm1176_vm2, %v5470_v1  ;;  %3305 = vmatmul.msk.bf16.gmra.mxu3 %vm1176_vm2, %v5470_v1  ;;  %v1994_v1 = vmax.f32 %v1850_v24, 0.0  ;;  %v4959_v24 = vld [vmem:[%s5421_s9 + $0x58] sm:$0xff] }
 0x517   : > { %2421 = vmatmul.bf16.gmra.mxu1 %v4830_v3  ;;  %2289 = vperm.xlu0 %3631, %v2135_v6   ;;  %5475 = vst [vmem:[#allocation15_spill] sm:$0xff] %v4959_v24 }
 0x518   : > { %v1874_v25 = vpop.f32.mrf.mxu1  ;;  %v2082_v10 = vpack.c.bf16 %v1998_v32, %v1994_v1  ;;  %v4968_v1 = vld [vmem:[%s5421_s9 + $0x60] sm:$0xff] }
 0x519   : > { %v1875_v12 = vadd.f32 %v1874_v25, %v4671_v43  ;;  %v1842_v25 = vadd.f32 %v4674_v36, %v4722_v2  ;;  %v4901_v36 = vld [vmem:[%s5421_s9 + $0x38] sm:$0xff]  ;;  %5476 = vst [vmem:[#allocation16_spill] sm:$0xff] %v4968_v1 }
 0x51b   : > { %v2034_v9 = vmax.f32 %v1875_v12, 0.0  ;;  %v1982_v16 = vmax.f32 %v1842_v25, 0.0 }
 0x51d   : > { %v2074_v50 = vpack.c.bf16 %v1982_v16, %v1978_v57  ;;  %v4979_v16 = vld [vmem:[%s5421_s9 + $0x68] sm:$0xff] }
 0x51e   : > { %5479 = vst [vmem:[#allocation19_spill] sm:$0xff] %v4979_v16 }
 0x520   : > { %v1876_v11 = vpop.f32.mrf.mxu1 }
 0x521   : > { %v1877_v45 = vadd.f32 %v1876_v11, %v4676_v63  ;;  %v1986_v11 = vmax.f32 %v1845_v60, 0.0 }
 0x523   : > { %v2038_v39 = vmax.f32 %v1877_v45, 0.0 }
 0x525   : > { %v2102_v13 = vpack.c.bf16 %v2038_v39, %v2034_v9  ;;  %v2078_v9 = vpack.c.bf16 %v1990_v46, %v1986_v11 }
 0x526   : > { %3298 = vmatmul.msk.bf16.gmra.mxu2 %vm1176_vm2, %v5472_v8  ;;  %3306 = vmatmul.msk.bf16.gmra.mxu3 %vm1176_vm2, %v5472_v8  ;;  %v4916_v8 = vld [vmem:[%s5421_s9 + $0x40] sm:$0xff] }
 0x527   : > { %2426 = vmatmul.bf16.gmra.mxu1 %v4856_v52  ;;  %2482 = vmatpush.bf16.msrb.mxu2 %v2102_v13 }
 0x52b   : > { %2483 = vmatpush.bf16.msrb.mxu2 %v2098_v17  ;;  %v4931_v17 = vld [vmem:[%s5421_s9 + $0x48] sm:$0xff] }
 0x52f   : > { %2484 = vmatpush.bf16.msrb.mxu2 %v2094_v42  ;;  %v4946_v42 = vld [vmem:[%s5421_s9 + $0x50] sm:$0xff] }
 0x530   : > { %5474 = vst [vmem:[#allocation14_spill] sm:$0xff] %v4946_v42 }
 0x533   : > { %2485 = vmatpush.bf16.msrb.mxu2 %v2090_v20 }
 0x537   : > { %2431 = vmatmul.bf16.gmra.mxu1 %v4879_v33  ;;  %2486 = vmatpush.bf16.msrb.mxu2 %v2086_v41 }
 0x539   : > { %v4890_v12 = vpop.f32.mrf.mxu2  ;;  %v4892_v6 = vpop.f32.mrf.mxu3 }
 0x53b   : > { %2487 = vmatpush.bf16.msrb.mxu2 %v2082_v10 }
 0x53f   : > { %2488 = vmatpush.bf16.msrb.mxu2 %v2078_v9 }
 0x541   : > { %v4894_v45 = vpop.f32.mrf.mxu2  ;;  %v4896_v27 = vpop.f32.mrf.mxu3 }
 0x543   : > { %2489 = vmatpush.bf16.msrb.mxu2 %v2074_v50 }
 0x546   : > { %2490 = vmatmul.bf16.vlgmr.msrb.gmra.mxu2 %v4736_v0 }
 0x547   : > { %2436 = vmatmul.bf16.gmra.mxu1 %v4901_v36 }
 0x549   : > { %v4905_v39 = vpop.f32.mrf.mxu2  ;;  %v4907_v35 = vpop.f32.mrf.mxu3 }
 0x551   : > { %v4909_v22 = vpop.f32.mrf.mxu2  ;;  %v4911_v13 = vpop.f32.mrf.mxu3 }
 0x554   : > { %v4954_v18 = vpop.f32.mrf.mxu1 }
 0x556   : > { %2495 = vmatmul.bf16.gmra.mxu2 %v4762_v51 }
 0x557   : > { %2441 = vmatmul.bf16.gmra.mxu1 %v4916_v8 }
 0x559   : > { %v4920_v62 = vpop.f32.mrf.mxu2  ;;  %v4922_v31 = vpop.f32.mrf.mxu3 }
 0x55c   : > { %v4963_v32 = vpop.f32.mrf.mxu1 }
 0x561   : > { %v4924_v19 = vpop.f32.mrf.mxu2  ;;  %v4926_v49 = vpop.f32.mrf.mxu3 }
 0x564   : > { %v4970_v5 = vpop.f32.mrf.mxu1 }
 0x565   : > { %5477 = vst [vmem:[#allocation17_spill] sm:$0xff] %v4970_v5 }
 0x566   : > { %2500 = vmatmul.bf16.gmra.mxu2 %v4786_v26 }
 0x567   : > { %2446 = vmatmul.bf16.gmra.mxu1 %v4931_v17 }
 0x569   : > { %v4935_v53 = vpop.f32.mrf.mxu2  ;;  %v4937_v55 = vpop.f32.mrf.mxu3 }
 0x56c   : > { %v4974_v10 = vpop.f32.mrf.mxu1 }
 0x56d   : > { %5478 = vst [vmem:[#allocation18_spill] sm:$0xff] %v4974_v10 }
 0x571   : > { %v4939_v47 = vpop.f32.mrf.mxu2  ;;  %v4941_v56 = vpop.f32.mrf.mxu3 }
 0x574   : > { %v4983_v9 = vpop.f32.mrf.mxu1 }
 0x575   : > { %5480 = vst [vmem:[#allocation20_spill] sm:$0xff] %v4983_v9 }
 0x576   : > { %2505 = vmatmul.bf16.gmra.mxu2 %v4808_v28 }
 0x577   : > { %2451 = vmatmul.bf16.gmra.mxu1 %v4946_v42 }
 0x579   : > { %v4950_v14 = vpop.f32.mrf.mxu2  ;;  %v4952_v58 = vpop.f32.mrf.mxu3 }
 0x57c   : > { %v4991_v10 = vpop.f32.mrf.mxu1 }
 0x581   : > { %v1910_v4 = vpop.f32.mrf.mxu2  ;;  %v1959_v20 = vpop.f32.mrf.mxu3 }
 0x586   : > { %2510 = vmatmul.bf16.gmra.mxu2 %v4830_v3 }
 0x587   : > { %2456 = vmatmul.bf16.gmra.mxu1 %v4959_v24 }
 0x589   : > { %v1913_v29 = vpop.f32.mrf.mxu2  ;;  %v1962_v21 = vpop.f32.mrf.mxu3 }
 0x591   : > { %v1915_v41 = vpop.f32.mrf.mxu2  ;;  %v1964_v60 = vpop.f32.mrf.mxu3 }
 0x596   : > { %2515 = vmatmul.bf16.gmra.mxu2 %v4856_v52 }
 0x597   : > { %2461 = vmatmul.bf16.gmra.mxu1 %v4968_v1 }
 0x599   : > { %v1918_v25 = vpop.f32.mrf.mxu2  ;;  %v1967_v46 = vpop.f32.mrf.mxu3 }
 0x59a   : > { %v1968_v9 = vadd.f32 %v1967_v46, %v4597_v38  ;;  %v1963_v46 = vadd.f32 %v1962_v21, %v4609_v59  ;;  %v1906_v21 = vadd.f32 %v4939_v47, %v4641_v44  ;;  %v1901_v47 = vadd.f32 %v4924_v19, %v4665_v30 }
 0x5a1   : > { %v1920_v11 = vpop.f32.mrf.mxu2  ;;  %v1969_v57 = vpop.f32.mrf.mxu3 }
 0x5a2   : > { %v1921_v24 = vadd.f32 %v1920_v11, %v4603_v48  ;;  %v1970_v51 = vadd.f32 %v1969_v57, %v4603_v48  ;;  %v1916_v48 = vadd.f32 %v1915_v41, %v4619_v61 }
 0x5a6   : > { %2520 = vmatmul.bf16.gmra.mxu2 %v4879_v33 }
 0x5a7   : > { %2466 = vmatmul.bf16.gmra.mxu1 %v4979_v16  ;;  %v1919_v16 = vadd.f32 %v1918_v25, %v4597_v38  ;;  %v1914_v38 = vadd.f32 %v1913_v29, %v4609_v59  ;;  %v1958_v29 = vadd.f32 %v4952_v58, %v4623_v23  ;;  %v2020_v59 = vmax.f32 %v1963_v46, 0.0 }
 0x5a9   : > { %v1923_v50 = vpop.f32.mrf.mxu2  ;;  %v1972_v52 = vpop.f32.mrf.mxu3 }
 0x5aa   : > { %v1924_v3 = vadd.f32 %v1923_v50, %v4671_v43  ;;  %v1973_v28 = vadd.f32 %v1972_v52, %v4671_v43  ;;  %v4998_v43 = vld [vmem:[%s5421_s9 + $0x70] sm:$0xff] }
 0x5ac   : > { %v2035_v52 = vmax.f32 %v1924_v3, 0.0  ;;  %v2036_v50 = vmax.f32 %v1973_v28, 0.0  ;;  %v2027_v3 = vmax.f32 %v1919_v16, 0.0  ;;  %v2028_v28 = vmax.f32 %v1968_v9, 0.0 }
 0x5b1   : > { %v1925_v1 = vpop.f32.mrf.mxu2  ;;  %v1974_v26 = vpop.f32.mrf.mxu3 }
 0x5b2   : > { %v1926_v42 = vadd.f32 %v1925_v1, %v4676_v63  ;;  %v1975_v33 = vadd.f32 %v1974_v26, %v4676_v63  ;;  %v1965_v1 = vadd.f32 %v1964_v60, %v4619_v61  ;;  %v2031_v63 = vmax.f32 %v1921_v24, 0.0 }
 0x5b3   : > { %v2032_v26 = vmax.f32 %v1970_v51, 0.0  ;;  %v1960_v61 = vadd.f32 %v1959_v20, %v4631_v15  ;;  %v1909_v60 = vadd.f32 %v4950_v14, %v4623_v23  ;;  %v1904_v14 = vadd.f32 %v4935_v53, %v4637_v34  ;;  %v5029_v53 = vld [vmem:[%s5421_s9 + $0x78] sm:$0xff] }
 0x5b4   : > { %v2039_v11 = vmax.f32 %v1926_v42, 0.0  ;;  %v2040_v5 = vmax.f32 %v1975_v33, 0.0  ;;  %v1911_v33 = vadd.f32 %v1910_v4, %v4631_v15  ;;  %v2023_v42 = vmax.f32 %v1916_v48, 0.0  ;;  %v5016_v4 = vpop.f32.mrf.mxu1 }
 0x5b5   : > { %v2024_v51 = vmax.f32 %v1965_v1, 0.0  ;;  %v2099_v24 = vpack.c.bf16 %v2031_v63, %v2027_v3  ;;  %v2100_v41 = vpack.c.bf16 %v2032_v26, %v2028_v28  ;;  %v1955_v15 = vadd.f32 %v4941_v56, %v4641_v44 }
 0x5b6   : > { %v2103_v57 = vpack.c.bf16 %v2039_v11, %v2035_v52  ;;  %2525 = vmatmul.bf16.gmra.mxu2 %v4901_v36  ;;  %v2104_v25 = vpack.c.bf16 %v2040_v5, %v2036_v50  ;;  %v2019_v5 = vmax.f32 %v1914_v38, 0.0  ;;  %v2015_v20 = vmax.f32 %v1911_v33, 0.0 }
 0x5b7   : > { %2471 = vmatmul.bf16.gmra.mxu1 %v4998_v43  ;;  %v2016_v16 = vmax.f32 %v1960_v61, 0.0  ;;  %v2096_v52 = vpack.c.bf16 %v2024_v51, %v2020_v59  ;;  %v1953_v23 = vadd.f32 %v4937_v55, %v4637_v34  ;;  %v2011_v58 = vmax.f32 %v1909_v60, 0.0 }
 0x5b8   : > { %2571 = vmatpush.bf16.msra.mxu3 %v2103_v57  ;;  %2660 = vmatpush.bf16.msrb.mxu0 %v2104_v25  ;;  %v2095_v9 = vpack.c.bf16 %v2023_v42, %v2019_v5  ;;  %v2012_v50 = vmax.f32 %v1958_v29, 0.0  ;;  %v1950_v44 = vadd.f32 %v4926_v49, %v4665_v30  ;;  %v2007_v56 = vmax.f32 %v1906_v21, 0.0  ;;  %v5063_v21 = vpop.permute.xlu2 %2144 }
 0x5b9   : > { %v2008_v11 = vmax.f32 %v1955_v15, 0.0  ;;  %v2091_v48 = vpack.c.bf16 %v2015_v20, %v2011_v58  ;;  %v1899_v34 = vadd.f32 %v4920_v62, %v4649_v54  ;;  %v1948_v55 = vadd.f32 %v4922_v31, %v4649_v54  ;;  %v5042_v31 = vpop.permute.xlu1 %2139 }
 0x5ba   : > { %v2092_v1 = vpack.c.bf16 %v2016_v16, %v2012_v50  ;;  %v2003_v19 = vmax.f32 %v1904_v14, 0.0  ;;  %v2004_v63 = vmax.f32 %v1953_v23, 0.0  ;;  %v1896_v30 = vadd.f32 %v4909_v22, %v4700_v37  ;;  %v5481_v50 = vld [vmem:[#allocation17_spill] sm:$0xff] }
 0x5bb   : > { %v1945_v49 = vadd.f32 %v4911_v13, %v4700_v37  ;;  %v1999_v26 = vmax.f32 %v1901_v47, 0.0  ;;  %v2000_v57 = vmax.f32 %v1950_v44, 0.0  ;;  %v1894_v54 = vadd.f32 %v4905_v39, %v4682_v40 }
 0x5bc   : > { %2572 = vmatpush.bf16.msra.mxu3 %v2099_v24  ;;  %2661 = vmatpush.bf16.msrb.mxu0 %v2100_v41  ;;  %v2087_v25 = vpack.c.bf16 %v2007_v56, %v2003_v19  ;;  %v2088_v62 = vpack.c.bf16 %v2008_v11, %v2004_v63  ;;  %v5044_v38 = vpop.f32.mrf.mxu1  ;;  %v1943_v37 = vadd.f32 %v4907_v35, %v4682_v40  ;;  %v1995_v22 = vmax.f32 %v1899_v34, 0.0  ;;  %v5082_v34 = vpop.permute.xlu0 %2154 }
 0x5bd   : > { %v1996_v13 = vmax.f32 %v1948_v55, 0.0  ;;  %v2403_v46 = vadd.f32 %v4954_v18, %v5042_v31  ;;  %v1891_v39 = vadd.f32 %v4894_v45, %v4722_v2  ;;  %v1940_v3 = vadd.f32 %v4896_v27, %v4722_v2  ;;  %v5482_v55 = vld [vmem:[#allocation18_spill] sm:$0xff] }
 0x5be   : > { %v1991_v28 = vmax.f32 %v1896_v30, 0.0  ;;  %v1992_v61 = vmax.f32 %v1945_v49, 0.0  ;;  %v2083_v35 = vpack.c.bf16 %v1999_v26, %v1995_v22  ;;  %v1889_v51 = vadd.f32 %v4890_v12, %v4716_v7 }
 0x5bf   : > { %v2084_v42 = vpack.c.bf16 %v2000_v57, %v1996_v13  ;;  %v1938_v18 = vadd.f32 %v4892_v6, %v4716_v7  ;;  %v1987_v24 = vmax.f32 %v1894_v54, 0.0  ;;  %v1988_v45 = vmax.f32 %v1943_v37, 0.0  ;;  %v5484_v54 = vld [vmem:[#allocation11_spill] sm:$0xff]  ;;  %v5485_v37 = vld [vmem:[#allocation20_spill] sm:$0xff] }
 0x5c0   : > { %2573 = vmatpush.bf16.msra.mxu3 %v2095_v9  ;;  %2662 = vmatpush.bf16.msrb.mxu0 %v2096_v52  ;;  %v2749_v41 = vmax.f32 %v2403_v46, 0.0  ;;  %v1983_v2 = vmax.f32 %v1891_v39, 0.0  ;;  %v1984_v27 = vmax.f32 %v1940_v3, 0.0  ;;  %v1979_v15 = vmax.f32 %v1889_v51, 0.0 }
 0x5c1   : > { %v2079_v5 = vpack.c.bf16 %v1991_v28, %v1987_v24  ;;  %v2080_v59 = vpack.c.bf16 %v1992_v61, %v1988_v45  ;;  %v1980_v20 = vmax.f32 %v1938_v18, 0.0  ;;  %v2405_v12 = vadd.f32 %v4963_v32, %v5063_v21  ;;  %v5072_v32 = vpop.permute.xlu1 %2149 }
 0x5c2   : > { %v2075_v16 = vpack.c.bf16 %v1983_v2, %v1979_v15  ;;  %v2408_v47 = vadd.f32 %v5481_v50, %v5072_v32  ;;  %v2410_v19 = vadd.f32 %v5482_v55, %v5082_v34  ;;  %v5487_v2 = vld [vmem:[#allocation12_spill] sm:$0xff]  ;;  %v5489_v50 = vld [vmem:[#allocation13_spill] sm:$0xff] }
 0x5c3   : > { %v2076_v9 = vpack.c.bf16 %v1984_v27, %v1980_v20  ;;  %v2753_v52 = vmax.f32 %v2405_v12, 0.0 }
 0x5c4   : > { %2574 = vmatpush.bf16.msra.mxu3 %v2091_v48  ;;  %2663 = vmatpush.bf16.msrb.mxu0 %v2092_v1  ;;  %v5074_v58 = vpop.f32.mrf.mxu1  ;;  %v2757_v11 = vmax.f32 %v2408_v47, 0.0  ;;  %v2761_v49 = vmax.f32 %v2410_v19, 0.0 }
 0x5c6   : > { %2530 = vmatmul.bf16.gmra.mxu2 %v4916_v8 }
 0x5c7   : > { %2476 = vmatmul.bf16.gmra.mxu1 %v5029_v53 }
 0x5c8   : > { %2575 = vmatpush.bf16.msra.mxu3 %v2087_v25  ;;  %2664 = vmatpush.bf16.msrb.mxu0 %v2088_v62  ;;  %v5483_v25 = vld [vmem:[#allocation14_spill] sm:$0xff]  ;;  %v5089_v62 = vpop.permute.xlu2 %2159 }
 0x5c9   : > { %v2491_v33 = vpop.f32.mrf.mxu2  ;;  %v2413_v22 = vadd.f32 %v5485_v37, %v5089_v62  ;;  %v5097_v61 = vpop.permute.xlu1 %2164 }
 0x5ca   : > { %v2492_v40 = vadd.f32 %v2491_v33, %v5042_v31 }
 0x5cb   : > { %v2765_v3 = vmax.f32 %v2413_v22, 0.0  ;;  %v5491_v22 = vld [vmem:[#allocation8_spill] sm:$0xff] }
 0x5cc   : > { %v2750_v60 = vmax.f32 %v2492_v40, 0.0  ;;  %2576 = vmatpush.bf16.msra.mxu3 %v2083_v35  ;;  %2665 = vmatpush.bf16.msrb.mxu0 %v2084_v42  ;;  %v2424_v63 = vpop.f32.mrf.mxu1  ;;  %v2415_v40 = vadd.f32 %v4991_v10, %v5097_v61 }
 0x5ce   : > { %v2877_v29 = vpack.c.bf16 %v2750_v60, %v2749_v41  ;;  %v2769_v51 = vmax.f32 %v2415_v40, 0.0  ;;  %v5486_v41 = vld [vmem:[#allocation15_spill] sm:$0xff]  ;;  %v5104_v60 = vpop.permute.xlu0 %2169 }
 0x5cf   : > { %v2418_v10 = vadd.f32 %v5016_v4, %v5104_v60 }
 0x5d0   : > { %2941 = vst [vmem:[%s5067_s13] sm:$0xff] %v2877_v29  ;;  %2577 = vmatpush.bf16.msra.mxu3 %v2079_v5  ;;  %2666 = vmatpush.bf16.msrb.mxu0 %v2080_v59  ;;  %v5112_v20 = vpop.permute.xlu2 %2174 }
 0x5d1   : > { %v2493_v7 = vpop.f32.mrf.mxu2  ;;  %v2773_v5 = vmax.f32 %v2418_v10, 0.0 }
 0x5d2   : > { %v2494_v6 = vadd.f32 %v2493_v7, %v5063_v21  ;;  %v2420_v7 = vadd.f32 %v5044_v38, %v5112_v20 }
 0x5d4   : > { %v2754_v14 = vmax.f32 %v2494_v6, 0.0  ;;  %2578 = vmatpush.bf16.msra.mxu3 %v2075_v16  ;;  %2667 = vmatpush.bf16.msrb.mxu0 %v2076_v9  ;;  %v2427_v39 = vpop.f32.mrf.mxu1  ;;  %v2777_v9 = vmax.f32 %v2420_v7, 0.0 }
 0x5d6   : > { %v2879_v23 = vpack.c.bf16 %v2754_v14, %v2753_v52  ;;  %2535 = vmatmul.bf16.gmra.mxu2 %v4931_v17  ;;  %v5488_v14 = vld [vmem:[#allocation16_spill] sm:$0xff]  ;;  %v5127_v55 = vpop.permute.xlu0 %2184 }
 0x5d7   : > { %2579 = vmatmul.bf16.vlgmr.msra.gmra.mxu3 %v4736_v0  ;;  %2668 = vmatmul.bf16.vlgmr.msrb.gmra.mxu0 %v4736_v0  ;;  %v2425_v19 = vadd.f32 %v2424_v63, %v5127_v55 }
 0x5d8   : > { %2943 = vst [vmem:[%s5067_s13 + $0x10] sm:$0xff] %v2879_v23  ;;  %v5119_v23 = vpop.permute.xlu1 %2179  ;;  %v5133_v37 = vpop.permute.xlu2 %2189 }
 0x5d9   : > { %v2496_v44 = vpop.f32.mrf.mxu2  ;;  %v2423_v47 = vadd.f32 %v5074_v58, %v5119_v23 }
 0x5da   : > { %v2497_v56 = vadd.f32 %v2496_v44, %v5072_v32 }
 0x5dc   : > { %v2758_v48 = vmax.f32 %v2497_v56, 0.0  ;;  %v2429_v24 = vpop.f32.mrf.mxu1 }
 0x5de   : > { %v2881_v1 = vpack.c.bf16 %v2758_v48, %v2757_v11  ;;  %v2781_v11 = vmax.f32 %v2423_v47, 0.0  ;;  %v5146_v10 = vpop.permute.xlu0 %2199 }
 0x5e0   : > { %2945 = vst [vmem:[%s5067_s13 + $0x20] sm:$0xff] %v2881_v1 }
 0x5e1   : > { %v2498_v30 = vpop.f32.mrf.mxu2 }
 0x5e2   : > { %v2499_v0 = vadd.f32 %v2498_v30, %v5082_v34 }
 0x5e4   : > { %v2762_v26 = vmax.f32 %v2499_v0, 0.0  ;;  %v2432_v12 = vpop.f32.mrf.mxu1 }
 0x5e6   : > { %v2883_v57 = vpack.c.bf16 %v2762_v26, %v2761_v49  ;;  %2540 = vmatmul.bf16.gmra.mxu2 %v5483_v25  ;;  %v2785_v26 = vmax.f32 %v2425_v19, 0.0 }
 0x5e7   : > { %2584 = vmatmul.bf16.gmra.mxu3 %v5484_v54  ;;  %2673 = vmatmul.bf16.gmra.mxu0 %v5484_v54  ;;  %v5490_v54 = vld [vmem:[#allocation19_spill] sm:$0xff] }
 0x5e8   : > { %2947 = vst [vmem:[%s5067_s13 + $0x30] sm:$0xff] %v2883_v57 }
 0x5e9   : > { %v2501_v13 = vpop.f32.mrf.mxu2 }
 0x5ea   : > { %v2502_v46 = vadd.f32 %v2501_v13, %v5089_v62  ;;  %v2428_v13 = vadd.f32 %v2427_v39, %v5133_v37 }
 0x5ec   : > { %v2766_v28 = vmax.f32 %v2502_v46, 0.0  ;;  %v2434_v38 = vpop.f32.mrf.mxu1 }
 0x5ee   : > { %v2885_v33 = vpack.c.bf16 %v2766_v28, %v2765_v3  ;;  %v2789_v3 = vmax.f32 %v2428_v13, 0.0 }
 0x5f0   : > { %2949 = vst [vmem:[%s5067_s13 + $0x40] sm:$0xff] %v2885_v33 }
 0x5f1   : > { %v2503_v35 = vpop.f32.mrf.mxu2 }
 0x5f2   : > { %v2504_v42 = vadd.f32 %v2503_v35, %v5097_v61  ;;  %v5140_v35 = vpop.permute.xlu1 %2194 }
 0x5f4   : > { %v2770_v18 = vmax.f32 %v2504_v42, 0.0  ;;  %v2437_v49 = vpop.f32.mrf.mxu1  ;;  %v2430_v42 = vadd.f32 %v2429_v24, %v5140_v35 }
 0x5f6   : > { %v2887_v45 = vpack.c.bf16 %v2770_v18, %v2769_v51  ;;  %2545 = vmatmul.bf16.gmra.mxu2 %v5486_v41 }
 0x5f7   : > { %2589 = vmatmul.bf16.gmra.mxu3 %v5487_v2  ;;  %2678 = vmatmul.bf16.gmra.mxu0 %v5487_v2 }
 0x5f8   : > { %2951 = vst [vmem:[%s5067_s13 + $0x50] sm:$0xff] %v2887_v45  ;;  %v2793_v45 = vmax.f32 %v2430_v42, 0.0 }
 0x5f9   : > { %v2506_v27 = vpop.f32.mrf.mxu2 }
 0x5fa   : > { %v2507_v29 = vadd.f32 %v2506_v27, %v5104_v60 }
 0x5fc   : > { %v2774_v59 = vmax.f32 %v2507_v29, 0.0  ;;  %v2439_v33 = vpop.f32.mrf.mxu1  ;;  %v5492_v29 = vld [vmem:[#allocation9_spill] sm:$0xff] }
 0x5fe   : > { %v2889_v15 = vpack.c.bf16 %v2774_v59, %v2773_v5  ;;  %v2433_v5 = vadd.f32 %v2432_v12, %v5146_v10 }
 0x600   : > { %2953 = vst [vmem:[%s5067_s13 + $0x60] sm:$0xff] %v2889_v15  ;;  %v2797_v15 = vmax.f32 %v2433_v5, 0.0 }
 0x601   : > { %v2508_v6 = vpop.f32.mrf.mxu2 }
 0x602   : > { %v2509_v16 = vadd.f32 %v2508_v6, %v5112_v20 }
 0x604   : > { %v2778_v4 = vmax.f32 %v2509_v16, 0.0  ;;  %v2442_v27 = vpop.f32.mrf.mxu1  ;;  %v5153_v16 = vpop.permute.xlu2 %2204 }
 0x606   : > { %v2891_v52 = vpack.c.bf16 %v2778_v4, %v2777_v9  ;;  %2550 = vmatmul.bf16.gmra.mxu2 %v5488_v14  ;;  %v2435_v9 = vadd.f32 %v2434_v38, %v5153_v16 }
 0x607   : > { %2594 = vmatmul.bf16.gmra.mxu3 %v5489_v50  ;;  %2683 = vmatmul.bf16.gmra.mxu0 %v5489_v50 }
 0x608   : > { %2955 = vst [vmem:[%s5067_s13 + $0x70] sm:$0xff] %v2891_v52  ;;  %v2801_v47 = vmax.f32 %v2435_v9, 0.0 }
 0x609   : > { %v2511_v44 = vpop.f32.mrf.mxu2 }
 0x60a   : > { %v2512_v56 = vadd.f32 %v2511_v44, %v5119_v23 }
 0x60c   : > { %v2782_v48 = vmax.f32 %v2512_v56, 0.0  ;;  %v2444_v4 = vpop.f32.mrf.mxu1  ;;  %v5159_v56 = vpop.permute.xlu1 %2209 }
 0x60e   : > { %v2893_v1 = vpack.c.bf16 %v2782_v48, %v2781_v11  ;;  %v5493_v11 = vld [vmem:[#allocation10_spill] sm:$0xff]  ;;  %v2438_v48 = vadd.f32 %v2437_v49, %v5159_v56 }
 0x610   : > { %2957 = vst [vmem:[%s5067_s13 + $0x80] sm:$0xff] %v2893_v1 }
 0x611   : > { %v2513_v30 = vpop.f32.mrf.mxu2 }
 0x612   : > { %v2514_v0 = vadd.f32 %v2513_v30, %v5127_v55  ;;  %v2805_v30 = vmax.f32 %v2438_v48, 0.0 }
 0x614   : > { %v2786_v58 = vmax.f32 %v2514_v0, 0.0  ;;  %v2447_v19 = vpop.f32.mrf.mxu1 }
 0x616   : > { %v2895_v57 = vpack.c.bf16 %v2786_v58, %v2785_v26  ;;  %2555 = vmatmul.bf16.gmra.mxu2 %v5490_v54  ;;  %v5166_v58 = vpop.permute.xlu0 %2214 }
 0x617   : > { %2599 = vmatmul.bf16.gmra.mxu3 %v5491_v22  ;;  %2688 = vmatmul.bf16.gmra.mxu0 %v5491_v22 }
 0x618   : > { %2959 = vst [vmem:[%s5067_s13 + $0x90] sm:$0xff] %v2895_v57  ;;  %v2440_v57 = vadd.f32 %v2439_v33, %v5166_v58 }
 0x619   : > { %v2516_v63 = vpop.f32.mrf.mxu2 }
 0x61a   : > { %v2517_v46 = vadd.f32 %v2516_v63, %v5133_v37  ;;  %v2809_v63 = vmax.f32 %v2440_v57, 0.0 }
 0x61c   : > { %v2790_v28 = vmax.f32 %v2517_v46, 0.0  ;;  %v2449_v49 = vpop.f32.mrf.mxu1 }
 0x61e   : > { %v2897_v40 = vpack.c.bf16 %v2790_v28, %v2789_v3  ;;  %v5171_v28 = vpop.permute.xlu2 %2219 }
 0x620   : > { %2961 = vst [vmem:[%s5067_s13 + $0xa0] sm:$0xff] %v2897_v40  ;;  %v2443_v40 = vadd.f32 %v2442_v27, %v5171_v28 }
 0x621   : > { %v2518_v51 = vpop.f32.mrf.mxu2 }
 0x622   : > { %v2519_v18 = vadd.f32 %v2518_v51, %v5140_v35  ;;  %v2813_v51 = vmax.f32 %v2443_v40, 0.0 }
 0x624   : > { %v2794_v2 = vmax.f32 %v2519_v18, 0.0 }
 0x626   : > { %v2899_v39 = vpack.c.bf16 %v2794_v2, %v2793_v45  ;;  %2560 = vmatmul.bf16.gmra.mxu2 %v4998_v43  ;;  %v5178_v2 = vpop.permute.xlu1 %2224 }
 0x627   : > { %2604 = vmatmul.bf16.gmra.mxu3 %v5492_v29  ;;  %2693 = vmatmul.bf16.gmra.mxu0 %v5492_v29  ;;  %v2445_v29 = vadd.f32 %v2444_v4, %v5178_v2 }
 0x628   : > { %2963 = vst [vmem:[%s5067_s13 + $0xb0] sm:$0xff] %v2899_v39  ;;  %v2452_v39 = vpop.f32.mrf.mxu1 }
 0x629   : > { %v2521_v24 = vpop.f32.mrf.mxu2 }
 0x62a   : > { %v2522_v59 = vadd.f32 %v2521_v24, %v5146_v10 }
 0x62c   : > { %v2798_v7 = vmax.f32 %v2522_v59, 0.0 }
 0x62e   : > { %v2901_v6 = vpack.c.bf16 %v2798_v7, %v2797_v15  ;;  %v5183_v7 = vpop.permute.xlu0 %2229 }
 0x630   : > { %2965 = vst [vmem:[%s5067_s13 + $0xc0] sm:$0xff] %v2901_v6  ;;  %v2448_v6 = vadd.f32 %v2447_v19, %v5183_v7  ;;  %v2454_v9 = vpop.f32.mrf.mxu1 }
 0x631   : > { %v2523_v52 = vpop.f32.mrf.mxu2 }
 0x632   : > { %v2524_v50 = vadd.f32 %v2523_v52, %v5153_v16 }
 0x634   : > { %v2802_v44 = vmax.f32 %v2524_v50, 0.0 }
 0x636   : > { %v2903_v12 = vpack.c.bf16 %v2802_v44, %v2801_v47  ;;  %2565 = vmatmul.bf16.gmra.mxu2 %v5029_v53 }
 0x637   : > { %2609 = vmatmul.bf16.gmra.mxu3 %v5493_v11  ;;  %2698 = vmatmul.bf16.gmra.mxu0 %v5493_v11 }
 0x638   : > { %2967 = vst [vmem:[%s5067_s13 + $0xd0] sm:$0xff] %v2903_v12  ;;  %v2821_v12 = vmax.f32 %v2448_v6, 0.0 }
 0x639   : > { %v2526_v38 = vpop.f32.mrf.mxu2 }
 0x63a   : > { %v2527_v1 = vadd.f32 %v2526_v38, %v5159_v56 }
 0x63c   : > { %v2806_v0 = vmax.f32 %v2527_v1, 0.0 }
 0x63e   : > { %v2905_v26 = vpack.c.bf16 %v2806_v0, %v2805_v30  ;;  %v5192_v30 = vpop.permute.xlu2 %2234 }
 0x63f   : > { %v2450_v0 = vadd.f32 %v2449_v49, %v5192_v30  ;;  %v5200_v49 = vpop.permute.xlu1 %2239 }
 0x640   : > { %2969 = vst [vmem:[%s5067_s13 + $0xe0] sm:$0xff] %v2905_v26 }
 0x641   : > { %v2528_v22 = vpop.f32.mrf.mxu2 }
 0x642   : > { %v2529_v13 = vadd.f32 %v2528_v22, %v5166_v58 }
 0x644   : > { %v2810_v46 = vmax.f32 %v2529_v13, 0.0  ;;  %v2457_v13 = vpop.f32.mrf.mxu1 }
 0x646   : > { %v2907_v3 = vpack.c.bf16 %v2810_v46, %v2809_v63  ;;  %v2825_v46 = vmax.f32 %v2450_v0, 0.0 }
 0x647   : > { %2614 = vmatmul.bf16.gmra.mxu3 %v4901_v36  ;;  %2703 = vmatmul.bf16.gmra.mxu0 %v4901_v36  ;;  %v2817_v36 = vmax.f32 %v2445_v29, 0.0 }
 0x648   : > { %2971 = vst [vmem:[%s5067_s13 + $0xf0] sm:$0xff] %v2907_v3 }
 0x649   : > { %v2531_v42 = vpop.f32.mrf.mxu2 }
 0x64a   : > { %v2532_v33 = vadd.f32 %v2531_v42, %v5171_v28 }
 0x64c   : > { %v2814_v18 = vmax.f32 %v2532_v33, 0.0  ;;  %v2459_v6 = vpop.f32.mrf.mxu1 }
 0x64e   : > { %v2909_v45 = vpack.c.bf16 %v2814_v18, %v2813_v51 }
 0x650   : > { %2973 = vst [vmem:[%s5067_s13 + $0x100] sm:$0xff] %v2909_v45  ;;  %v2453_v45 = vadd.f32 %v2452_v39, %v5200_v49  ;;  %v5210_v39 = vpop.permute.xlu0 %2244 }
 0x651   : > { %v2533_v5 = vpop.f32.mrf.mxu2 }
 0x652   : > { %v2534_v24 = vadd.f32 %v2533_v5, %v5178_v2 }
 0x654   : > { %v2818_v59 = vmax.f32 %v2534_v24, 0.0  ;;  %v2669_v27 = vpop.f32.mrf.mxu0 }
 0x655   : > { %v2670_v4 = vadd.f32 %v2669_v27, %v5042_v31 }
 0x656   : > { %v2911_v15 = vpack.c.bf16 %v2818_v59, %v2817_v36  ;;  %v2829_v59 = vmax.f32 %v2453_v45, 0.0 }
 0x657   : > { %2619 = vmatmul.bf16.gmra.mxu3 %v4916_v8  ;;  %2708 = vmatmul.bf16.gmra.mxu0 %v4916_v8  ;;  %v2752_v38 = vmax.f32 %v2670_v4, 0.0 }
 0x658   : > { %2975 = vst [vmem:[%s5067_s13 + $0x110] sm:$0xff] %v2911_v15 }
 0x659   : > { %v2536_v52 = vpop.f32.mrf.mxu2 }
 0x65a   : > { %v2537_v50 = vadd.f32 %v2536_v52, %v5183_v7  ;;  %v2580_v47 = vpop.f32.mrf.mxu3 }
 0x65b   : > { %v2581_v44 = vadd.f32 %v2580_v47, %v5042_v31  ;;  %v2455_v47 = vadd.f32 %v2454_v9, %v5210_v39  ;;  %v2462_v9 = vpop.f32.mrf.mxu1 }
 0x65c   : > { %v2822_v11 = vmax.f32 %v2537_v50, 0.0  ;;  %v2671_v48 = vpop.f32.mrf.mxu0 }
 0x65d   : > { %v2751_v1 = vmax.f32 %v2581_v44, 0.0  ;;  %v2672_v26 = vadd.f32 %v2671_v48, %v5063_v21 }
 0x65e   : > { %v2913_v8 = vpack.c.bf16 %v2822_v11, %v2821_v12 }
 0x65f   : > { %v2878_v19 = vpack.c.bf16 %v2752_v38, %v2751_v1  ;;  %v2756_v42 = vmax.f32 %v2672_v26, 0.0  ;;  %v2833_v38 = vmax.f32 %v2455_v47, 0.0 }
 0x660   : > { %2977 = vst [vmem:[%s5067_s13 + $0x120] sm:$0xff] %v2913_v8 }
 0x661   : > { %2942 = vst [vmem:[%s5067_s13 + $0x8] sm:$0xff] %v2878_v19  ;;  %v2538_v57 = vpop.f32.mrf.mxu2 }
 0x662   : > { %v2539_v22 = vadd.f32 %v2538_v57, %v5192_v30  ;;  %v2582_v31 = vpop.f32.mrf.mxu3  ;;  %v5218_v57 = vpop.permute.xlu2 %2249 }
 0x663   : > { %v2583_v63 = vadd.f32 %v2582_v31, %v5063_v21  ;;  %v2458_v31 = vadd.f32 %v2457_v13, %v5218_v57 }
 0x664   : > { %v2826_v3 = vmax.f32 %v2539_v22, 0.0  ;;  %v2674_v40 = vpop.f32.mrf.mxu0 }
 0x665   : > { %v2755_v33 = vmax.f32 %v2583_v63, 0.0  ;;  %v2675_v21 = vadd.f32 %v2674_v40, %v5072_v32 }
 0x666   : > { %v2915_v51 = vpack.c.bf16 %v2826_v3, %v2825_v46 }
 0x667   : > { %v2880_v18 = vpack.c.bf16 %v2756_v42, %v2755_v33  ;;  %2624 = vmatmul.bf16.gmra.mxu3 %v4931_v17  ;;  %2713 = vmatmul.bf16.gmra.mxu0 %v4931_v17  ;;  %v2760_v4 = vmax.f32 %v2675_v21, 0.0  ;;  %v2837_v42 = vmax.f32 %v2458_v31, 0.0  ;;  %v5228_v21 = vpop.permute.xlu1 %2254 }
 0x668   : > { %2979 = vst [vmem:[%s5067_s13 + $0x130] sm:$0xff] %v2915_v51 }
 0x669   : > { %2944 = vst [vmem:[%s5067_s13 + $0x18] sm:$0xff] %v2880_v18  ;;  %v2541_v29 = vpop.f32.mrf.mxu2 }
 0x66a   : > { %v2542_v5 = vadd.f32 %v2541_v29, %v5200_v49  ;;  %v2585_v24 = vpop.f32.mrf.mxu3  ;;  %v2460_v29 = vadd.f32 %v2459_v6, %v5228_v21  ;;  %v5236_v6 = vpop.permute.xlu0 %2259 }
 0x66b   : > { %v2586_v36 = vadd.f32 %v2585_v24, %v5072_v32 }
 0x66c   : > { %v2830_v27 = vmax.f32 %v2542_v5, 0.0  ;;  %v2676_v15 = vpop.f32.mrf.mxu0  ;;  %v2464_v5 = vpop.f32.mrf.mxu1 }
 0x66d   : > { %v2759_v17 = vmax.f32 %v2586_v36, 0.0  ;;  %v2677_v44 = vadd.f32 %v2676_v15, %v5082_v34  ;;  %v2841_v15 = vmax.f32 %v2460_v29, 0.0 }
 0x66e   : > { %v2917_v52 = vpack.c.bf16 %v2830_v27, %v2829_v59 }
 0x66f   : > { %v2882_v50 = vpack.c.bf16 %v2760_v4, %v2759_v17  ;;  %v2764_v19 = vmax.f32 %v2677_v44, 0.0  ;;  %v5254_v29 = vpop.permute.xlu1 %2269 }
 0x670   : > { %2981 = vst [vmem:[%s5067_s13 + $0x140] sm:$0xff] %v2917_v52 }
 0x671   : > { %2946 = vst [vmem:[%s5067_s13 + $0x28] sm:$0xff] %v2882_v50  ;;  %v2543_v12 = vpop.f32.mrf.mxu2 }
 0x672   : > { %v2544_v32 = vadd.f32 %v2543_v12, %v5210_v39  ;;  %v2587_v11 = vpop.f32.mrf.mxu3  ;;  %v2463_v12 = vadd.f32 %v2462_v9, %v5236_v6  ;;  %v5246_v9 = vpop.permute.xlu2 %2264 }
 0x673   : > { %v2588_v48 = vadd.f32 %v2587_v11, %v5082_v34 }
 0x674   : > { %v2834_v1 = vmax.f32 %v2544_v32, 0.0  ;;  %v2679_v8 = vpop.f32.mrf.mxu0 }
 0x675   : > { %v2763_v0 = vmax.f32 %v2588_v48, 0.0  ;;  %v2680_v34 = vadd.f32 %v2679_v8, %v5089_v62  ;;  %v2845_v8 = vmax.f32 %v2463_v12, 0.0 }
 0x676   : > { %v2919_v26 = vpack.c.bf16 %v2834_v1, %v2833_v38  ;;  %v2467_v38 = vpop.f32.mrf.mxu1 }
 0x677   : > { %v2884_v22 = vpack.c.bf16 %v2764_v19, %v2763_v0  ;;  %2629 = vmatmul.bf16.gmra.mxu3 %v5483_v25  ;;  %2718 = vmatmul.bf16.gmra.mxu0 %v5483_v25  ;;  %v2768_v18 = vmax.f32 %v2680_v34, 0.0  ;;  %v2465_v34 = vadd.f32 %v2464_v5, %v5246_v9 }
 0x678   : > { %2983 = vst [vmem:[%s5067_s13 + $0x150] sm:$0xff] %v2919_v26 }
 0x679   : > { %2948 = vst [vmem:[%s5067_s13 + $0x38] sm:$0xff] %v2884_v22  ;;  %v2546_v63 = vpop.f32.mrf.mxu2 }
 0x67a   : > { %v2547_v46 = vadd.f32 %v2546_v63, %v5218_v57  ;;  %v2590_v3 = vpop.f32.mrf.mxu3 }
 0x67b   : > { %v2591_v40 = vadd.f32 %v2590_v3, %v5089_v62 }
 0x67c   : > { %v2838_v33 = vmax.f32 %v2547_v46, 0.0  ;;  %v2681_v51 = vpop.f32.mrf.mxu0 }
 0x67d   : > { %v2767_v45 = vmax.f32 %v2591_v40, 0.0  ;;  %v2682_v24 = vadd.f32 %v2681_v51, %v5097_v61 }
 0x67e   : > { %v2921_v25 = vpack.c.bf16 %v2838_v33, %v2837_v42  ;;  %v2849_v42 = vmax.f32 %v2465_v34, 0.0 }
 0x67f   : > { %v2886_v13 = vpack.c.bf16 %v2768_v18, %v2767_v45  ;;  %v2772_v52 = vmax.f32 %v2682_v24, 0.0  ;;  %v2469_v18 = vpop.f32.mrf.mxu1  ;;  %v2468_v24 = vadd.f32 %v2467_v38, %v5254_v29 }
 0x680   : > { %2985 = vst [vmem:[%s5067_s13 + $0x160] sm:$0xff] %v2921_v25 }
 0x681   : > { %2950 = vst [vmem:[%s5067_s13 + $0x48] sm:$0xff] %v2886_v13  ;;  %v2548_v36 = vpop.f32.mrf.mxu2 }
 0x682   : > { %v2549_v62 = vadd.f32 %v2548_v36, %v5228_v21  ;;  %v2592_v59 = vpop.f32.mrf.mxu3 }
 0x683   : > { %v2593_v27 = vadd.f32 %v2592_v59, %v5097_v61 }
 0x684   : > { %v2842_v4 = vmax.f32 %v2549_v62, 0.0  ;;  %v2684_v17 = vpop.f32.mrf.mxu0 }
 0x685   : > { %v2771_v50 = vmax.f32 %v2593_v27, 0.0  ;;  %v2685_v61 = vadd.f32 %v2684_v17, %v5104_v60 }
 0x686   : > { %v2923_v47 = vpack.c.bf16 %v2842_v4, %v2841_v15  ;;  %v2853_v15 = vmax.f32 %v2468_v24, 0.0 }
 0x687   : > { %v2888_v44 = vpack.c.bf16 %v2772_v52, %v2771_v50  ;;  %2634 = vmatmul.bf16.gmra.mxu3 %v5486_v41  ;;  %2723 = vmatmul.bf16.gmra.mxu0 %v5486_v41  ;;  %v2776_v26 = vmax.f32 %v2685_v61, 0.0 }
 0x688   : > { %2987 = vst [vmem:[%s5067_s13 + $0x170] sm:$0xff] %v2923_v47  ;;  %v5264_v47 = vpop.permute.xlu0 %2274 }
 0x689   : > { %2952 = vst [vmem:[%s5067_s13 + $0x58] sm:$0xff] %v2888_v44  ;;  %v2551_v32 = vpop.f32.mrf.mxu2  ;;  %v2472_v44 = vpop.f32.mrf.mxu1  ;;  %v2470_v61 = vadd.f32 %v2469_v18, %v5264_v47 }
 0x68a   : > { %v2552_v11 = vadd.f32 %v2551_v32, %v5236_v6  ;;  %v2595_v48 = vpop.f32.mrf.mxu3 }
 0x68b   : > { %v2596_v1 = vadd.f32 %v2595_v48, %v5104_v60 }
 0x68c   : > { %v2846_v19 = vmax.f32 %v2552_v11, 0.0  ;;  %v2686_v0 = vpop.f32.mrf.mxu0 }
 0x68d   : > { %v2775_v41 = vmax.f32 %v2596_v1, 0.0  ;;  %v2687_v63 = vadd.f32 %v2686_v0, %v5112_v20  ;;  %v2857_v1 = vmax.f32 %v2470_v61, 0.0 }
 0x68e   : > { %v2925_v22 = vpack.c.bf16 %v2846_v19, %v2845_v8 }
 0x68f   : > { %v2890_v31 = vpack.c.bf16 %v2776_v26, %v2775_v41  ;;  %v2780_v45 = vmax.f32 %v2687_v63, 0.0 }
 0x690   : > { %2989 = vst [vmem:[%s5067_s13 + $0x180] sm:$0xff] %v2925_v22  ;;  %v5272_v22 = vpop.permute.xlu2 %2279 }
 0x691   : > { %2954 = vst [vmem:[%s5067_s13 + $0x68] sm:$0xff] %v2890_v31  ;;  %v2553_v46 = vpop.f32.mrf.mxu2  ;;  %v2473_v34 = vadd.f32 %v2472_v44, %v5272_v22  ;;  %v2474_v63 = vpop.f32.mrf.mxu1 }
 0x692   : > { %v2554_v3 = vadd.f32 %v2553_v46, %v5246_v9  ;;  %v2597_v60 = vpop.f32.mrf.mxu3 }
 0x693   : > { %v2598_v40 = vadd.f32 %v2597_v60, %v5112_v20 }
 0x694   : > { %v2850_v33 = vmax.f32 %v2554_v3, 0.0  ;;  %v2689_v51 = vpop.f32.mrf.mxu0 }
 0x695   : > { %v2779_v25 = vmax.f32 %v2598_v40, 0.0  ;;  %v2690_v20 = vadd.f32 %v2689_v51, %v5119_v23 }
 0x696   : > { %v2927_v13 = vpack.c.bf16 %v2850_v33, %v2849_v42  ;;  %v2861_v42 = vmax.f32 %v2473_v34, 0.0 }
 0x697   : > { %v2892_v5 = vpack.c.bf16 %v2780_v45, %v2779_v25  ;;  %2639 = vmatmul.bf16.gmra.mxu3 %v5488_v14  ;;  %2728 = vmatmul.bf16.gmra.mxu0 %v5488_v14  ;;  %v2784_v52 = vmax.f32 %v2690_v20, 0.0  ;;  %v5282_v25 = vpop.permute.xlu1 %2284 }
 0x698   : > { %2991 = vst [vmem:[%s5067_s13 + $0x190] sm:$0xff] %v2927_v13 }
 0x699   : > { %2956 = vst [vmem:[%s5067_s13 + $0x78] sm:$0xff] %v2892_v5  ;;  %v2556_v36 = vpop.f32.mrf.mxu2  ;;  %v2475_v5 = vadd.f32 %v2474_v63, %v5282_v25 }
 0x69a   : > { %v2557_v62 = vadd.f32 %v2556_v36, %v5254_v29  ;;  %v2600_v59 = vpop.f32.mrf.mxu3 }
 0x69b   : > { %v2601_v27 = vadd.f32 %v2600_v59, %v5119_v23 }
 0x69c   : > { %v2854_v4 = vmax.f32 %v2557_v62, 0.0  ;;  %v2691_v17 = vpop.f32.mrf.mxu0  ;;  %v2477_v62 = vpop.f32.mrf.mxu1 }
 0x69d   : > { %v2783_v50 = vmax.f32 %v2601_v27, 0.0  ;;  %v2692_v32 = vadd.f32 %v2691_v17, %v5127_v55  ;;  %v2865_v27 = vmax.f32 %v2475_v5, 0.0 }
 0x69e   : > { %v2929_v14 = vpack.c.bf16 %v2854_v4, %v2853_v15 }
 0x69f   : > { %v2894_v12 = vpack.c.bf16 %v2784_v52, %v2783_v50  ;;  %v2788_v0 = vmax.f32 %v2692_v32, 0.0 }
 0x6a0   : > { %2993 = vst [vmem:[%s5067_s13 + $0x1a0] sm:$0xff] %v2929_v14  ;;  %v5290_v14 = vpop.permute.xlu0 %2289 }
 0x6a1   : > { %2958 = vst [vmem:[%s5067_s13 + $0x88] sm:$0xff] %v2894_v12  ;;  %v2558_v11 = vpop.f32.mrf.mxu2  ;;  %v2478_v12 = vadd.f32 %v2477_v62, %v5290_v14 }
 0x6a2   : > { %v2559_v23 = vadd.f32 %v2558_v11, %v5264_v47  ;;  %v2602_v48 = vpop.f32.mrf.mxu3 }
 0x6a3   : > { %v2603_v38 = vadd.f32 %v2602_v48, %v5127_v55  ;;  %v2869_v48 = vmax.f32 %v2478_v12, 0.0 }
 0x6a4   : > { %v2858_v8 = vmax.f32 %v2559_v23, 0.0  ;;  %v2694_v19 = vpop.f32.mrf.mxu0 }
 0x6a5   : > { %v2787_v26 = vmax.f32 %v2603_v38, 0.0  ;;  %v2695_v55 = vadd.f32 %v2694_v19, %v5133_v37 }
 0x6a6   : > { %v2931_v41 = vpack.c.bf16 %v2858_v8, %v2857_v1  ;;  %v2479_v8 = vpop.f32.mrf.mxu1 }
 0x6a7   : > { %v2896_v31 = vpack.c.bf16 %v2788_v0, %v2787_v26  ;;  %2644 = vmatmul.bf16.gmra.mxu3 %v5490_v54  ;;  %2733 = vmatmul.bf16.gmra.mxu0 %v5490_v54  ;;  %v2792_v18 = vmax.f32 %v2695_v55, 0.0  ;;  %v5300_v26 = vpop.permute.xlu2 %2294 }
 0x6a8   : > { %2995 = vst [vmem:[%s5067_s13 + $0x1b0] sm:$0xff] %v2931_v41 }
 0x6a9   : > { %2960 = vst [vmem:[%s5067_s13 + $0x98] sm:$0xff] %v2896_v31  ;;  %v2561_v46 = vpop.f32.mrf.mxu2  ;;  %v2480_v31 = vadd.f32 %v2479_v8, %v5300_v26 }
 0x6aa   : > { %v2562_v3 = vadd.f32 %v2561_v46, %v5272_v22  ;;  %v2605_v60 = vpop.f32.mrf.mxu3 }
 0x6ab   : > { %v2606_v40 = vadd.f32 %v2605_v60, %v5133_v37 }
 0x6ac   : > { %v2862_v33 = vmax.f32 %v2562_v3, 0.0  ;;  %v2696_v51 = vpop.f32.mrf.mxu0  ;;  %v2873_v3 = vmax.f32 %v2480_v31, 0.0 }
 0x6ad   : > { %v2791_v54 = vmax.f32 %v2606_v40, 0.0  ;;  %v2697_v24 = vadd.f32 %v2696_v51, %v5140_v35 }
 0x6ae   : > { %v2933_v45 = vpack.c.bf16 %v2862_v33, %v2861_v42 }
 0x6af   : > { %v2898_v13 = vpack.c.bf16 %v2792_v18, %v2791_v54  ;;  %v2796_v17 = vmax.f32 %v2697_v24, 0.0 }
 0x6b0   : > { %2997 = vst [vmem:[%s5067_s13 + $0x1c0] sm:$0xff] %v2933_v45 }
 0x6b1   : > { %2962 = vst [vmem:[%s5067_s13 + $0xa8] sm:$0xff] %v2898_v13  ;;  %v2563_v20 = vpop.f32.mrf.mxu2 }
 0x6b2   : > { %v2564_v36 = vadd.f32 %v2563_v20, %v5282_v25  ;;  %v2607_v37 = vpop.f32.mrf.mxu3 }
 0x6b3   : > { %v2608_v59 = vadd.f32 %v2607_v37, %v5140_v35 }
 0x6b4   : > { %v2866_v15 = vmax.f32 %v2564_v36, 0.0  ;;  %v2699_v4 = vpop.f32.mrf.mxu0 }
 0x6b5   : > { %v2795_v52 = vmax.f32 %v2608_v59, 0.0  ;;  %v2700_v35 = vadd.f32 %v2699_v4, %v5146_v10 }
 0x6b6   : > { %v2935_v50 = vpack.c.bf16 %v2866_v15, %v2865_v27 }
 0x6b7   : > { %v2900_v44 = vpack.c.bf16 %v2796_v17, %v2795_v52  ;;  %2649 = vmatmul.bf16.gmra.mxu3 %v4998_v43  ;;  %2738 = vmatmul.bf16.gmra.mxu0 %v4998_v43  ;;  %v2800_v19 = vmax.f32 %v2700_v35, 0.0 }
 0x6b8   : > { %2999 = vst [vmem:[%s5067_s13 + $0x1d0] sm:$0xff] %v2935_v50 }
 0x6b9   : > { %2964 = vst [vmem:[%s5067_s13 + $0xb8] sm:$0xff] %v2900_v44  ;;  %v2566_v61 = vpop.f32.mrf.mxu2 }
 0x6ba   : > { %v2567_v32 = vadd.f32 %v2566_v61, %v5290_v14  ;;  %v2610_v11 = vpop.f32.mrf.mxu3 }
 0x6bb   : > { %v2611_v23 = vadd.f32 %v2610_v11, %v5146_v10 }
 0x6bc   : > { %v2870_v38 = vmax.f32 %v2567_v32, 0.0  ;;  %v2701_v1 = vpop.f32.mrf.mxu0 }
 0x6bd   : > { %v2799_v43 = vmax.f32 %v2611_v23, 0.0  ;;  %v2702_v34 = vadd.f32 %v2701_v1, %v5153_v16 }
 0x6be   : > { %v2937_v0 = vpack.c.bf16 %v2870_v38, %v2869_v48 }
 0x6bf   : > { %v2902_v41 = vpack.c.bf16 %v2800_v19, %v2799_v43  ;;  %v2804_v42 = vmax.f32 %v2702_v34, 0.0 }
 0x6c0   : > { %3001 = vst [vmem:[%s5067_s13 + $0x1e0] sm:$0xff] %v2937_v0 }
 0x6c1   : > { %2966 = vst [vmem:[%s5067_s13 + $0xc8] sm:$0xff] %v2902_v41  ;;  %v2568_v63 = vpop.f32.mrf.mxu2 }
 0x6c2   : > { %v2569_v10 = vadd.f32 %v2568_v63, %v5300_v26  ;;  %v2612_v55 = vpop.f32.mrf.mxu3 }
 0x6c3   : > { %v2613_v46 = vadd.f32 %v2612_v55, %v5153_v16 }
 0x6c4   : > { %v2874_v60 = vmax.f32 %v2569_v10, 0.0  ;;  %v2704_v40 = vpop.f32.mrf.mxu0 }
 0x6c5   : > { %v2803_v33 = vmax.f32 %v2613_v46, 0.0  ;;  %v2705_v54 = vadd.f32 %v2704_v40, %v5159_v56 }
 0x6c6   : > { %v2939_v51 = vpack.c.bf16 %v2874_v60, %v2873_v3 }
 0x6c7   : > { %v2904_v18 = vpack.c.bf16 %v2804_v42, %v2803_v33  ;;  %2654 = vmatmul.bf16.gmra.mxu3 %v5029_v53  ;;  %2743 = vmatmul.bf16.gmra.mxu0 %v5029_v53  ;;  %v2808_v5 = vmax.f32 %v2705_v54, 0.0 }
 0x6c8   : > { %3003 = vst [vmem:[%s5067_s13 + $0x1f0] sm:$0xff] %v2939_v51 }
 0x6c9   : > { %2968 = vst [vmem:[%s5067_s13 + $0xd8] sm:$0xff] %v2904_v18 }
 0x6ca   : > { %v2615_v45 = vpop.f32.mrf.mxu3 }
 0x6cb   : > { %v2616_v16 = vadd.f32 %v2615_v45, %v5159_v56 }
 0x6cc   : > { %v2706_v13 = vpop.f32.mrf.mxu0 }
 0x6cd   : > { %v2807_v24 = vmax.f32 %v2616_v16, 0.0  ;;  %v2707_v36 = vadd.f32 %v2706_v13, %v5166_v58 }
 0x6cf   : > { %v2906_v20 = vpack.c.bf16 %v2808_v5, %v2807_v24  ;;  %v2812_v59 = vmax.f32 %v2707_v36, 0.0 }
 0x6d1   : > { %2970 = vst [vmem:[%s5067_s13 + $0xe8] sm:$0xff] %v2906_v20 }
 0x6d2   : > { %v2617_v37 = vpop.f32.mrf.mxu3 }
 0x6d3   : > { %v2618_v62 = vadd.f32 %v2617_v37, %v5166_v58 }
 0x6d4   : > { %v2709_v53 = vpop.f32.mrf.mxu0 }
 0x6d5   : > { %v2811_v27 = vmax.f32 %v2618_v62, 0.0  ;;  %v2710_v4 = vadd.f32 %v2709_v53, %v5171_v28 }
 0x6d7   : > { %v2908_v15 = vpack.c.bf16 %v2812_v59, %v2811_v27  ;;  %v2816_v50 = vmax.f32 %v2710_v4, 0.0 }
 0x6d9   : > { %2972 = vst [vmem:[%s5067_s13 + $0xf8] sm:$0xff] %v2908_v15 }
 0x6da   : > { %v2620_v56 = vpop.f32.mrf.mxu3 }
 0x6db   : > { %v2621_v17 = vadd.f32 %v2620_v56, %v5171_v28 }
 0x6dc   : > { %v2711_v52 = vpop.f32.mrf.mxu0 }
 0x6dd   : > { %v2815_v44 = vmax.f32 %v2621_v17, 0.0  ;;  %v2712_v35 = vadd.f32 %v2711_v52, %v5178_v2 }
 0x6df   : > { %v2910_v12 = vpack.c.bf16 %v2816_v50, %v2815_v44  ;;  %v2820_v11 = vmax.f32 %v2712_v35, 0.0 }
 0x6e1   : > { %2974 = vst [vmem:[%s5067_s13 + $0x108] sm:$0xff] %v2910_v12 }
 0x6e2   : > { %v2622_v58 = vpop.f32.mrf.mxu3 }
 0x6e3   : > { %v2623_v61 = vadd.f32 %v2622_v58, %v5178_v2 }
 0x6e4   : > { %v2714_v32 = vpop.f32.mrf.mxu0 }
 0x6e5   : > { %v2819_v23 = vmax.f32 %v2623_v61, 0.0  ;;  %v2715_v38 = vadd.f32 %v2714_v32, %v5183_v7 }
 0x6e7   : > { %v2912_v48 = vpack.c.bf16 %v2820_v11, %v2819_v23  ;;  %v2824_v19 = vmax.f32 %v2715_v38, 0.0 }
 0x6e9   : > { %2976 = vst [vmem:[%s5067_s13 + $0x118] sm:$0xff] %v2912_v48 }
 0x6ea   : > { %v2625_v28 = vpop.f32.mrf.mxu3 }
 0x6eb   : > { %v2626_v1 = vadd.f32 %v2625_v28, %v5183_v7 }
 0x6ec   : > { %v2716_v8 = vpop.f32.mrf.mxu0 }
 0x6ed   : > { %v2823_v43 = vmax.f32 %v2626_v1, 0.0  ;;  %v2717_v41 = vadd.f32 %v2716_v8, %v5192_v30 }
 0x6ef   : > { %v2914_v0 = vpack.c.bf16 %v2824_v19, %v2823_v43  ;;  %v2828_v63 = vmax.f32 %v2717_v41, 0.0 }
 0x6f1   : > { %2978 = vst [vmem:[%s5067_s13 + $0x128] sm:$0xff] %v2914_v0 }
 0x6f2   : > { %v2627_v2 = vpop.f32.mrf.mxu3 }
 0x6f3   : > { %v2628_v31 = vadd.f32 %v2627_v2, %v5192_v30 }
 0x6f4   : > { %v2719_v34 = vpop.f32.mrf.mxu0 }
 0x6f5   : > { %v2827_v10 = vmax.f32 %v2628_v31, 0.0  ;;  %v2720_v46 = vadd.f32 %v2719_v34, %v5200_v49 }
 0x6f7   : > { %v2916_v55 = vpack.c.bf16 %v2828_v63, %v2827_v10  ;;  %v2832_v40 = vmax.f32 %v2720_v46, 0.0 }
 0x6f9   : > { %2980 = vst [vmem:[%s5067_s13 + $0x138] sm:$0xff] %v2916_v55 }
 0x6fa   : > { %v2630_v7 = vpop.f32.mrf.mxu3 }
 0x6fb   : > { %v2631_v3 = vadd.f32 %v2630_v7, %v5200_v49 }
 0x6fc   : > { %v2721_v60 = vpop.f32.mrf.mxu0 }
 0x6fd   : > { %v2831_v42 = vmax.f32 %v2631_v3, 0.0  ;;  %v2722_v51 = vadd.f32 %v2721_v60, %v5210_v39 }
 0x6ff   : > { %v2918_v33 = vpack.c.bf16 %v2832_v40, %v2831_v42  ;;  %v2836_v45 = vmax.f32 %v2722_v51, 0.0 }
 0x701   : > { %2982 = vst [vmem:[%s5067_s13 + $0x148] sm:$0xff] %v2918_v33 }
 0x702   : > { %v2632_v30 = vpop.f32.mrf.mxu3 }
 0x703   : > { %v2633_v18 = vadd.f32 %v2632_v30, %v5210_v39 }
 0x704   : > { %v2724_v54 = vpop.f32.mrf.mxu0 }
 0x705   : > { %v2835_v16 = vmax.f32 %v2633_v18, 0.0  ;;  %v2725_v5 = vadd.f32 %v2724_v54, %v5218_v57 }
 0x707   : > { %v2920_v13 = vpack.c.bf16 %v2836_v45, %v2835_v16  ;;  %v2840_v36 = vmax.f32 %v2725_v5, 0.0 }
 0x709   : > { %2984 = vst [vmem:[%s5067_s13 + $0x158] sm:$0xff] %v2920_v13 }
 0x70a   : > { %v2635_v49 = vpop.f32.mrf.mxu3 }
 0x70b   : > { %v2636_v24 = vadd.f32 %v2635_v49, %v5218_v57 }
 0x70c   : > { %v2726_v20 = vpop.f32.mrf.mxu0 }
 0x70d   : > { %v2839_v37 = vmax.f32 %v2636_v24, 0.0  ;;  %v2727_v53 = vadd.f32 %v2726_v20, %v5228_v21 }
 0x70f   : > { %v2922_v62 = vpack.c.bf16 %v2840_v36, %v2839_v37  ;;  %v2844_v15 = vmax.f32 %v2727_v53, 0.0 }
 0x711   : > { %2986 = vst [vmem:[%s5067_s13 + $0x168] sm:$0xff] %v2922_v62 }
 0x712   : > { %v2637_v39 = vpop.f32.mrf.mxu3 }
 0x713   : > { %v2638_v59 = vadd.f32 %v2637_v39, %v5228_v21 }
 0x714   : > { %v2729_v27 = vpop.f32.mrf.mxu0 }
 0x715   : > { %v2843_v4 = vmax.f32 %v2638_v59, 0.0  ;;  %v2730_v17 = vadd.f32 %v2729_v27, %v5236_v6 }
 0x717   : > { %v2924_v56 = vpack.c.bf16 %v2844_v15, %v2843_v4  ;;  %v2848_v44 = vmax.f32 %v2730_v17, 0.0 }
 0x719   : > { %2988 = vst [vmem:[%s5067_s13 + $0x178] sm:$0xff] %v2924_v56 }
 0x71a   : > { %v2640_v57 = vpop.f32.mrf.mxu3 }
 0x71b   : > { %v2641_v52 = vadd.f32 %v2640_v57, %v5236_v6 }
 0x71c   : > { %v2731_v50 = vpop.f32.mrf.mxu0 }
 0x71d   : > { %v2847_v12 = vmax.f32 %v2641_v52, 0.0  ;;  %v2732_v58 = vadd.f32 %v2731_v50, %v5246_v9 }
 0x71f   : > { %v2926_v35 = vpack.c.bf16 %v2848_v44, %v2847_v12  ;;  %v2852_v11 = vmax.f32 %v2732_v58, 0.0 }
 0x721   : > { %2990 = vst [vmem:[%s5067_s13 + $0x188] sm:$0xff] %v2926_v35 }
 0x722   : > { %v2642_v21 = vpop.f32.mrf.mxu3 }
 0x723   : > { %v2643_v61 = vadd.f32 %v2642_v21, %v5246_v9 }
 0x724   : > { %v2734_v32 = vpop.f32.mrf.mxu0 }
 0x725   : > { %v2851_v23 = vmax.f32 %v2643_v61, 0.0  ;;  %v2735_v38 = vadd.f32 %v2734_v32, %v5254_v29 }
 0x727   : > { %v2928_v48 = vpack.c.bf16 %v2852_v11, %v2851_v23  ;;  %v2856_v8 = vmax.f32 %v2735_v38, 0.0 }
 0x729   : > { %2992 = vst [vmem:[%s5067_s13 + $0x198] sm:$0xff] %v2928_v48 }
 0x72a   : > { %v2645_v6 = vpop.f32.mrf.mxu3 }
 0x72b   : > { %v2646_v28 = vadd.f32 %v2645_v6, %v5254_v29 }
 0x72c   : > { %v2736_v1 = vpop.f32.mrf.mxu0 }
 0x72d   : > { %v2855_v19 = vmax.f32 %v2646_v28, 0.0  ;;  %v2737_v0 = vadd.f32 %v2736_v1, %v5264_v47 }
 0x72f   : > { %v2930_v43 = vpack.c.bf16 %v2856_v8, %v2855_v19  ;;  %v2860_v31 = vmax.f32 %v2737_v0, 0.0 }
 0x731   : > { %2994 = vst [vmem:[%s5067_s13 + $0x1a8] sm:$0xff] %v2930_v43 }
 0x732   : > { %v2647_v9 = vpop.f32.mrf.mxu3 }
 0x733   : > { %v2648_v41 = vadd.f32 %v2647_v9, %v5264_v47 }
 0x734   : > { %v2739_v2 = vpop.f32.mrf.mxu0 }
 0x735   : > { %v2859_v34 = vmax.f32 %v2648_v41, 0.0  ;;  %v2740_v10 = vadd.f32 %v2739_v2, %v5272_v22 }
 0x737   : > { %v2932_v63 = vpack.c.bf16 %v2860_v31, %v2859_v34  ;;  %v2864_v7 = vmax.f32 %v2740_v10, 0.0 }
 0x739   : > { %2996 = vst [vmem:[%s5067_s13 + $0x1b8] sm:$0xff] %v2932_v63 }
 0x73a   : > { %v2650_v29 = vpop.f32.mrf.mxu3 }
 0x73b   : > { %v2651_v55 = vadd.f32 %v2650_v29, %v5272_v22 }
 0x73c   : > { %v2741_v46 = vpop.f32.mrf.mxu0 }
 0x73d   : > { %v2863_v3 = vmax.f32 %v2651_v55, 0.0  ;;  %v2742_v47 = vadd.f32 %v2741_v46, %v5282_v25 }
 0x73f   : > { %v2934_v60 = vpack.c.bf16 %v2864_v7, %v2863_v3  ;;  %v2868_v51 = vmax.f32 %v2742_v47, 0.0 }
 0x741   : > { %2998 = vst [vmem:[%s5067_s13 + $0x1c8] sm:$0xff] %v2934_v60 }
 0x742   : > { %v2652_v40 = vpop.f32.mrf.mxu3 }
 0x743   : > { %v2653_v42 = vadd.f32 %v2652_v40, %v5282_v25 }
 0x744   : > { %v2744_v33 = vpop.f32.mrf.mxu0 }
 0x745   : > { %v2867_v30 = vmax.f32 %v2653_v42, 0.0  ;;  %v2745_v22 = vadd.f32 %v2744_v33, %v5290_v14 }
 0x747   : > { %v2936_v18 = vpack.c.bf16 %v2868_v51, %v2867_v30  ;;  %v2872_v16 = vmax.f32 %v2745_v22, 0.0 }
 0x749   : > { %3000 = vst [vmem:[%s5067_s13 + $0x1d8] sm:$0xff] %v2936_v18 }
 0x74a   : > { %v2655_v54 = vpop.f32.mrf.mxu3 }
 0x74b   : > { %v2656_v45 = vadd.f32 %v2655_v54, %v5290_v14 }
 0x74c   : > { %v2746_v25 = vpop.f32.mrf.mxu0 }
 0x74d   : > { %v2871_v13 = vmax.f32 %v2656_v45, 0.0  ;;  %v2747_v49 = vadd.f32 %v2746_v25, %v5300_v26 }
 0x74f   : > { %v2938_v5 = vpack.c.bf16 %v2872_v16, %v2871_v13  ;;  %v2876_v14 = vmax.f32 %v2747_v49, 0.0 }
 0x751   : > { %3002 = vst [vmem:[%s5067_s13 + $0x1e8] sm:$0xff] %v2938_v5 }
 0x752   : > { %v2657_v24 = vpop.f32.mrf.mxu3 }
 0x753   : > { %v2658_v20 = vadd.f32 %v2657_v24, %v5300_v26 }
 0x755   : > { %v2875_v36 = vmax.f32 %v2658_v20, 0.0 }
 0x757   : > { %v2940_v37 = vpack.c.bf16 %v2876_v14, %v2875_v36 }
 0x759   : > { %3004 = vst [vmem:[%s5067_s13 + $0x1f8] sm:$0xff] %v2940_v37 }
 0x75a   : > { %3661 = shalt.err (!%p3658_p7)
}
 0x75b   : > { %s3731_s26 = smov 256   ;;  %s3732_s13 = smov 512  }
 0x75c   : > { %s3733_s1 = smov 16  }
 0x75d   : > { %3411 = dma.vmem_to_hbm [thread:$0]  (%p3845_p3), %s3021_s21, 8192, %s3023_s25, %s3006_s29, %s3731_s26, %s3732_s13, %s3733_s1  }
 0x75e PF: > { %p3417_p9 = scmp.ge.s32.totalorder %s3728_s24, 2  ;;  %s3037_s15 = sand.u32 1, %s3700_s17  }
 0x75f   : > { %s3038_s27 = scalar_lea.sflag [#allocation3], %s3037_s15 }
 0x760   : > { %p3414_p10 = pnand %p3417_p9, %p3854_p8 }
 0x762   : > { %p3415_p11 = pneg %p3414_p10 }
 0x764   : > { %3695 = dma.done.wait (%p3415_p11), %s3038_s27, 8192  }
 0x765   : > { %3697 = vsyncadd (%p3415_p11), %s3038_s27, 4294959104  ;;  %s24_s24 = sadd.s32 1, %s3728_s24   ;;  %s5494_s21 = sld [smem:[#allocation5_spill]] }
 0x766   : > { %p21_p12 = scmp.ge.s32.totalorder %s24_s24, 6   ;;  %s5495_s1 = sld [smem:[#allocation6_spill]] }
 0x767   : > { %s5496_s23 = sld [smem:[#allocation7_spill]]  ;;  %s5497_s17 = smov %s3704_s18 }
 0x768   : > { %s5498_s18 = smov %s3708_s19  ;;  %s5499_s19 = smov %s3863_s16 }
 0x769   : > { %s5500_s20 = smov %s3720_s22  ;;  %23 = sbr.rel (!%p21_p12) target bundleno = 8 (0x8), region = 99 }
 0x76c   : > { %s5501_s22 = smov %s5495_s1 }
 0x76e   :  { %3044 = vsyncpa [#allocation3], 1 }
 0x76f   :  { %3046 = vsyncpa [#allocation3 + $0x1], 1 }

</bundles_post_ra>
